<compile_context>
chip_gen: v7x
topology: tpu7x:2x2x1
jax: 0.10.0
libtpu: 0.0.40
codegen_flags: <defaults>
</compile_context>

<pallas_src>
import functools

import jax
import jax.numpy as jnp
from jax.experimental import pallas as pl
from jax.experimental.pallas import tpu as pltpu


# Timesteps processed per grid step of the recurrent kernel.
# TODO(synk): at production sizes raise to 16-32 on v6e (128 MiB VMEM) and size for
#             v7x's 64 MiB/TC: bf16 gates + single-buffered w_hh (pl.Buffered(1)) +
#             vmem_limit_bytes ~56 MiB.  v5e: pad B to a multiple of 8 (ideally 128)
#             so the recurrent matmul M-dim fills the MXU.
CHUNK_T = 8


# -----------------------------------------------------------------------------
# Fused bidirectional LSTM recurrence.
#   grid = (2 directions ["parallel"], num_time_chunks ["arbitrary"])
#   gate pre-activations (x @ W_ih, bf16) are precomputed outside the kernel,
#   bias is added in-kernel.
# -----------------------------------------------------------------------------
def _lstm_chunk_kernel(len_ref, gates_ref, whh_ref, bias_ref, out_ref,
                       h_sc, c_sc, *, chunk):
    d = pl.program_id(0)           # direction: 0 = forward, 1 = backward
    c = pl.program_id(1)           # chunk index along the (padded) time axis
    nc = pl.num_programs(1)

    # Fresh state at the start of each direction's time sweep.
    @pl.when(c == 0)
    def _():
        h_sc[...] = jnp.zeros_like(h_sc)
        c_sc[...] = jnp.zeros_like(c_sc)

    whh = whh_ref[...]             # (H, 4H)  bf16 recurrent weights, this direction
    bias = bias_ref[...]           # (1, 4H)  f32 combined bias (b_ih + b_hh)
    lengths = len_ref[...]         # (B, 1)   int32 sequence lengths
    H = h_sc.shape[-1]

    def cell(row, pos, h_prev, c_prev):
        # Recurrent matmul only (bf16 operands, f32 accumulate); input projection
        # was hoisted out, bias rides in VPU slack.
        gates = (gates_ref[row].astype(jnp.float32) + bias
                 + jnp.dot(h_prev.astype(whh.dtype), whh,
                           preferred_element_type=jnp.float32))
        # PyTorch gate order: i, f, g, o.
        # (At H < 128 these slices cost a few relayouts; lane-aligned at real H.)
        i_g = jax.nn.sigmoid(gates[:, 0 * H:1 * H])
        f_g = jax.nn.sigmoid(gates[:, 1 * H:2 * H])
        g_g = jnp.tanh(gates[:, 2 * H:3 * H])
        o_g = jax.nn.sigmoid(gates[:, 3 * H:4 * H])

        c_new = f_g * c_prev + i_g * g_g
        h_new = o_g * jnp.tanh(c_new)

        # Packed-sequence semantics: freeze state past each sequence end, zero the
        # output there (mask built in-kernel from lengths, no per-step mask DMA).
        m = (pos < lengths).astype(jnp.float32)        # (B, 1)
        out_ref[row] = (m * h_new).astype(out_ref.dtype)
        h_next = m * h_new + (1.0 - m) * h_prev
        c_next = m * c_new + (1.0 - m) * c_prev
        return h_next, c_next

    # Two bodies with STATIC row indices (Python ints) so the unrolled gate loads /
    # output stores need no scalar address computation on the serial path.
    @pl.when(d == 0)
    def _():
        base = c * chunk                               # forward: ascending time
        h, cst = h_sc[...], c_sc[...]
        for j in range(chunk):
            h, cst = cell(j, base + j, h, cst)
        h_sc[...] = h
        c_sc[...] = cst

    @pl.when(d == 1)
    def _():
        base = (nc - 1 - c) * chunk                    # backward: global reversal
        h, cst = h_sc[...], c_sc[...]
        for j in range(chunk - 1, -1, -1):
            h, cst = cell(j, base + j, h, cst)
        h_sc[...] = h
        c_sc[...] = cst


def _bilstm(gates_pre, w_hh, bias, lengths_b1, *, chunk):
    """gates_pre: (2, Tp, B, 4H) bf16, w_hh: (2, H, 4H) bf16, bias: (2, 1, 4H) f32,
    lengths_b1: (B, 1) int32.

    Returns (2, Tp, B, H) f32: both directions' outputs in natural time order,
    zeroed at padded positions.
    """
    _, Tp, B, H4 = gates_pre.shape
    H = H4 // 4
    NC = Tp // chunk

    def tblock(d, c):
        # forward: block c ; backward: block NC-1-c (global reversal, no gathers)
        return c + d * (NC - 1 - 2 * c)

    kernel = functools.partial(_lstm_chunk_kernel, chunk=chunk)
    return pl.pallas_call(
        kernel,
        out_shape=jax.ShapeDtypeStruct((2, Tp, B, H), jnp.float32),
        grid_spec=pltpu.PrefetchScalarGridSpec(
            num_scalar_prefetch=0,
            grid=(2, NC),
            in_specs=[
                # lengths: tiny resident block, constant index map
                pl.BlockSpec((B, 1), lambda d, c: (0, 0)),
                # precomputed bf16 gate pre-activations, one time-chunk per step
                pl.BlockSpec((None, chunk, B, H4),
                             lambda d, c: (d, tblock(d, c), 0, 0)),
                # per-direction recurrent weights (constant across time chunks)
                # TODO(synk): pipeline_mode=pl.Buffered(1) at production H on v7x.
                pl.BlockSpec((None, H, H4), lambda d, c: (d, 0, 0)),
                # per-direction combined bias, resident
                pl.BlockSpec((None, 1, H4), lambda d, c: (d, 0, 0)),
            ],
            out_specs=pl.BlockSpec((None, chunk, B, H),
                                   lambda d, c: (d, tblock(d, c), 0, 0)),
            scratch_shapes=[pltpu.VMEM((B, H), jnp.float32),
                            pltpu.VMEM((B, H), jnp.float32)],
        ),
        compiler_params=pltpu.CompilerParams(
            dimension_semantics=("parallel", "arbitrary")),
    )(lengths_b1, gates_pre, w_hh, bias)


# -----------------------------------------------------------------------------
# Self-attention pooling head, batch-blocked & lane-dense, reading the LSTM
# output directly in its (2, Tp, B, H) layout (no (B,T,2H) materialization).
# -----------------------------------------------------------------------------
def _attention_kernel(len_ref, o_ref, w_ref, rep_ref, att_ref):
    of = o_ref[0]                      # (Tp, Bb, H) forward outputs
    ob = o_ref[1]                      # (Tp, Bb, H) backward outputs
    wf = w_ref[0]                      # (1, 1, H)   scoring vector, forward half
    wb = w_ref[1]                      # (1, 1, H)   scoring vector, backward half

    # score_{t,b} = tanh(o_{t,b} . w): VPU multiply + lane reduction over H
    # (avoids an N=1 MXU matmul), then one small XLU transpose to (Bb, Tp) so the
    # softmax reduction and the attention store are lane-dense over T.
    s = jnp.sum(of * wf + ob * wb, axis=-1)                       # (Tp, Bb)
    sc = jnp.tanh(s).T                                            # (Bb, Tp)

    Bb, Tp = sc.shape
    pos = jax.lax.broadcasted_iota(jnp.int32, (Bb, Tp), 1)
    msk = (pos < len_ref[...]).astype(jnp.float32)                # (Bb, Tp)

    # Masked softmax over T (identical to softmax -> mask -> renormalize).
    sc = sc - jnp.max(sc, axis=-1, keepdims=True)
    e = jnp.exp(sc) * msk
    denom = jnp.maximum(jnp.sum(e, axis=-1, keepdims=True), 1e-9)  # guard 0/0
    attn = e / denom                                               # (Bb, Tp)
    att_ref[...] = attn.astype(att_ref.dtype)

    # Weighted pooling over T, concatenating fwd/bwd along lanes in-kernel.
    a = attn.T[:, :, None]                                         # (Tp, Bb, 1)
    rep_f = jnp.sum(a * of, axis=0)                                # (Bb, H)
    rep_b = jnp.sum(a * ob, axis=0)                                # (Bb, H)
    rep_ref[...] = jnp.concatenate([rep_f, rep_b], axis=-1).astype(rep_ref.dtype)


def self_attention(out_dirs, mask_bt, att_w):
    """out_dirs: (2, Tp, B, H) f32 LSTM outputs (zeros at masked/padded positions).
    mask_bt: (B, T) {0,1}.  att_w: (1, 2H) scoring vector.
    Returns representations (B, 2H) and attentions (B, Tp) (caller slices to T)."""
    _, Tp, B, H = out_dirs.shape
    # Length per row derived from the provided mask (standard length mask).
    lens = jnp.sum(mask_bt.astype(jnp.int32), axis=-1).reshape(B, 1)
    w4 = att_w.astype(jnp.float32).reshape(2, 1, 1, H)

    # Batch block: lane/sublane rule needs Bb == B or Bb % 8 == 0.
    # TODO(synk): pad B up to a multiple of 8 at production so Bb >= 8 always.
    Bb = 8 if (B % 8 == 0) else B

    rep, att = pl.pallas_call(
        _attention_kernel,
        out_shape=(jax.ShapeDtypeStruct((B, 2 * H), jnp.float32),
                   jax.ShapeDtypeStruct((B, Tp), jnp.float32)),
        grid=(B // Bb,),
        in_specs=[
            pl.BlockSpec((Bb, 1), lambda b: (b, 0)),
            pl.BlockSpec((2, Tp, Bb, H), lambda b: (0, 0, b, 0)),
            pl.BlockSpec((2, 1, 1, H), lambda b: (0, 0, 0, 0)),
        ],
        out_specs=(
            pl.BlockSpec((Bb, 2 * H), lambda b: (b, 0)),
            pl.BlockSpec((Bb, Tp), lambda b: (b, 0)),
        ),
        compiler_params=pltpu.CompilerParams(dimension_semantics=("parallel",)),
    )(lens, out_dirs, w4)
    return rep, att


# -----------------------------------------------------------------------------
# Encoder forward (glue in plain JAX, serial/hot paths in Pallas).
# -----------------------------------------------------------------------------
@jax.jit
def encoder_forward(params, tokens, lengths, mask):
    B, T = tokens.shape

    # Embedding lookup (gather -- glue), cast to bf16 for the MXU projection.
    emb = params["embedding"][tokens]                              # (B, T, E) f32
    emb_bf = emb.astype(jnp.bfloat16)

    # Pad the SMALL embedding (not the 4H-wide gates tensor) to a chunk multiple.
    chunk = min(CHUNK_T, T)
    Tp = ((T + chunk - 1) // chunk) * chunk
    if Tp != T:
        emb_bf = jnp.pad(emb_bf, ((0, 0), (0, Tp - T), (0, 0)))

    # Hoisted input projection for BOTH directions and ALL timesteps: one big MXU
    # matmul (bf16 in, f32 accumulate), stored as a bf16 stream for the recurrence.
    gates_pre = jnp.einsum("bte,deg->dtbg", emb_bf, params["w_ih"],
                           preferred_element_type=jnp.float32)     # (2, Tp, B, 4H)
    gates_pre = gates_pre.astype(jnp.bfloat16)

    lengths_b1 = lengths.astype(jnp.int32).reshape(B, 1)

    out_dirs = _bilstm(gates_pre, params["w_hh"], params["b"], lengths_b1,
                       chunk=chunk)                                # (2, Tp, B, H)

    # Attention consumes the (2, Tp, B, H) layout directly -- the (B, T, 2H)
    # intermediate is never materialized in HBM.
    representations, attentions = self_attention(out_dirs, mask, params["att_w"])
    return representations, attentions[:, :T]


# -----------------------------------------------------------------------------
# Pure-JAX (f32) reference of the same forward pass, for a numerical check.
# -----------------------------------------------------------------------------
def _reference_forward(params, tokens, lengths, mask):
    emb = params["embedding"][tokens].astype(jnp.float32)          # (B, T, E)
    B, T, _ = emb.shape
    w_ih = params["w_ih"].astype(jnp.float32)                      # (2, E, 4H)
    w_hh = params["w_hh"].astype(jnp.float32)                      # (2, H, 4H)
    b = params["b"].astype(jnp.float32)                            # (2, 1, 4H)
    H = w_hh.shape[1]

    def run(d, order):
        def cell(carry, t):
            h, c = carry
            g = emb[:, t] @ w_ih[d] + h @ w_hh[d] + b[d]
            i = jax.nn.sigmoid(g[:, :H])
            f = jax.nn.sigmoid(g[:, H:2 * H])
            gg = jnp.tanh(g[:, 2 * H:3 * H])
            o = jax.nn.sigmoid(g[:, 3 * H:])
            cn = f * c + i * gg
            hn = o * jnp.tanh(cn)
            m = (t < lengths)[:, None].astype(jnp.float32)
            return (m * hn + (1 - m) * h, m * cn + (1 - m) * c), m * hn
        init = (jnp.zeros((B, H), jnp.float32), jnp.zeros((B, H), jnp.float32))
        _, outs = jax.lax.scan(cell, init, order)
        return outs                                                # (T, B, H)

    out_f = run(0, jnp.arange(T))
    out_b = run(1, jnp.arange(T)[::-1])[::-1]                      # natural time order
    outputs = jnp.concatenate([jnp.transpose(out_f, (1, 0, 2)),
                               jnp.transpose(out_b, (1, 0, 2))], axis=-1)  # (B,T,2H)

    score = jnp.tanh(outputs @ params["att_w"].astype(jnp.float32).reshape(-1))
    e = jnp.exp(score - jnp.max(score, axis=-1, keepdims=True)) * mask
    attn = e / jnp.maximum(jnp.sum(e, axis=-1, keepdims=True), 1e-9)
    rep = jnp.einsum("bt,btd->bd", attn, outputs)
    return rep, attn


# -----------------------------------------------------------------------------
# Deterministic parameter construction.
# -----------------------------------------------------------------------------
def make_params(key, vocab_size, embedding_size, hidden_size):
    ks = jax.random.split(key, 8)
    E, H = embedding_size, hidden_size
    s = 0.1
    w_ih = jnp.stack([jax.random.normal(ks[1], (E, 4 * H), jnp.float32),
                      jax.random.normal(ks[2], (E, 4 * H), jnp.float32)]) * s
    w_hh = jnp.stack([jax.random.normal(ks[3], (H, 4 * H), jnp.float32),
                      jax.random.normal(ks[4], (H, 4 * H), jnp.float32)]) * s
    b = (jax.random.normal(ks[5], (2, 4 * H), jnp.float32) * s
         + jax.random.normal(ks[6], (2, 4 * H), jnp.float32) * s)   # b_ih + b_hh
    return {
        "embedding": jax.random.normal(ks[0], (vocab_size, E), jnp.float32) * s,
        # weights transposed & stacked per direction, bf16 (MXU-native inputs):
        "w_ih": w_ih.astype(jnp.bfloat16),      # (2, E, 4H), gate order i, f, g, o
        "w_hh": w_hh.astype(jnp.bfloat16),      # (2, H, 4H)
        "b": b.reshape(2, 1, 4 * H),            # (2, 1, 4H) f32
        # attention scoring vector over bidirectional output dim (1, 2H)
        "att_w": jax.random.normal(ks[7], (1, 2 * H), jnp.float32) * s,
    }


if __name__ == "__main__":
    vocab_size, embedding_size, hidden_size = 50, 32, 32
    B, T = 2, 8

    key = jax.random.PRNGKey(0)
    kp, kt = jax.random.split(key)
    params = make_params(kp, vocab_size, embedding_size, hidden_size)

    tokens = jax.random.randint(kt, (B, T), 0, vocab_size, dtype=jnp.int32)
    lengths = jnp.array([T, T - 3], dtype=jnp.int32)   # sorted descending (pack_padded)
    mask = (jnp.arange(T)[None, :] < lengths[:, None]).astype(jnp.float32)  # (B, T)

    reps, attns = encoder_forward(params, tokens, lengths, mask)
    jax.block_until_ready((reps, attns))

    assert reps.shape == (B, 2 * hidden_size)
    assert attns.shape == (B, T)
    assert bool(jnp.all(jnp.isfinite(reps))) and bool(jnp.all(jnp.isfinite(attns)))

    # Numerical check vs. pure-JAX f32 reference (loose tolerance: bf16 MXU inputs).
    ref_reps, ref_attns = _reference_forward(params, tokens, lengths, mask)
    assert float(jnp.max(jnp.abs(reps - ref_reps))) < 3e-2
    assert float(jnp.max(jnp.abs(attns - ref_attns))) < 3e-2

    print("KERNEL_OK")
</pallas_src>

<mosaic_0001>
module attributes {stable_mosaic.version = 11 : i64} {
  func.func @_attention_kernel(%arg0: i32, %arg1: memref<2x1xi32, #tpu.memory_space<vmem>>, %arg2: memref<2x8x2x32xf32, #tpu.memory_space<vmem>>, %arg3: memref<2x1x1x32xf32, #tpu.memory_space<vmem>>, %arg4: memref<2x64xf32, #tpu.memory_space<vmem>>, %arg5: memref<2x8xf32, #tpu.memory_space<vmem>>) attributes {dimension_semantics = [#tpu.dimension_semantics<parallel>], iteration_bounds = array<i64: 1>, scalar_prefetch = 0 : i64, scratch_operands = 0 : i64, tpu.core_type = #tpu.core_type<tc>, window_params = [{transform_indices = @transform_0, window_bounds = array<i64: 2, 1>}, {transform_indices = @transform_1, window_bounds = array<i64: 2, 8, 2, 32>}, {pipeline_mode = #tpu.pipeline_mode<synchronous>, transform_indices = @transform_2, window_bounds = array<i64: 2, 1, 1, 32>}, {transform_indices = @transform_3, window_bounds = array<i64: 2, 64>}, {transform_indices = @transform_4, window_bounds = array<i64: 2, 8>}]} {
    %c0 = arith.constant 0 : index
    %c0_0 = arith.constant 0 : index
    %c0_1 = arith.constant 0 : index
    %c0_2 = arith.constant 0 : index
    %0 = vector.load %arg2[%c0, %c0_0, %c0_1, %c0_2] : memref<2x8x2x32xf32, #tpu.memory_space<vmem>>, vector<1x8x2x32xf32>
    %1 = vector.shape_cast %0 : vector<1x8x2x32xf32> to vector<8x2x32xf32>
    %c1 = arith.constant 1 : index
    %c0_3 = arith.constant 0 : index
    %c0_4 = arith.constant 0 : index
    %c0_5 = arith.constant 0 : index
    %2 = vector.load %arg2[%c1, %c0_3, %c0_4, %c0_5] : memref<2x8x2x32xf32, #tpu.memory_space<vmem>>, vector<1x8x2x32xf32>
    %3 = vector.shape_cast %2 : vector<1x8x2x32xf32> to vector<8x2x32xf32>
    %c0_6 = arith.constant 0 : index
    %c0_7 = arith.constant 0 : index
    %c0_8 = arith.constant 0 : index
    %c0_9 = arith.constant 0 : index
    %4 = vector.load %arg3[%c0_6, %c0_7, %c0_8, %c0_9] : memref<2x1x1x32xf32, #tpu.memory_space<vmem>>, vector<1x1x1x32xf32>
    %5 = vector.shape_cast %4 : vector<1x1x1x32xf32> to vector<1x1x32xf32>
    %c1_10 = arith.constant 1 : index
    %c0_11 = arith.constant 0 : index
    %c0_12 = arith.constant 0 : index
    %c0_13 = arith.constant 0 : index
    %6 = vector.load %arg3[%c1_10, %c0_11, %c0_12, %c0_13] : memref<2x1x1x32xf32, #tpu.memory_space<vmem>>, vector<1x1x1x32xf32>
    %7 = vector.shape_cast %6 : vector<1x1x1x32xf32> to vector<1x1x32xf32>
    %8 = vector.broadcast %5 : vector<1x1x32xf32> to vector<8x2x32xf32>
    %9 = arith.mulf %1, %8 : vector<8x2x32xf32>
    %10 = vector.broadcast %7 : vector<1x1x32xf32> to vector<8x2x32xf32>
    %11 = arith.mulf %3, %10 : vector<8x2x32xf32>
    %12 = arith.addf %9, %11 : vector<8x2x32xf32>
    %cst = arith.constant dense<0.000000e+00> : vector<8x2xf32>
    %13 = vector.multi_reduction <add>, %12, %cst [2] : vector<8x2x32xf32> to vector<8x2xf32>
    %14 = math.tanh %13 : vector<8x2xf32>
    %15 = tpu.transpose %14, [1, 0] : vector<8x2xf32> -> vector<2x8xf32>
    %16 = tpu.iota {dimensions = array<i32: 1>} : vector<2x8xi32>
    %c0_14 = arith.constant 0 : index
    %c0_15 = arith.constant 0 : index
    %17 = vector.load %arg1[%c0_14, %c0_15] : memref<2x1xi32, #tpu.memory_space<vmem>>, vector<2x1xi32>
    %18 = vector.broadcast %17 : vector<2x1xi32> to vector<2x8xi32>
    %19 = arith.cmpi slt, %16, %18 : vector<2x8xi32>
    %20 = arith.extui %19 : vector<2x8xi1> to vector<2x8xi32>
    %21 = arith.sitofp %20 : vector<2x8xi32> to vector<2x8xf32>
    %cst_16 = arith.constant dense<0xFF800000> : vector<2xf32>
    %22 = vector.multi_reduction <maximumf>, %15, %cst_16 [1] : vector<2x8xf32> to vector<2xf32>
    %23 = vector.shape_cast %22 : vector<2xf32> to vector<2x1xf32>
    %24 = vector.broadcast %23 : vector<2x1xf32> to vector<2x8xf32>
    %25 = arith.subf %15, %24 : vector<2x8xf32>
    %26 = math.exp %25 : vector<2x8xf32>
    %27 = arith.mulf %26, %21 : vector<2x8xf32>
    %cst_17 = arith.constant dense<0.000000e+00> : vector<2xf32>
    %28 = vector.multi_reduction <add>, %27, %cst_17 [1] : vector<2x8xf32> to vector<2xf32>
    %29 = vector.shape_cast %28 : vector<2xf32> to vector<2x1xf32>
    %cst_18 = arith.constant 9.99999971E-10 : f32
    %30 = vector.broadcast %cst_18 : f32 to vector<2x1xf32>
    %31 = arith.maximumf %29, %30 : vector<2x1xf32>
    %32 = vector.broadcast %31 : vector<2x1xf32> to vector<2x8xf32>
    %33 = arith.divf %27, %32 : vector<2x8xf32>
    %c0_19 = arith.constant 0 : index
    %c0_20 = arith.constant 0 : index
    %34 = vector.load %arg5[%c0_19, %c0_20] : memref<2x8xf32, #tpu.memory_space<vmem>>, vector<2x8xf32>
    tpu.vector_store %arg5[%c0_19, %c0_20], %33 {strides = array<i32>} : memref<2x8xf32, #tpu.memory_space<vmem>>, vector<2x8xf32>,
    %35 = tpu.transpose %33, [1, 0] : vector<2x8xf32> -> vector<8x2xf32>
    %36 = vector.shape_cast %35 : vector<8x2xf32> to vector<8x2x1xf32>
    %37 = vector.broadcast %36 : vector<8x2x1xf32> to vector<8x2x32xf32>
    %38 = arith.mulf %37, %1 : vector<8x2x32xf32>
    %cst_21 = arith.constant dense<0.000000e+00> : vector<2x32xf32>
    %39 = vector.multi_reduction <add>, %38, %cst_21 [0] : vector<8x2x32xf32> to vector<2x32xf32>
    %40 = vector.broadcast %36 : vector<8x2x1xf32> to vector<8x2x32xf32>
    %41 = arith.mulf %40, %3 : vector<8x2x32xf32>
    %cst_22 = arith.constant dense<0.000000e+00> : vector<2x32xf32>
    %42 = vector.multi_reduction <add>, %41, %cst_22 [0] : vector<8x2x32xf32> to vector<2x32xf32>
    %43 = tpu.concatenate %39, %42 in 1 : vector<2x32xf32>, vector<2x32xf32> -> vector<2x64xf32>
    %c0_23 = arith.constant 0 : index
    %c0_24 = arith.constant 0 : index
    %44 = vector.load %arg4[%c0_23, %c0_24] : memref<2x64xf32, #tpu.memory_space<vmem>>, vector<2x64xf32>
    tpu.vector_store %arg4[%c0_23, %c0_24], %43 {strides = array<i32>} : memref<2x64xf32, #tpu.memory_space<vmem>>, vector<2x64xf32>,
    return
  }
  func.func @transform_0(%arg0: i32) -> (i32, i32) {
    %c0_i32 = arith.constant 0 : i32
    %c0_i32_0 = arith.constant 0 : i32
    return %arg0, %c0_i32 : i32, i32
  }
  func.func @transform_1(%arg0: i32) -> (i32, i32, i32, i32) {
    %c0_i32 = arith.constant 0 : i32
    %c0_i32_0 = arith.constant 0 : i32
    %c0_i32_1 = arith.constant 0 : i32
    %c0_i32_2 = arith.constant 0 : i32
    return %c0_i32, %c0_i32_0, %arg0, %c0_i32_1 : i32, i32, i32, i32
  }
  func.func @transform_2(%arg0: i32) -> (i32, i32, i32, i32) {
    %c0_i32 = arith.constant 0 : i32
    %c0_i32_0 = arith.constant 0 : i32
    %c0_i32_1 = arith.constant 0 : i32
    %c0_i32_2 = arith.constant 0 : i32
    %c0_i32_3 = arith.constant 0 : i32
    return %c0_i32, %c0_i32_0, %c0_i32_1, %c0_i32_2 : i32, i32, i32, i32
  }
  func.func @transform_3(%arg0: i32) -> (i32, i32) {
    %c0_i32 = arith.constant 0 : i32
    %c0_i32_0 = arith.constant 0 : i32
    return %arg0, %c0_i32 : i32, i32
  }
  func.func @transform_4(%arg0: i32) -> (i32, i32) {
    %c0_i32 = arith.constant 0 : i32
    %c0_i32_0 = arith.constant 0 : i32
    return %arg0, %c0_i32 : i32, i32
  }
}

module attributes {stable_mosaic.version = 11 : i64} {
  func.func @_lstm_chunk_kernel(%arg0: i32, %arg1: i32, %arg2: memref<2x1xi32, #tpu.memory_space<vmem>>, %arg3: memref<1x8x2x128xbf16, #tpu.memory_space<vmem>>, %arg4: memref<1x32x128xbf16, #tpu.memory_space<vmem>>, %arg5: memref<1x1x128xf32, #tpu.memory_space<vmem>>, %arg6: memref<1x8x2x32xf32, #tpu.memory_space<vmem>>, %arg7: memref<2x32xf32, #tpu.memory_space<vmem>>, %arg8: memref<2x32xf32, #tpu.memory_space<vmem>>) attributes {dimension_semantics = [#tpu.dimension_semantics<parallel>, #tpu.dimension_semantics<arbitrary>], iteration_bounds = array<i64: 2, 1>, scalar_prefetch = 0 : i64, scratch_operands = 2 : i64, tpu.core_type = #tpu.core_type<tc>, window_params = [{pipeline_mode = #tpu.pipeline_mode<synchronous>, transform_indices = @transform_0, window_bounds = array<i64: 2, 1>}, {transform_indices = @transform_1, window_bounds = array<i64: 1, 8, 2, 128>}, {transform_indices = @transform_2, window_bounds = array<i64: 1, 32, 128>}, {transform_indices = @transform_3, window_bounds = array<i64: 1, 1, 128>}, {transform_indices = @transform_4, window_bounds = array<i64: 1, 8, 2, 32>}]} {
    %c0_i32 = arith.constant 0 : i32
    %0 = arith.cmpi eq, %arg1, %c0_i32 : i32
    %1 = arith.extui %0 : i1 to i32
    %c0_i32_0 = arith.constant 0 : i32
    %2 = arith.cmpi ne, %1, %c0_i32_0 : i32
    scf.if %2 {
      %cst = arith.constant 0.000000e+00 : f32
      %14 = vector.broadcast %cst : f32 to vector<2x32xf32>
      %c0_11 = arith.constant 0 : index
      %c0_12 = arith.constant 0 : index
      %15 = vector.load %arg7[%c0_11, %c0_12] : memref<2x32xf32, #tpu.memory_space<vmem>>, vector<2x32xf32>
      tpu.vector_store %arg7[%c0_11, %c0_12], %14 {strides = array<i32>} : memref<2x32xf32, #tpu.memory_space<vmem>>, vector<2x32xf32>,
      %cst_13 = arith.constant 0.000000e+00 : f32
      %16 = vector.broadcast %cst_13 : f32 to vector<2x32xf32>
      %c0_14 = arith.constant 0 : index
      %c0_15 = arith.constant 0 : index
      %17 = vector.load %arg8[%c0_14, %c0_15] : memref<2x32xf32, #tpu.memory_space<vmem>>, vector<2x32xf32>
      tpu.vector_store %arg8[%c0_14, %c0_15], %16 {strides = array<i32>} : memref<2x32xf32, #tpu.memory_space<vmem>>, vector<2x32xf32>,
    } else {
    }
    %c0 = arith.constant 0 : index
    %c0_1 = arith.constant 0 : index
    %c0_2 = arith.constant 0 : index
    %3 = vector.load %arg4[%c0, %c0_1, %c0_2] : memref<1x32x128xbf16, #tpu.memory_space<vmem>>, vector<1x32x128xbf16>
    %4 = vector.shape_cast %3 : vector<1x32x128xbf16> to vector<32x128xbf16>
    %c0_3 = arith.constant 0 : index
    %c0_4 = arith.constant 0 : index
    %c0_5 = arith.constant 0 : index
    %5 = vector.load %arg5[%c0_3, %c0_4, %c0_5] : memref<1x1x128xf32, #tpu.memory_space<vmem>>, vector<1x1x128xf32>
    %6 = vector.shape_cast %5 : vector<1x1x128xf32> to vector<1x128xf32>
    %c0_6 = arith.constant 0 : index
    %c0_7 = arith.constant 0 : index
    %7 = vector.load %arg2[%c0_6, %c0_7] : memref<2x1xi32, #tpu.memory_space<vmem>>, vector<2x1xi32>
    %c0_i32_8 = arith.constant 0 : i32
    %8 = arith.cmpi eq, %arg0, %c0_i32_8 : i32
    %9 = arith.extui %8 : i1 to i32
    %c0_i32_9 = arith.constant 0 : i32
    %10 = arith.cmpi ne, %9, %c0_i32_9 : i32
    scf.if %10 {
      %c8_i32 = arith.constant 8 : i32
      %14 = arith.muli %arg1, %c8_i32 : i32
      %c0_11 = arith.constant 0 : index
      %c0_12 = arith.constant 0 : index
      %15 = vector.load %arg7[%c0_11, %c0_12] : memref<2x32xf32, #tpu.memory_space<vmem>>, vector<2x32xf32>
      %c0_13 = arith.constant 0 : index
      %c0_14 = arith.constant 0 : index
      %16 = vector.load %arg8[%c0_13, %c0_14] : memref<2x32xf32, #tpu.memory_space<vmem>>, vector<2x32xf32>
      %c0_i32_15 = arith.constant 0 : i32
      %17 = arith.addi %14, %c0_i32_15 : i32
      %c0_16 = arith.constant 0 : index
      %c0_17 = arith.constant 0 : index
      %c0_18 = arith.constant 0 : index
      %c0_19 = arith.constant 0 : index
      %18 = vector.load %arg3[%c0_16, %c0_17, %c0_18, %c0_19] : memref<1x8x2x128xbf16, #tpu.memory_space<vmem>>, vector<1x1x2x128xbf16>
      %19 = vector.shape_cast %18 : vector<1x1x2x128xbf16> to vector<2x128xbf16>
      %20 = arith.extf %19 : vector<2x128xbf16> to vector<2x128xf32>
      %21 = vector.broadcast %6 : vector<1x128xf32> to vector<2x128xf32>
      %22 = arith.addf %20, %21 : vector<2x128xf32>
      %23 = arith.truncf %15 : vector<2x32xf32> to vector<2x32xbf16>
      %cst = arith.constant dense<0.000000e+00> : vector<2x128xf32>
      %24 = tpu.matmul %23, %4, %cst {dimension_numbers = #tpu.dot_dimension_numbers<[1], [0], [0], [1], [0, 0, 1, 1], [], []>} : vector<2x32xbf16>, vector<32x128xbf16>, vector<2x128xf32> -> vector<2x128xf32>
      %25 = arith.addf %22, %24 : vector<2x128xf32>
      %26 = vector.extract_strided_slice %25 {offsets = [0, 0], sizes = [2, 32], strides = [1, 1]} : vector<2x128xf32> to vector<2x32xf32>
      %27 = arith.negf %26 : vector<2x32xf32>
      %28 = math.exp %27 : vector<2x32xf32>
      %cst_20 = arith.constant 1.000000e+00 : f32
      %29 = vector.broadcast %cst_20 : f32 to vector<2x32xf32>
      %30 = arith.addf %29, %28 : vector<2x32xf32>
      %31 = arith.divf %29, %30 : vector<2x32xf32>
      %32 = vector.extract_strided_slice %25 {offsets = [0, 32], sizes = [2, 32], strides = [1, 1]} : vector<2x128xf32> to vector<2x32xf32>
      %33 = arith.negf %32 : vector<2x32xf32>
      %34 = math.exp %33 : vector<2x32xf32>
      %cst_21 = arith.constant 1.000000e+00 : f32
      %35 = vector.broadcast %cst_21 : f32 to vector<2x32xf32>
      %36 = arith.addf %35, %34 : vector<2x32xf32>
      %37 = arith.divf %35, %36 : vector<2x32xf32>
      %38 = vector.extract_strided_slice %25 {offsets = [0, 64], sizes = [2, 32], strides = [1, 1]} : vector<2x128xf32> to vector<2x32xf32>
      %39 = math.tanh %38 : vector<2x32xf32>
      %40 = vector.extract_strided_slice %25 {offsets = [0, 96], sizes = [2, 32], strides = [1, 1]} : vector<2x128xf32> to vector<2x32xf32>
      %41 = arith.negf %40 : vector<2x32xf32>
      %42 = math.exp %41 : vector<2x32xf32>
      %cst_22 = arith.constant 1.000000e+00 : f32
      %43 = vector.broadcast %cst_22 : f32 to vector<2x32xf32>
      %44 = arith.addf %43, %42 : vector<2x32xf32>
      %45 = arith.divf %43, %44 : vector<2x32xf32>
      %46 = arith.mulf %37, %16 : vector<2x32xf32>
      %47 = arith.mulf %31, %39 : vector<2x32xf32>
      %48 = arith.addf %46, %47 : vector<2x32xf32>
      %49 = math.tanh %48 : vector<2x32xf32>
      %50 = arith.mulf %45, %49 : vector<2x32xf32>
      %51 = vector.broadcast %17 : i32 to vector<2x1xi32>
      %52 = arith.cmpi slt, %51, %7 : vector<2x1xi32>
      %53 = arith.extui %52 : vector<2x1xi1> to vector<2x1xi32>
      %54 = arith.sitofp %53 : vector<2x1xi32> to vector<2x1xf32>
      %55 = vector.broadcast %54 : vector<2x1xf32> to vector<2x32xf32>
      %56 = arith.mulf %55, %50 : vector<2x32xf32>
      %c0_23 = arith.constant 0 : index
      %c0_24 = arith.constant 0 : index
      %c0_25 = arith.constant 0 : index
      %c0_26 = arith.constant 0 : index
      %57 = vector.load %arg6[%c0_23, %c0_24, %c0_25, %c0_26] : memref<1x8x2x32xf32, #tpu.memory_space<vmem>>, vector<1x1x2x32xf32>
      %58 = vector.shape_cast %57 : vector<1x1x2x32xf32> to vector<2x32xf32>
      %59 = vector.shape_cast %56 : vector<2x32xf32> to vector<1x1x2x32xf32>
      tpu.vector_store %arg6[%c0_23, %c0_24, %c0_25, %c0_26], %59 {strides = array<i32>} : memref<1x8x2x32xf32, #tpu.memory_space<vmem>>, vector<1x1x2x32xf32>,
      %60 = vector.broadcast %54 : vector<2x1xf32> to vector<2x32xf32>
      %61 = arith.mulf %60, %50 : vector<2x32xf32>
      %cst_27 = arith.constant 1.000000e+00 : f32
      %62 = vector.broadcast %cst_27 : f32 to vector<2x1xf32>
      %63 = arith.subf %62, %54 : vector<2x1xf32>
      %64 = vector.broadcast %63 : vector<2x1xf32> to vector<2x32xf32>
      %65 = arith.mulf %64, %15 : vector<2x32xf32>
      %66 = arith.addf %61, %65 : vector<2x32xf32>
      %67 = vector.broadcast %54 : vector<2x1xf32> to vector<2x32xf32>
      %68 = arith.mulf %67, %48 : vector<2x32xf32>
      %cst_28 = arith.constant 1.000000e+00 : f32
      %69 = vector.broadcast %cst_28 : f32 to vector<2x1xf32>
      %70 = arith.subf %69, %54 : vector<2x1xf32>
      %71 = vector.broadcast %70 : vector<2x1xf32> to vector<2x32xf32>
      %72 = arith.mulf %71, %16 : vector<2x32xf32>
      %73 = arith.addf %68, %72 : vector<2x32xf32>
      %c1_i32_29 = arith.constant 1 : i32
      %74 = arith.addi %14, %c1_i32_29 : i32
      %c0_30 = arith.constant 0 : index
      %c1 = arith.constant 1 : index
      %c0_31 = arith.constant 0 : index
      %c0_32 = arith.constant 0 : index
      %75 = vector.load %arg3[%c0_30, %c1, %c0_31, %c0_32] : memref<1x8x2x128xbf16, #tpu.memory_space<vmem>>, vector<1x1x2x128xbf16>
      %76 = vector.shape_cast %75 : vector<1x1x2x128xbf16> to vector<2x128xbf16>
      %77 = arith.extf %76 : vector<2x128xbf16> to vector<2x128xf32>
      %78 = vector.broadcast %6 : vector<1x128xf32> to vector<2x128xf32>
      %79 = arith.addf %77, %78 : vector<2x128xf32>
      %80 = arith.truncf %66 : vector<2x32xf32> to vector<2x32xbf16>
      %cst_33 = arith.constant dense<0.000000e+00> : vector<2x128xf32>
      %81 = tpu.matmul %80, %4, %cst_33 {dimension_numbers = #tpu.dot_dimension_numbers<[1], [0], [0], [1], [0, 0, 1, 1], [], []>} : vector<2x32xbf16>, vector<32x128xbf16>, vector<2x128xf32> -> vector<2x128xf32>
      %82 = arith.addf %79, %81 : vector<2x128xf32>
      %83 = vector.extract_strided_slice %82 {offsets = [0, 0], sizes = [2, 32], strides = [1, 1]} : vector<2x128xf32> to vector<2x32xf32>
      %84 = arith.negf %83 : vector<2x32xf32>
      %85 = math.exp %84 : vector<2x32xf32>
      %cst_34 = arith.constant 1.000000e+00 : f32
      %86 = vector.broadcast %cst_34 : f32 to vector<2x32xf32>
      %87 = arith.addf %86, %85 : vector<2x32xf32>
      %88 = arith.divf %86, %87 : vector<2x32xf32>
      %89 = vector.extract_strided_slice %82 {offsets = [0, 32], sizes = [2, 32], strides = [1, 1]} : vector<2x128xf32> to vector<2x32xf32>
      %90 = arith.negf %89 : vector<2x32xf32>
      %91 = math.exp %90 : vector<2x32xf32>
      %cst_35 = arith.constant 1.000000e+00 : f32
      %92 = vector.broadcast %cst_35 : f32 to vector<2x32xf32>
      %93 = arith.addf %92, %91 : vector<2x32xf32>
      %94 = arith.divf %92, %93 : vector<2x32xf32>
      %95 = vector.extract_strided_slice %82 {offsets = [0, 64], sizes = [2, 32], strides = [1, 1]} : vector<2x128xf32> to vector<2x32xf32>
      %96 = math.tanh %95 : vector<2x32xf32>
      %97 = vector.extract_strided_slice %82 {offsets = [0, 96], sizes = [2, 32], strides = [1, 1]} : vector<2x128xf32> to vector<2x32xf32>
      %98 = arith.negf %97 : vector<2x32xf32>
      %99 = math.exp %98 : vector<2x32xf32>
      %cst_36 = arith.constant 1.000000e+00 : f32
      %100 = vector.broadcast %cst_36 : f32 to vector<2x32xf32>
      %101 = arith.addf %100, %99 : vector<2x32xf32>
      %102 = arith.divf %100, %101 : vector<2x32xf32>
      %103 = arith.mulf %94, %73 : vector<2x32xf32>
      %104 = arith.mulf %88, %96 : vector<2x32xf32>
      %105 = arith.addf %103, %104 : vector<2x32xf32>
      %106 = math.tanh %105 : vector<2x32xf32>
      %107 = arith.mulf %102, %106 : vector<2x32xf32>
      %108 = vector.broadcast %74 : i32 to vector<2x1xi32>
      %109 = arith.cmpi slt, %108, %7 : vector<2x1xi32>
      %110 = arith.extui %109 : vector<2x1xi1> to vector<2x1xi32>
      %111 = arith.sitofp %110 : vector<2x1xi32> to vector<2x1xf32>
      %112 = vector.broadcast %111 : vector<2x1xf32> to vector<2x32xf32>
      %113 = arith.mulf %112, %107 : vector<2x32xf32>
      %c0_37 = arith.constant 0 : index
      %c1_38 = arith.constant 1 : index
      %c0_39 = arith.constant 0 : index
      %c0_40 = arith.constant 0 : index
      %114 = vector.load %arg6[%c0_37, %c1_38, %c0_39, %c0_40] : memref<1x8x2x32xf32, #tpu.memory_space<vmem>>, vector<1x1x2x32xf32>
      %115 = vector.shape_cast %114 : vector<1x1x2x32xf32> to vector<2x32xf32>
      %116 = vector.shape_cast %113 : vector<2x32xf32> to vector<1x1x2x32xf32>
      tpu.vector_store %arg6[%c0_37, %c1_38, %c0_39, %c0_40], %116 {strides = array<i32>} : memref<1x8x2x32xf32, #tpu.memory_space<vmem>>, vector<1x1x2x32xf32>,
      %117 = vector.broadcast %111 : vector<2x1xf32> to vector<2x32xf32>
      %118 = arith.mulf %117, %107 : vector<2x32xf32>
      %cst_41 = arith.constant 1.000000e+00 : f32
      %119 = vector.broadcast %cst_41 : f32 to vector<2x1xf32>
      %120 = arith.subf %119, %111 : vector<2x1xf32>
      %121 = vector.broadcast %120 : vector<2x1xf32> to vector<2x32xf32>
      %122 = arith.mulf %121, %66 : vector<2x32xf32>
      %123 = arith.addf %118, %122 : vector<2x32xf32>
      %124 = vector.broadcast %111 : vector<2x1xf32> to vector<2x32xf32>
      %125 = arith.mulf %124, %105 : vector<2x32xf32>
      %cst_42 = arith.constant 1.000000e+00 : f32
      %126 = vector.broadcast %cst_42 : f32 to vector<2x1xf32>
      %127 = arith.subf %126, %111 : vector<2x1xf32>
      %128 = vector.broadcast %127 : vector<2x1xf32> to vector<2x32xf32>
      %129 = arith.mulf %128, %73 : vector<2x32xf32>
      %130 = arith.addf %125, %129 : vector<2x32xf32>
      %c2_i32 = arith.constant 2 : i32
      %131 = arith.addi %14, %c2_i32 : i32
      %c0_43 = arith.constant 0 : index
      %c2 = arith.constant 2 : index
      %c0_44 = arith.constant 0 : index
      %c0_45 = arith.constant 0 : index
      %132 = vector.load %arg3[%c0_43, %c2, %c0_44, %c0_45] : memref<1x8x2x128xbf16, #tpu.memory_space<vmem>>, vector<1x1x2x128xbf16>
      %133 = vector.shape_cast %132 : vector<1x1x2x128xbf16> to vector<2x128xbf16>
      %134 = arith.extf %133 : vector<2x128xbf16> to vector<2x128xf32>
      %135 = vector.broadcast %6 : vector<1x128xf32> to vector<2x128xf32>
      %136 = arith.addf %134, %135 : vector<2x128xf32>
      %137 = arith.truncf %123 : vector<2x32xf32> to vector<2x32xbf16>
      %cst_46 = arith.constant dense<0.000000e+00> : vector<2x128xf32>
      %138 = tpu.matmul %137, %4, %cst_46 {dimension_numbers = #tpu.dot_dimension_numbers<[1], [0], [0], [1], [0, 0, 1, 1], [], []>} : vector<2x32xbf16>, vector<32x128xbf16>, vector<2x128xf32> -> vector<2x128xf32>
      %139 = arith.addf %136, %138 : vector<2x128xf32>
      %140 = vector.extract_strided_slice %139 {offsets = [0, 0], sizes = [2, 32], strides = [1, 1]} : vector<2x128xf32> to vector<2x32xf32>
      %141 = arith.negf %140 : vector<2x32xf32>
      %142 = math.exp %141 : vector<2x32xf32>
      %cst_47 = arith.constant 1.000000e+00 : f32
      %143 = vector.broadcast %cst_47 : f32 to vector<2x32xf32>
      %144 = arith.addf %143, %142 : vector<2x32xf32>
      %145 = arith.divf %143, %144 : vector<2x32xf32>
      %146 = vector.extract_strided_slice %139 {offsets = [0, 32], sizes = [2, 32], strides = [1, 1]} : vector<2x128xf32> to vector<2x32xf32>
      %147 = arith.negf %146 : vector<2x32xf32>
      %148 = math.exp %147 : vector<2x32xf32>
      %cst_48 = arith.constant 1.000000e+00 : f32
      %149 = vector.broadcast %cst_48 : f32 to vector<2x32xf32>
      %150 = arith.addf %149, %148 : vector<2x32xf32>
      %151 = arith.divf %149, %150 : vector<2x32xf32>
      %152 = vector.extract_strided_slice %139 {offsets = [0, 64], sizes = [2, 32], strides = [1, 1]} : vector<2x128xf32> to vector<2x32xf32>
      %153 = math.tanh %152 : vector<2x32xf32>
      %154 = vector.extract_strided_slice %139 {offsets = [0, 96], sizes = [2, 32], strides = [1, 1]} : vector<2x128xf32> to vector<2x32xf32>
      %155 = arith.negf %154 : vector<2x32xf32>
      %156 = math.exp %155 : vector<2x32xf32>
      %cst_49 = arith.constant 1.000000e+00 : f32
      %157 = vector.broadcast %cst_49 : f32 to vector<2x32xf32>
      %158 = arith.addf %157, %156 : vector<2x32xf32>
      %159 = arith.divf %157, %158 : vector<2x32xf32>
      %160 = arith.mulf %151, %130 : vector<2x32xf32>
      %161 = arith.mulf %145, %153 : vector<2x32xf32>
      %162 = arith.addf %160, %161 : vector<2x32xf32>
      %163 = math.tanh %162 : vector<2x32xf32>
      %164 = arith.mulf %159, %163 : vector<2x32xf32>
      %165 = vector.broadcast %131 : i32 to vector<2x1xi32>
      %166 = arith.cmpi slt, %165, %7 : vector<2x1xi32>
      %167 = arith.extui %166 : vector<2x1xi1> to vector<2x1xi32>
      %168 = arith.sitofp %167 : vector<2x1xi32> to vector<2x1xf32>
      %169 = vector.broadcast %168 : vector<2x1xf32> to vector<2x32xf32>
      %170 = arith.mulf %169, %164 : vector<2x32xf32>
      %c0_50 = arith.constant 0 : index
      %c2_51 = arith.constant 2 : index
      %c0_52 = arith.constant 0 : index
      %c0_53 = arith.constant 0 : index
      %171 = vector.load %arg6[%c0_50, %c2_51, %c0_52, %c0_53] : memref<1x8x2x32xf32, #tpu.memory_space<vmem>>, vector<1x1x2x32xf32>
      %172 = vector.shape_cast %171 : vector<1x1x2x32xf32> to vector<2x32xf32>
      %173 = vector.shape_cast %170 : vector<2x32xf32> to vector<1x1x2x32xf32>
      tpu.vector_store %arg6[%c0_50, %c2_51, %c0_52, %c0_53], %173 {strides = array<i32>} : memref<1x8x2x32xf32, #tpu.memory_space<vmem>>, vector<1x1x2x32xf32>,
      %174 = vector.broadcast %168 : vector<2x1xf32> to vector<2x32xf32>
      %175 = arith.mulf %174, %164 : vector<2x32xf32>
      %cst_54 = arith.constant 1.000000e+00 : f32
      %176 = vector.broadcast %cst_54 : f32 to vector<2x1xf32>
      %177 = arith.subf %176, %168 : vector<2x1xf32>
      %178 = vector.broadcast %177 : vector<2x1xf32> to vector<2x32xf32>
      %179 = arith.mulf %178, %123 : vector<2x32xf32>
      %180 = arith.addf %175, %179 : vector<2x32xf32>
      %181 = vector.broadcast %168 : vector<2x1xf32> to vector<2x32xf32>
      %182 = arith.mulf %181, %162 : vector<2x32xf32>
      %cst_55 = arith.constant 1.000000e+00 : f32
      %183 = vector.broadcast %cst_55 : f32 to vector<2x1xf32>
      %184 = arith.subf %183, %168 : vector<2x1xf32>
      %185 = vector.broadcast %184 : vector<2x1xf32> to vector<2x32xf32>
      %186 = arith.mulf %185, %130 : vector<2x32xf32>
      %187 = arith.addf %182, %186 : vector<2x32xf32>
      %c3_i32 = arith.constant 3 : i32
      %188 = arith.addi %14, %c3_i32 : i32
      %c0_56 = arith.constant 0 : index
      %c3 = arith.constant 3 : index
      %c0_57 = arith.constant 0 : index
      %c0_58 = arith.constant 0 : index
      %189 = vector.load %arg3[%c0_56, %c3, %c0_57, %c0_58] : memref<1x8x2x128xbf16, #tpu.memory_space<vmem>>, vector<1x1x2x128xbf16>
      %190 = vector.shape_cast %189 : vector<1x1x2x128xbf16> to vector<2x128xbf16>
      %191 = arith.extf %190 : vector<2x128xbf16> to vector<2x128xf32>
      %192 = vector.broadcast %6 : vector<1x128xf32> to vector<2x128xf32>
      %193 = arith.addf %191, %192 : vector<2x128xf32>
      %194 = arith.truncf %180 : vector<2x32xf32> to vector<2x32xbf16>
      %cst_59 = arith.constant dense<0.000000e+00> : vector<2x128xf32>
      %195 = tpu.matmul %194, %4, %cst_59 {dimension_numbers = #tpu.dot_dimension_numbers<[1], [0], [0], [1], [0, 0, 1, 1], [], []>} : vector<2x32xbf16>, vector<32x128xbf16>, vector<2x128xf32> -> vector<2x128xf32>
      %196 = arith.addf %193, %195 : vector<2x128xf32>
      %197 = vector.extract_strided_slice %196 {offsets = [0, 0], sizes = [2, 32], strides = [1, 1]} : vector<2x128xf32> to vector<2x32xf32>
      %198 = arith.negf %197 : vector<2x32xf32>
      %199 = math.exp %198 : vector<2x32xf32>
      %cst_60 = arith.constant 1.000000e+00 : f32
      %200 = vector.broadcast %cst_60 : f32 to vector<2x32xf32>
      %201 = arith.addf %200, %199 : vector<2x32xf32>
      %202 = arith.divf %200, %201 : vector<2x32xf32>
      %203 = vector.extract_strided_slice %196 {offsets = [0, 32], sizes = [2, 32], strides = [1, 1]} : vector<2x128xf32> to vector<2x32xf32>
      %204 = arith.negf %203 : vector<2x32xf32>
      %205 = math.exp %204 : vector<2x32xf32>
      %cst_61 = arith.constant 1.000000e+00 : f32
      %206 = vector.broadcast %cst_61 : f32 to vector<2x32xf32>
      %207 = arith.addf %206, %205 : vector<2x32xf32>
      %208 = arith.divf %206, %207 : vector<2x32xf32>
      %209 = vector.extract_strided_slice %196 {offsets = [0, 64], sizes = [2, 32], strides = [1, 1]} : vector<2x128xf32> to vector<2x32xf32>
      %210 = math.tanh %209 : vector<2x32xf32>
      %211 = vector.extract_strided_slice %196 {offsets = [0, 96], sizes = [2, 32], strides = [1, 1]} : vector<2x128xf32> to vector<2x32xf32>
      %212 = arith.negf %211 : vector<2x32xf32>
      %213 = math.exp %212 : vector<2x32xf32>
      %cst_62 = arith.constant 1.000000e+00 : f32
      %214 = vector.broadcast %cst_62 : f32 to vector<2x32xf32>
      %215 = arith.addf %214, %213 : vector<2x32xf32>
      %216 = arith.divf %214, %215 : vector<2x32xf32>
      %217 = arith.mulf %208, %187 : vector<2x32xf32>
      %218 = arith.mulf %202, %210 : vector<2x32xf32>
      %219 = arith.addf %217, %218 : vector<2x32xf32>
      %220 = math.tanh %219 : vector<2x32xf32>
      %221 = arith.mulf %216, %220 : vector<2x32xf32>
      %222 = vector.broadcast %188 : i32 to vector<2x1xi32>
      %223 = arith.cmpi slt, %222, %7 : vector<2x1xi32>
      %224 = arith.extui %223 : vector<2x1xi1> to vector<2x1xi32>
      %225 = arith.sitofp %224 : vector<2x1xi32> to vector<2x1xf32>
      %226 = vector.broadcast %225 : vector<2x1xf32> to vector<2x32xf32>
      %227 = arith.mulf %226, %221 : vector<2x32xf32>
      %c0_63 = arith.constant 0 : index
      %c3_64 = arith.constant 3 : index
      %c0_65 = arith.constant 0 : index
      %c0_66 = arith.constant 0 : index
      %228 = vector.load %arg6[%c0_63, %c3_64, %c0_65, %c0_66] : memref<1x8x2x32xf32, #tpu.memory_space<vmem>>, vector<1x1x2x32xf32>
      %229 = vector.shape_cast %228 : vector<1x1x2x32xf32> to vector<2x32xf32>
      %230 = vector.shape_cast %227 : vector<2x32xf32> to vector<1x1x2x32xf32>
      tpu.vector_store %arg6[%c0_63, %c3_64, %c0_65, %c0_66], %230 {strides = array<i32>} : memref<1x8x2x32xf32, #tpu.memory_space<vmem>>, vector<1x1x2x32xf32>,
      %231 = vector.broadcast %225 : vector<2x1xf32> to vector<2x32xf32>
      %232 = arith.mulf %231, %221 : vector<2x32xf32>
      %cst_67 = arith.constant 1.000000e+00 : f32
      %233 = vector.broadcast %cst_67 : f32 to vector<2x1xf32>
      %234 = arith.subf %233, %225 : vector<2x1xf32>
      %235 = vector.broadcast %234 : vector<2x1xf32> to vector<2x32xf32>
      %236 = arith.mulf %235, %180 : vector<2x32xf32>
      %237 = arith.addf %232, %236 : vector<2x32xf32>
      %238 = vector.broadcast %225 : vector<2x1xf32> to vector<2x32xf32>
      %239 = arith.mulf %238, %219 : vector<2x32xf32>
      %cst_68 = arith.constant 1.000000e+00 : f32
      %240 = vector.broadcast %cst_68 : f32 to vector<2x1xf32>
      %241 = arith.subf %240, %225 : vector<2x1xf32>
      %242 = vector.broadcast %241 : vector<2x1xf32> to vector<2x32xf32>
      %243 = arith.mulf %242, %187 : vector<2x32xf32>
      %244 = arith.addf %239, %243 : vector<2x32xf32>
      %c4_i32 = arith.constant 4 : i32
      %245 = arith.addi %14, %c4_i32 : i32
      %c0_69 = arith.constant 0 : index
      %c4 = arith.constant 4 : index
      %c0_70 = arith.constant 0 : index
      %c0_71 = arith.constant 0 : index
      %246 = vector.load %arg3[%c0_69, %c4, %c0_70, %c0_71] : memref<1x8x2x128xbf16, #tpu.memory_space<vmem>>, vector<1x1x2x128xbf16>
      %247 = vector.shape_cast %246 : vector<1x1x2x128xbf16> to vector<2x128xbf16>
      %248 = arith.extf %247 : vector<2x128xbf16> to vector<2x128xf32>
      %249 = vector.broadcast %6 : vector<1x128xf32> to vector<2x128xf32>
      %250 = arith.addf %248, %249 : vector<2x128xf32>
      %251 = arith.truncf %237 : vector<2x32xf32> to vector<2x32xbf16>
      %cst_72 = arith.constant dense<0.000000e+00> : vector<2x128xf32>
      %252 = tpu.matmul %251, %4, %cst_72 {dimension_numbers = #tpu.dot_dimension_numbers<[1], [0], [0], [1], [0, 0, 1, 1], [], []>} : vector<2x32xbf16>, vector<32x128xbf16>, vector<2x128xf32> -> vector<2x128xf32>
      %253 = arith.addf %250, %252 : vector<2x128xf32>
      %254 = vector.extract_strided_slice %253 {offsets = [0, 0], sizes = [2, 32], strides = [1, 1]} : vector<2x128xf32> to vector<2x32xf32>
      %255 = arith.negf %254 : vector<2x32xf32>
      %256 = math.exp %255 : vector<2x32xf32>
      %cst_73 = arith.constant 1.000000e+00 : f32
      %257 = vector.broadcast %cst_73 : f32 to vector<2x32xf32>
      %258 = arith.addf %257, %256 : vector<2x32xf32>
      %259 = arith.divf %257, %258 : vector<2x32xf32>
      %260 = vector.extract_strided_slice %253 {offsets = [0, 32], sizes = [2, 32], strides = [1, 1]} : vector<2x128xf32> to vector<2x32xf32>
      %261 = arith.negf %260 : vector<2x32xf32>
      %262 = math.exp %261 : vector<2x32xf32>
      %cst_74 = arith.constant 1.000000e+00 : f32
      %263 = vector.broadcast %cst_74 : f32 to vector<2x32xf32>
      %264 = arith.addf %263, %262 : vector<2x32xf32>
      %265 = arith.divf %263, %264 : vector<2x32xf32>
      %266 = vector.extract_strided_slice %253 {offsets = [0, 64], sizes = [2, 32], strides = [1, 1]} : vector<2x128xf32> to vector<2x32xf32>
      %267 = math.tanh %266 : vector<2x32xf32>
      %268 = vector.extract_strided_slice %253 {offsets = [0, 96], sizes = [2, 32], strides = [1, 1]} : vector<2x128xf32> to vector<2x32xf32>
      %269 = arith.negf %268 : vector<2x32xf32>
      %270 = math.exp %269 : vector<2x32xf32>
      %cst_75 = arith.constant 1.000000e+00 : f32
      %271 = vector.broadcast %cst_75 : f32 to vector<2x32xf32>
      %272 = arith.addf %271, %270 : vector<2x32xf32>
      %273 = arith.divf %271, %272 : vector<2x32xf32>
      %274 = arith.mulf %265, %244 : vector<2x32xf32>
      %275 = arith.mulf %259, %267 : vector<2x32xf32>
      %276 = arith.addf %274, %275 : vector<2x32xf32>
      %277 = math.tanh %276 : vector<2x32xf32>
      %278 = arith.mulf %273, %277 : vector<2x32xf32>
      %279 = vector.broadcast %245 : i32 to vector<2x1xi32>
      %280 = arith.cmpi slt, %279, %7 : vector<2x1xi32>
      %281 = arith.extui %280 : vector<2x1xi1> to vector<2x1xi32>
      %282 = arith.sitofp %281 : vector<2x1xi32> to vector<2x1xf32>
      %283 = vector.broadcast %282 : vector<2x1xf32> to vector<2x32xf32>
      %284 = arith.mulf %283, %278 : vector<2x32xf32>
      %c0_76 = arith.constant 0 : index
      %c4_77 = arith.constant 4 : index
      %c0_78 = arith.constant 0 : index
      %c0_79 = arith.constant 0 : index
      %285 = vector.load %arg6[%c0_76, %c4_77, %c0_78, %c0_79] : memref<1x8x2x32xf32, #tpu.memory_space<vmem>>, vector<1x1x2x32xf32>
      %286 = vector.shape_cast %285 : vector<1x1x2x32xf32> to vector<2x32xf32>
      %287 = vector.shape_cast %284 : vector<2x32xf32> to vector<1x1x2x32xf32>
      tpu.vector_store %arg6[%c0_76, %c4_77, %c0_78, %c0_79], %287 {strides = array<i32>} : memref<1x8x2x32xf32, #tpu.memory_space<vmem>>, vector<1x1x2x32xf32>,
      %288 = vector.broadcast %282 : vector<2x1xf32> to vector<2x32xf32>
      %289 = arith.mulf %288, %278 : vector<2x32xf32>
      %cst_80 = arith.constant 1.000000e+00 : f32
      %290 = vector.broadcast %cst_80 : f32 to vector<2x1xf32>
      %291 = arith.subf %290, %282 : vector<2x1xf32>
      %292 = vector.broadcast %291 : vector<2x1xf32> to vector<2x32xf32>
      %293 = arith.mulf %292, %237 : vector<2x32xf32>
      %294 = arith.addf %289, %293 : vector<2x32xf32>
      %295 = vector.broadcast %282 : vector<2x1xf32> to vector<2x32xf32>
      %296 = arith.mulf %295, %276 : vector<2x32xf32>
      %cst_81 = arith.constant 1.000000e+00 : f32
      %297 = vector.broadcast %cst_81 : f32 to vector<2x1xf32>
      %298 = arith.subf %297, %282 : vector<2x1xf32>
      %299 = vector.broadcast %298 : vector<2x1xf32> to vector<2x32xf32>
      %300 = arith.mulf %299, %244 : vector<2x32xf32>
      %301 = arith.addf %296, %300 : vector<2x32xf32>
      %c5_i32 = arith.constant 5 : i32
      %302 = arith.addi %14, %c5_i32 : i32
      %c0_82 = arith.constant 0 : index
      %c5 = arith.constant 5 : index
      %c0_83 = arith.constant 0 : index
      %c0_84 = arith.constant 0 : index
      %303 = vector.load %arg3[%c0_82, %c5, %c0_83, %c0_84] : memref<1x8x2x128xbf16, #tpu.memory_space<vmem>>, vector<1x1x2x128xbf16>
      %304 = vector.shape_cast %303 : vector<1x1x2x128xbf16> to vector<2x128xbf16>
      %305 = arith.extf %304 : vector<2x128xbf16> to vector<2x128xf32>
      %306 = vector.broadcast %6 : vector<1x128xf32> to vector<2x128xf32>
      %307 = arith.addf %305, %306 : vector<2x128xf32>
      %308 = arith.truncf %294 : vector<2x32xf32> to vector<2x32xbf16>
      %cst_85 = arith.constant dense<0.000000e+00> : vector<2x128xf32>
      %309 = tpu.matmul %308, %4, %cst_85 {dimension_numbers = #tpu.dot_dimension_numbers<[1], [0], [0], [1], [0, 0, 1, 1], [], []>} : vector<2x32xbf16>, vector<32x128xbf16>, vector<2x128xf32> -> vector<2x128xf32>
      %310 = arith.addf %307, %309 : vector<2x128xf32>
      %311 = vector.extract_strided_slice %310 {offsets = [0, 0], sizes = [2, 32], strides = [1, 1]} : vector<2x128xf32> to vector<2x32xf32>
      %312 = arith.negf %311 : vector<2x32xf32>
      %313 = math.exp %312 : vector<2x32xf32>
      %cst_86 = arith.constant 1.000000e+00 : f32
      %314 = vector.broadcast %cst_86 : f32 to vector<2x32xf32>
      %315 = arith.addf %314, %313 : vector<2x32xf32>
      %316 = arith.divf %314, %315 : vector<2x32xf32>
      %317 = vector.extract_strided_slice %310 {offsets = [0, 32], sizes = [2, 32], strides = [1, 1]} : vector<2x128xf32> to vector<2x32xf32>
      %318 = arith.negf %317 : vector<2x32xf32>
      %319 = math.exp %318 : vector<2x32xf32>
      %cst_87 = arith.constant 1.000000e+00 : f32
      %320 = vector.broadcast %cst_87 : f32 to vector<2x32xf32>
      %321 = arith.addf %320, %319 : vector<2x32xf32>
      %322 = arith.divf %320, %321 : vector<2x32xf32>
      %323 = vector.extract_strided_slice %310 {offsets = [0, 64], sizes = [2, 32], strides = [1, 1]} : vector<2x128xf32> to vector<2x32xf32>
      %324 = math.tanh %323 : vector<2x32xf32>
      %325 = vector.extract_strided_slice %310 {offsets = [0, 96], sizes = [2, 32], strides = [1, 1]} : vector<2x128xf32> to vector<2x32xf32>
      %326 = arith.negf %325 : vector<2x32xf32>
      %327 = math.exp %326 : vector<2x32xf32>
      %cst_88 = arith.constant 1.000000e+00 : f32
      %328 = vector.broadcast %cst_88 : f32 to vector<2x32xf32>
      %329 = arith.addf %328, %327 : vector<2x32xf32>
      %330 = arith.divf %328, %329 : vector<2x32xf32>
      %331 = arith.mulf %322, %301 : vector<2x32xf32>
      %332 = arith.mulf %316, %324 : vector<2x32xf32>
      %333 = arith.addf %331, %332 : vector<2x32xf32>
      %334 = math.tanh %333 : vector<2x32xf32>
      %335 = arith.mulf %330, %334 : vector<2x32xf32>
      %336 = vector.broadcast %302 : i32 to vector<2x1xi32>
      %337 = arith.cmpi slt, %336, %7 : vector<2x1xi32>
      %338 = arith.extui %337 : vector<2x1xi1> to vector<2x1xi32>
      %339 = arith.sitofp %338 : vector<2x1xi32> to vector<2x1xf32>
      %340 = vector.broadcast %339 : vector<2x1xf32> to vector<2x32xf32>
      %341 = arith.mulf %340, %335 : vector<2x32xf32>
      %c0_89 = arith.constant 0 : index
      %c5_90 = arith.constant 5 : index
      %c0_91 = arith.constant 0 : index
      %c0_92 = arith.constant 0 : index
      %342 = vector.load %arg6[%c0_89, %c5_90, %c0_91, %c0_92] : memref<1x8x2x32xf32, #tpu.memory_space<vmem>>, vector<1x1x2x32xf32>
      %343 = vector.shape_cast %342 : vector<1x1x2x32xf32> to vector<2x32xf32>
      %344 = vector.shape_cast %341 : vector<2x32xf32> to vector<1x1x2x32xf32>
      tpu.vector_store %arg6[%c0_89, %c5_90, %c0_91, %c0_92], %344 {strides = array<i32>} : memref<1x8x2x32xf32, #tpu.memory_space<vmem>>, vector<1x1x2x32xf32>,
      %345 = vector.broadcast %339 : vector<2x1xf32> to vector<2x32xf32>
      %346 = arith.mulf %345, %335 : vector<2x32xf32>
      %cst_93 = arith.constant 1.000000e+00 : f32
      %347 = vector.broadcast %cst_93 : f32 to vector<2x1xf32>
      %348 = arith.subf %347, %339 : vector<2x1xf32>
      %349 = vector.broadcast %348 : vector<2x1xf32> to vector<2x32xf32>
      %350 = arith.mulf %349, %294 : vector<2x32xf32>
      %351 = arith.addf %346, %350 : vector<2x32xf32>
      %352 = vector.broadcast %339 : vector<2x1xf32> to vector<2x32xf32>
      %353 = arith.mulf %352, %333 : vector<2x32xf32>
      %cst_94 = arith.constant 1.000000e+00 : f32
      %354 = vector.broadcast %cst_94 : f32 to vector<2x1xf32>
      %355 = arith.subf %354, %339 : vector<2x1xf32>
      %356 = vector.broadcast %355 : vector<2x1xf32> to vector<2x32xf32>
      %357 = arith.mulf %356, %301 : vector<2x32xf32>
      %358 = arith.addf %353, %357 : vector<2x32xf32>
      %c6_i32 = arith.constant 6 : i32
      %359 = arith.addi %14, %c6_i32 : i32
      %c0_95 = arith.constant 0 : index
      %c6 = arith.constant 6 : index
      %c0_96 = arith.constant 0 : index
      %c0_97 = arith.constant 0 : index
      %360 = vector.load %arg3[%c0_95, %c6, %c0_96, %c0_97] : memref<1x8x2x128xbf16, #tpu.memory_space<vmem>>, vector<1x1x2x128xbf16>
      %361 = vector.shape_cast %360 : vector<1x1x2x128xbf16> to vector<2x128xbf16>
      %362 = arith.extf %361 : vector<2x128xbf16> to vector<2x128xf32>
      %363 = vector.broadcast %6 : vector<1x128xf32> to vector<2x128xf32>
      %364 = arith.addf %362, %363 : vector<2x128xf32>
      %365 = arith.truncf %351 : vector<2x32xf32> to vector<2x32xbf16>
      %cst_98 = arith.constant dense<0.000000e+00> : vector<2x128xf32>
      %366 = tpu.matmul %365, %4, %cst_98 {dimension_numbers = #tpu.dot_dimension_numbers<[1], [0], [0], [1], [0, 0, 1, 1], [], []>} : vector<2x32xbf16>, vector<32x128xbf16>, vector<2x128xf32> -> vector<2x128xf32>
      %367 = arith.addf %364, %366 : vector<2x128xf32>
      %368 = vector.extract_strided_slice %367 {offsets = [0, 0], sizes = [2, 32], strides = [1, 1]} : vector<2x128xf32> to vector<2x32xf32>
      %369 = arith.negf %368 : vector<2x32xf32>
      %370 = math.exp %369 : vector<2x32xf32>
      %cst_99 = arith.constant 1.000000e+00 : f32
      %371 = vector.broadcast %cst_99 : f32 to vector<2x32xf32>
      %372 = arith.addf %371, %370 : vector<2x32xf32>
      %373 = arith.divf %371, %372 : vector<2x32xf32>
      %374 = vector.extract_strided_slice %367 {offsets = [0, 32], sizes = [2, 32], strides = [1, 1]} : vector<2x128xf32> to vector<2x32xf32>
      %375 = arith.negf %374 : vector<2x32xf32>
      %376 = math.exp %375 : vector<2x32xf32>
      %cst_100 = arith.constant 1.000000e+00 : f32
      %377 = vector.broadcast %cst_100 : f32 to vector<2x32xf32>
      %378 = arith.addf %377, %376 : vector<2x32xf32>
      %379 = arith.divf %377, %378 : vector<2x32xf32>
      %380 = vector.extract_strided_slice %367 {offsets = [0, 64], sizes = [2, 32], strides = [1, 1]} : vector<2x128xf32> to vector<2x32xf32>
      %381 = math.tanh %380 : vector<2x32xf32>
      %382 = vector.extract_strided_slice %367 {offsets = [0, 96], sizes = [2, 32], strides = [1, 1]} : vector<2x128xf32> to vector<2x32xf32>
      %383 = arith.negf %382 : vector<2x32xf32>
      %384 = math.exp %383 : vector<2x32xf32>
      %cst_101 = arith.constant 1.000000e+00 : f32
      %385 = vector.broadcast %cst_101 : f32 to vector<2x32xf32>
      %386 = arith.addf %385, %384 : vector<2x32xf32>
      %387 = arith.divf %385, %386 : vector<2x32xf32>
      %388 = arith.mulf %379, %358 : vector<2x32xf32>
      %389 = arith.mulf %373, %381 : vector<2x32xf32>
      %390 = arith.addf %388, %389 : vector<2x32xf32>
      %391 = math.tanh %390 : vector<2x32xf32>
      %392 = arith.mulf %387, %391 : vector<2x32xf32>
      %393 = vector.broadcast %359 : i32 to vector<2x1xi32>
      %394 = arith.cmpi slt, %393, %7 : vector<2x1xi32>
      %395 = arith.extui %394 : vector<2x1xi1> to vector<2x1xi32>
      %396 = arith.sitofp %395 : vector<2x1xi32> to vector<2x1xf32>
      %397 = vector.broadcast %396 : vector<2x1xf32> to vector<2x32xf32>
      %398 = arith.mulf %397, %392 : vector<2x32xf32>
      %c0_102 = arith.constant 0 : index
      %c6_103 = arith.constant 6 : index
      %c0_104 = arith.constant 0 : index
      %c0_105 = arith.constant 0 : index
      %399 = vector.load %arg6[%c0_102, %c6_103, %c0_104, %c0_105] : memref<1x8x2x32xf32, #tpu.memory_space<vmem>>, vector<1x1x2x32xf32>
      %400 = vector.shape_cast %399 : vector<1x1x2x32xf32> to vector<2x32xf32>
      %401 = vector.shape_cast %398 : vector<2x32xf32> to vector<1x1x2x32xf32>
      tpu.vector_store %arg6[%c0_102, %c6_103, %c0_104, %c0_105], %401 {strides = array<i32>} : memref<1x8x2x32xf32, #tpu.memory_space<vmem>>, vector<1x1x2x32xf32>,
      %402 = vector.broadcast %396 : vector<2x1xf32> to vector<2x32xf32>
      %403 = arith.mulf %402, %392 : vector<2x32xf32>
      %cst_106 = arith.constant 1.000000e+00 : f32
      %404 = vector.broadcast %cst_106 : f32 to vector<2x1xf32>
      %405 = arith.subf %404, %396 : vector<2x1xf32>
      %406 = vector.broadcast %405 : vector<2x1xf32> to vector<2x32xf32>
      %407 = arith.mulf %406, %351 : vector<2x32xf32>
      %408 = arith.addf %403, %407 : vector<2x32xf32>
      %409 = vector.broadcast %396 : vector<2x1xf32> to vector<2x32xf32>
      %410 = arith.mulf %409, %390 : vector<2x32xf32>
      %cst_107 = arith.constant 1.000000e+00 : f32
      %411 = vector.broadcast %cst_107 : f32 to vector<2x1xf32>
      %412 = arith.subf %411, %396 : vector<2x1xf32>
      %413 = vector.broadcast %412 : vector<2x1xf32> to vector<2x32xf32>
      %414 = arith.mulf %413, %358 : vector<2x32xf32>
      %415 = arith.addf %410, %414 : vector<2x32xf32>
      %c7_i32 = arith.constant 7 : i32
      %416 = arith.addi %14, %c7_i32 : i32
      %c0_108 = arith.constant 0 : index
      %c7 = arith.constant 7 : index
      %c0_109 = arith.constant 0 : index
      %c0_110 = arith.constant 0 : index
      %417 = vector.load %arg3[%c0_108, %c7, %c0_109, %c0_110] : memref<1x8x2x128xbf16, #tpu.memory_space<vmem>>, vector<1x1x2x128xbf16>
      %418 = vector.shape_cast %417 : vector<1x1x2x128xbf16> to vector<2x128xbf16>
      %419 = arith.extf %418 : vector<2x128xbf16> to vector<2x128xf32>
      %420 = vector.broadcast %6 : vector<1x128xf32> to vector<2x128xf32>
      %421 = arith.addf %419, %420 : vector<2x128xf32>
      %422 = arith.truncf %408 : vector<2x32xf32> to vector<2x32xbf16>
      %cst_111 = arith.constant dense<0.000000e+00> : vector<2x128xf32>
      %423 = tpu.matmul %422, %4, %cst_111 {dimension_numbers = #tpu.dot_dimension_numbers<[1], [0], [0], [1], [0, 0, 1, 1], [], []>} : vector<2x32xbf16>, vector<32x128xbf16>, vector<2x128xf32> -> vector<2x128xf32>
      %424 = arith.addf %421, %423 : vector<2x128xf32>
      %425 = vector.extract_strided_slice %424 {offsets = [0, 0], sizes = [2, 32], strides = [1, 1]} : vector<2x128xf32> to vector<2x32xf32>
      %426 = arith.negf %425 : vector<2x32xf32>
      %427 = math.exp %426 : vector<2x32xf32>
      %cst_112 = arith.constant 1.000000e+00 : f32
      %428 = vector.broadcast %cst_112 : f32 to vector<2x32xf32>
      %429 = arith.addf %428, %427 : vector<2x32xf32>
      %430 = arith.divf %428, %429 : vector<2x32xf32>
      %431 = vector.extract_strided_slice %424 {offsets = [0, 32], sizes = [2, 32], strides = [1, 1]} : vector<2x128xf32> to vector<2x32xf32>
      %432 = arith.negf %431 : vector<2x32xf32>
      %433 = math.exp %432 : vector<2x32xf32>
      %cst_113 = arith.constant 1.000000e+00 : f32
      %434 = vector.broadcast %cst_113 : f32 to vector<2x32xf32>
      %435 = arith.addf %434, %433 : vector<2x32xf32>
      %436 = arith.divf %434, %435 : vector<2x32xf32>
      %437 = vector.extract_strided_slice %424 {offsets = [0, 64], sizes = [2, 32], strides = [1, 1]} : vector<2x128xf32> to vector<2x32xf32>
      %438 = math.tanh %437 : vector<2x32xf32>
      %439 = vector.extract_strided_slice %424 {offsets = [0, 96], sizes = [2, 32], strides = [1, 1]} : vector<2x128xf32> to vector<2x32xf32>
      %440 = arith.negf %439 : vector<2x32xf32>
      %441 = math.exp %440 : vector<2x32xf32>
      %cst_114 = arith.constant 1.000000e+00 : f32
      %442 = vector.broadcast %cst_114 : f32 to vector<2x32xf32>
      %443 = arith.addf %442, %441 : vector<2x32xf32>
      %444 = arith.divf %442, %443 : vector<2x32xf32>
      %445 = arith.mulf %436, %415 : vector<2x32xf32>
      %446 = arith.mulf %430, %438 : vector<2x32xf32>
      %447 = arith.addf %445, %446 : vector<2x32xf32>
      %448 = math.tanh %447 : vector<2x32xf32>
      %449 = arith.mulf %444, %448 : vector<2x32xf32>
      %450 = vector.broadcast %416 : i32 to vector<2x1xi32>
      %451 = arith.cmpi slt, %450, %7 : vector<2x1xi32>
      %452 = arith.extui %451 : vector<2x1xi1> to vector<2x1xi32>
      %453 = arith.sitofp %452 : vector<2x1xi32> to vector<2x1xf32>
      %454 = vector.broadcast %453 : vector<2x1xf32> to vector<2x32xf32>
      %455 = arith.mulf %454, %449 : vector<2x32xf32>
      %c0_115 = arith.constant 0 : index
      %c7_116 = arith.constant 7 : index
      %c0_117 = arith.constant 0 : index
      %c0_118 = arith.constant 0 : index
      %456 = vector.load %arg6[%c0_115, %c7_116, %c0_117, %c0_118] : memref<1x8x2x32xf32, #tpu.memory_space<vmem>>, vector<1x1x2x32xf32>
      %457 = vector.shape_cast %456 : vector<1x1x2x32xf32> to vector<2x32xf32>
      %458 = vector.shape_cast %455 : vector<2x32xf32> to vector<1x1x2x32xf32>
      tpu.vector_store %arg6[%c0_115, %c7_116, %c0_117, %c0_118], %458 {strides = array<i32>} : memref<1x8x2x32xf32, #tpu.memory_space<vmem>>, vector<1x1x2x32xf32>,
      %459 = vector.broadcast %453 : vector<2x1xf32> to vector<2x32xf32>
      %460 = arith.mulf %459, %449 : vector<2x32xf32>
      %cst_119 = arith.constant 1.000000e+00 : f32
      %461 = vector.broadcast %cst_119 : f32 to vector<2x1xf32>
      %462 = arith.subf %461, %453 : vector<2x1xf32>
      %463 = vector.broadcast %462 : vector<2x1xf32> to vector<2x32xf32>
      %464 = arith.mulf %463, %408 : vector<2x32xf32>
      %465 = arith.addf %460, %464 : vector<2x32xf32>
      %466 = vector.broadcast %453 : vector<2x1xf32> to vector<2x32xf32>
      %467 = arith.mulf %466, %447 : vector<2x32xf32>
      %cst_120 = arith.constant 1.000000e+00 : f32
      %468 = vector.broadcast %cst_120 : f32 to vector<2x1xf32>
      %469 = arith.subf %468, %453 : vector<2x1xf32>
      %470 = vector.broadcast %469 : vector<2x1xf32> to vector<2x32xf32>
      %471 = arith.mulf %470, %415 : vector<2x32xf32>
      %472 = arith.addf %467, %471 : vector<2x32xf32>
      %c0_121 = arith.constant 0 : index
      %c0_122 = arith.constant 0 : index
      %473 = vector.load %arg7[%c0_121, %c0_122] : memref<2x32xf32, #tpu.memory_space<vmem>>, vector<2x32xf32>
      tpu.vector_store %arg7[%c0_121, %c0_122], %465 {strides = array<i32>} : memref<2x32xf32, #tpu.memory_space<vmem>>, vector<2x32xf32>,
      %c0_123 = arith.constant 0 : index
      %c0_124 = arith.constant 0 : index
      %474 = vector.load %arg8[%c0_123, %c0_124] : memref<2x32xf32, #tpu.memory_space<vmem>>, vector<2x32xf32>
      tpu.vector_store %arg8[%c0_123, %c0_124], %472 {strides = array<i32>} : memref<2x32xf32, #tpu.memory_space<vmem>>, vector<2x32xf32>,
    } else {
    }
    %c1_i32 = arith.constant 1 : i32
    %11 = arith.cmpi eq, %arg0, %c1_i32 : i32
    %12 = arith.extui %11 : i1 to i32
    %c0_i32_10 = arith.constant 0 : i32
    %13 = arith.cmpi ne, %12, %c0_i32_10 : i32
    scf.if %13 {
      %c0_i32_11 = arith.constant 0 : i32
      %14 = arith.subi %c0_i32_11, %arg1 : i32
      %c8_i32 = arith.constant 8 : i32
      %15 = arith.muli %14, %c8_i32 : i32
      %c0_12 = arith.constant 0 : index
      %c0_13 = arith.constant 0 : index
      %16 = vector.load %arg7[%c0_12, %c0_13] : memref<2x32xf32, #tpu.memory_space<vmem>>, vector<2x32xf32>
      %c0_14 = arith.constant 0 : index
      %c0_15 = arith.constant 0 : index
      %17 = vector.load %arg8[%c0_14, %c0_15] : memref<2x32xf32, #tpu.memory_space<vmem>>, vector<2x32xf32>
      %c7_i32 = arith.constant 7 : i32
      %18 = arith.addi %15, %c7_i32 : i32
      %c0_16 = arith.constant 0 : index
      %c7 = arith.constant 7 : index
      %c0_17 = arith.constant 0 : index
      %c0_18 = arith.constant 0 : index
      %19 = vector.load %arg3[%c0_16, %c7, %c0_17, %c0_18] : memref<1x8x2x128xbf16, #tpu.memory_space<vmem>>, vector<1x1x2x128xbf16>
      %20 = vector.shape_cast %19 : vector<1x1x2x128xbf16> to vector<2x128xbf16>
      %21 = arith.extf %20 : vector<2x128xbf16> to vector<2x128xf32>
      %22 = vector.broadcast %6 : vector<1x128xf32> to vector<2x128xf32>
      %23 = arith.addf %21, %22 : vector<2x128xf32>
      %24 = arith.truncf %16 : vector<2x32xf32> to vector<2x32xbf16>
      %cst = arith.constant dense<0.000000e+00> : vector<2x128xf32>
      %25 = tpu.matmul %24, %4, %cst {dimension_numbers = #tpu.dot_dimension_numbers<[1], [0], [0], [1], [0, 0, 1, 1], [], []>} : vector<2x32xbf16>, vector<32x128xbf16>, vector<2x128xf32> -> vector<2x128xf32>
      %26 = arith.addf %23, %25 : vector<2x128xf32>
      %27 = vector.extract_strided_slice %26 {offsets = [0, 0], sizes = [2, 32], strides = [1, 1]} : vector<2x128xf32> to vector<2x32xf32>
      %28 = arith.negf %27 : vector<2x32xf32>
      %29 = math.exp %28 : vector<2x32xf32>
      %cst_19 = arith.constant 1.000000e+00 : f32
      %30 = vector.broadcast %cst_19 : f32 to vector<2x32xf32>
      %31 = arith.addf %30, %29 : vector<2x32xf32>
      %32 = arith.divf %30, %31 : vector<2x32xf32>
      %33 = vector.extract_strided_slice %26 {offsets = [0, 32], sizes = [2, 32], strides = [1, 1]} : vector<2x128xf32> to vector<2x32xf32>
      %34 = arith.negf %33 : vector<2x32xf32>
      %35 = math.exp %34 : vector<2x32xf32>
      %cst_20 = arith.constant 1.000000e+00 : f32
      %36 = vector.broadcast %cst_20 : f32 to vector<2x32xf32>
      %37 = arith.addf %36, %35 : vector<2x32xf32>
      %38 = arith.divf %36, %37 : vector<2x32xf32>
      %39 = vector.extract_strided_slice %26 {offsets = [0, 64], sizes = [2, 32], strides = [1, 1]} : vector<2x128xf32> to vector<2x32xf32>
      %40 = math.tanh %39 : vector<2x32xf32>
      %41 = vector.extract_strided_slice %26 {offsets = [0, 96], sizes = [2, 32], strides = [1, 1]} : vector<2x128xf32> to vector<2x32xf32>
      %42 = arith.negf %41 : vector<2x32xf32>
      %43 = math.exp %42 : vector<2x32xf32>
      %cst_21 = arith.constant 1.000000e+00 : f32
      %44 = vector.broadcast %cst_21 : f32 to vector<2x32xf32>
      %45 = arith.addf %44, %43 : vector<2x32xf32>
      %46 = arith.divf %44, %45 : vector<2x32xf32>
      %47 = arith.mulf %38, %17 : vector<2x32xf32>
      %48 = arith.mulf %32, %40 : vector<2x32xf32>
      %49 = arith.addf %47, %48 : vector<2x32xf32>
      %50 = math.tanh %49 : vector<2x32xf32>
      %51 = arith.mulf %46, %50 : vector<2x32xf32>
      %52 = vector.broadcast %18 : i32 to vector<2x1xi32>
      %53 = arith.cmpi slt, %52, %7 : vector<2x1xi32>
      %54 = arith.extui %53 : vector<2x1xi1> to vector<2x1xi32>
      %55 = arith.sitofp %54 : vector<2x1xi32> to vector<2x1xf32>
      %56 = vector.broadcast %55 : vector<2x1xf32> to vector<2x32xf32>
      %57 = arith.mulf %56, %51 : vector<2x32xf32>
      %c0_22 = arith.constant 0 : index
      %c7_23 = arith.constant 7 : index
      %c0_24 = arith.constant 0 : index
      %c0_25 = arith.constant 0 : index
      %58 = vector.load %arg6[%c0_22, %c7_23, %c0_24, %c0_25] : memref<1x8x2x32xf32, #tpu.memory_space<vmem>>, vector<1x1x2x32xf32>
      %59 = vector.shape_cast %58 : vector<1x1x2x32xf32> to vector<2x32xf32>
      %60 = vector.shape_cast %57 : vector<2x32xf32> to vector<1x1x2x32xf32>
      tpu.vector_store %arg6[%c0_22, %c7_23, %c0_24, %c0_25], %60 {strides = array<i32>} : memref<1x8x2x32xf32, #tpu.memory_space<vmem>>, vector<1x1x2x32xf32>,
      %61 = vector.broadcast %55 : vector<2x1xf32> to vector<2x32xf32>
      %62 = arith.mulf %61, %51 : vector<2x32xf32>
      %cst_26 = arith.constant 1.000000e+00 : f32
      %63 = vector.broadcast %cst_26 : f32 to vector<2x1xf32>
      %64 = arith.subf %63, %55 : vector<2x1xf32>
      %65 = vector.broadcast %64 : vector<2x1xf32> to vector<2x32xf32>
      %66 = arith.mulf %65, %16 : vector<2x32xf32>
      %67 = arith.addf %62, %66 : vector<2x32xf32>
      %68 = vector.broadcast %55 : vector<2x1xf32> to vector<2x32xf32>
      %69 = arith.mulf %68, %49 : vector<2x32xf32>
      %cst_27 = arith.constant 1.000000e+00 : f32
      %70 = vector.broadcast %cst_27 : f32 to vector<2x1xf32>
      %71 = arith.subf %70, %55 : vector<2x1xf32>
      %72 = vector.broadcast %71 : vector<2x1xf32> to vector<2x32xf32>
      %73 = arith.mulf %72, %17 : vector<2x32xf32>
      %74 = arith.addf %69, %73 : vector<2x32xf32>
      %c6_i32 = arith.constant 6 : i32
      %75 = arith.addi %15, %c6_i32 : i32
      %c0_28 = arith.constant 0 : index
      %c6 = arith.constant 6 : index
      %c0_29 = arith.constant 0 : index
      %c0_30 = arith.constant 0 : index
      %76 = vector.load %arg3[%c0_28, %c6, %c0_29, %c0_30] : memref<1x8x2x128xbf16, #tpu.memory_space<vmem>>, vector<1x1x2x128xbf16>
      %77 = vector.shape_cast %76 : vector<1x1x2x128xbf16> to vector<2x128xbf16>
      %78 = arith.extf %77 : vector<2x128xbf16> to vector<2x128xf32>
      %79 = vector.broadcast %6 : vector<1x128xf32> to vector<2x128xf32>
      %80 = arith.addf %78, %79 : vector<2x128xf32>
      %81 = arith.truncf %67 : vector<2x32xf32> to vector<2x32xbf16>
      %cst_31 = arith.constant dense<0.000000e+00> : vector<2x128xf32>
      %82 = tpu.matmul %81, %4, %cst_31 {dimension_numbers = #tpu.dot_dimension_numbers<[1], [0], [0], [1], [0, 0, 1, 1], [], []>} : vector<2x32xbf16>, vector<32x128xbf16>, vector<2x128xf32> -> vector<2x128xf32>
      %83 = arith.addf %80, %82 : vector<2x128xf32>
      %84 = vector.extract_strided_slice %83 {offsets = [0, 0], sizes = [2, 32], strides = [1, 1]} : vector<2x128xf32> to vector<2x32xf32>
      %85 = arith.negf %84 : vector<2x32xf32>
      %86 = math.exp %85 : vector<2x32xf32>
      %cst_32 = arith.constant 1.000000e+00 : f32
      %87 = vector.broadcast %cst_32 : f32 to vector<2x32xf32>
      %88 = arith.addf %87, %86 : vector<2x32xf32>
      %89 = arith.divf %87, %88 : vector<2x32xf32>
      %90 = vector.extract_strided_slice %83 {offsets = [0, 32], sizes = [2, 32], strides = [1, 1]} : vector<2x128xf32> to vector<2x32xf32>
      %91 = arith.negf %90 : vector<2x32xf32>
      %92 = math.exp %91 : vector<2x32xf32>
      %cst_33 = arith.constant 1.000000e+00 : f32
      %93 = vector.broadcast %cst_33 : f32 to vector<2x32xf32>
      %94 = arith.addf %93, %92 : vector<2x32xf32>
      %95 = arith.divf %93, %94 : vector<2x32xf32>
      %96 = vector.extract_strided_slice %83 {offsets = [0, 64], sizes = [2, 32], strides = [1, 1]} : vector<2x128xf32> to vector<2x32xf32>
      %97 = math.tanh %96 : vector<2x32xf32>
      %98 = vector.extract_strided_slice %83 {offsets = [0, 96], sizes = [2, 32], strides = [1, 1]} : vector<2x128xf32> to vector<2x32xf32>
      %99 = arith.negf %98 : vector<2x32xf32>
      %100 = math.exp %99 : vector<2x32xf32>
      %cst_34 = arith.constant 1.000000e+00 : f32
      %101 = vector.broadcast %cst_34 : f32 to vector<2x32xf32>
      %102 = arith.addf %101, %100 : vector<2x32xf32>
      %103 = arith.divf %101, %102 : vector<2x32xf32>
      %104 = arith.mulf %95, %74 : vector<2x32xf32>
      %105 = arith.mulf %89, %97 : vector<2x32xf32>
      %106 = arith.addf %104, %105 : vector<2x32xf32>
      %107 = math.tanh %106 : vector<2x32xf32>
      %108 = arith.mulf %103, %107 : vector<2x32xf32>
      %109 = vector.broadcast %75 : i32 to vector<2x1xi32>
      %110 = arith.cmpi slt, %109, %7 : vector<2x1xi32>
      %111 = arith.extui %110 : vector<2x1xi1> to vector<2x1xi32>
      %112 = arith.sitofp %111 : vector<2x1xi32> to vector<2x1xf32>
      %113 = vector.broadcast %112 : vector<2x1xf32> to vector<2x32xf32>
      %114 = arith.mulf %113, %108 : vector<2x32xf32>
      %c0_35 = arith.constant 0 : index
      %c6_36 = arith.constant 6 : index
      %c0_37 = arith.constant 0 : index
      %c0_38 = arith.constant 0 : index
      %115 = vector.load %arg6[%c0_35, %c6_36, %c0_37, %c0_38] : memref<1x8x2x32xf32, #tpu.memory_space<vmem>>, vector<1x1x2x32xf32>
      %116 = vector.shape_cast %115 : vector<1x1x2x32xf32> to vector<2x32xf32>
      %117 = vector.shape_cast %114 : vector<2x32xf32> to vector<1x1x2x32xf32>
      tpu.vector_store %arg6[%c0_35, %c6_36, %c0_37, %c0_38], %117 {strides = array<i32>} : memref<1x8x2x32xf32, #tpu.memory_space<vmem>>, vector<1x1x2x32xf32>,
      %118 = vector.broadcast %112 : vector<2x1xf32> to vector<2x32xf32>
      %119 = arith.mulf %118, %108 : vector<2x32xf32>
      %cst_39 = arith.constant 1.000000e+00 : f32
      %120 = vector.broadcast %cst_39 : f32 to vector<2x1xf32>
      %121 = arith.subf %120, %112 : vector<2x1xf32>
      %122 = vector.broadcast %121 : vector<2x1xf32> to vector<2x32xf32>
      %123 = arith.mulf %122, %67 : vector<2x32xf32>
      %124 = arith.addf %119, %123 : vector<2x32xf32>
      %125 = vector.broadcast %112 : vector<2x1xf32> to vector<2x32xf32>
      %126 = arith.mulf %125, %106 : vector<2x32xf32>
      %cst_40 = arith.constant 1.000000e+00 : f32
      %127 = vector.broadcast %cst_40 : f32 to vector<2x1xf32>
      %128 = arith.subf %127, %112 : vector<2x1xf32>
      %129 = vector.broadcast %128 : vector<2x1xf32> to vector<2x32xf32>
      %130 = arith.mulf %129, %74 : vector<2x32xf32>
      %131 = arith.addf %126, %130 : vector<2x32xf32>
      %c5_i32 = arith.constant 5 : i32
      %132 = arith.addi %15, %c5_i32 : i32
      %c0_41 = arith.constant 0 : index
      %c5 = arith.constant 5 : index
      %c0_42 = arith.constant 0 : index
      %c0_43 = arith.constant 0 : index
      %133 = vector.load %arg3[%c0_41, %c5, %c0_42, %c0_43] : memref<1x8x2x128xbf16, #tpu.memory_space<vmem>>, vector<1x1x2x128xbf16>
      %134 = vector.shape_cast %133 : vector<1x1x2x128xbf16> to vector<2x128xbf16>
      %135 = arith.extf %134 : vector<2x128xbf16> to vector<2x128xf32>
      %136 = vector.broadcast %6 : vector<1x128xf32> to vector<2x128xf32>
      %137 = arith.addf %135, %136 : vector<2x128xf32>
      %138 = arith.truncf %124 : vector<2x32xf32> to vector<2x32xbf16>
      %cst_44 = arith.constant dense<0.000000e+00> : vector<2x128xf32>
      %139 = tpu.matmul %138, %4, %cst_44 {dimension_numbers = #tpu.dot_dimension_numbers<[1], [0], [0], [1], [0, 0, 1, 1], [], []>} : vector<2x32xbf16>, vector<32x128xbf16>, vector<2x128xf32> -> vector<2x128xf32>
      %140 = arith.addf %137, %139 : vector<2x128xf32>
      %141 = vector.extract_strided_slice %140 {offsets = [0, 0], sizes = [2, 32], strides = [1, 1]} : vector<2x128xf32> to vector<2x32xf32>
      %142 = arith.negf %141 : vector<2x32xf32>
      %143 = math.exp %142 : vector<2x32xf32>
      %cst_45 = arith.constant 1.000000e+00 : f32
      %144 = vector.broadcast %cst_45 : f32 to vector<2x32xf32>
      %145 = arith.addf %144, %143 : vector<2x32xf32>
      %146 = arith.divf %144, %145 : vector<2x32xf32>
      %147 = vector.extract_strided_slice %140 {offsets = [0, 32], sizes = [2, 32], strides = [1, 1]} : vector<2x128xf32> to vector<2x32xf32>
      %148 = arith.negf %147 : vector<2x32xf32>
      %149 = math.exp %148 : vector<2x32xf32>
      %cst_46 = arith.constant 1.000000e+00 : f32
      %150 = vector.broadcast %cst_46 : f32 to vector<2x32xf32>
      %151 = arith.addf %150, %149 : vector<2x32xf32>
      %152 = arith.divf %150, %151 : vector<2x32xf32>
      %153 = vector.extract_strided_slice %140 {offsets = [0, 64], sizes = [2, 32], strides = [1, 1]} : vector<2x128xf32> to vector<2x32xf32>
      %154 = math.tanh %153 : vector<2x32xf32>
      %155 = vector.extract_strided_slice %140 {offsets = [0, 96], sizes = [2, 32], strides = [1, 1]} : vector<2x128xf32> to vector<2x32xf32>
      %156 = arith.negf %155 : vector<2x32xf32>
      %157 = math.exp %156 : vector<2x32xf32>
      %cst_47 = arith.constant 1.000000e+00 : f32
      %158 = vector.broadcast %cst_47 : f32 to vector<2x32xf32>
      %159 = arith.addf %158, %157 : vector<2x32xf32>
      %160 = arith.divf %158, %159 : vector<2x32xf32>
      %161 = arith.mulf %152, %131 : vector<2x32xf32>
      %162 = arith.mulf %146, %154 : vector<2x32xf32>
      %163 = arith.addf %161, %162 : vector<2x32xf32>
      %164 = math.tanh %163 : vector<2x32xf32>
      %165 = arith.mulf %160, %164 : vector<2x32xf32>
      %166 = vector.broadcast %132 : i32 to vector<2x1xi32>
      %167 = arith.cmpi slt, %166, %7 : vector<2x1xi32>
      %168 = arith.extui %167 : vector<2x1xi1> to vector<2x1xi32>
      %169 = arith.sitofp %168 : vector<2x1xi32> to vector<2x1xf32>
      %170 = vector.broadcast %169 : vector<2x1xf32> to vector<2x32xf32>
      %171 = arith.mulf %170, %165 : vector<2x32xf32>
      %c0_48 = arith.constant 0 : index
      %c5_49 = arith.constant 5 : index
      %c0_50 = arith.constant 0 : index
      %c0_51 = arith.constant 0 : index
      %172 = vector.load %arg6[%c0_48, %c5_49, %c0_50, %c0_51] : memref<1x8x2x32xf32, #tpu.memory_space<vmem>>, vector<1x1x2x32xf32>
      %173 = vector.shape_cast %172 : vector<1x1x2x32xf32> to vector<2x32xf32>
      %174 = vector.shape_cast %171 : vector<2x32xf32> to vector<1x1x2x32xf32>
      tpu.vector_store %arg6[%c0_48, %c5_49, %c0_50, %c0_51], %174 {strides = array<i32>} : memref<1x8x2x32xf32, #tpu.memory_space<vmem>>, vector<1x1x2x32xf32>,
      %175 = vector.broadcast %169 : vector<2x1xf32> to vector<2x32xf32>
      %176 = arith.mulf %175, %165 : vector<2x32xf32>
      %cst_52 = arith.constant 1.000000e+00 : f32
      %177 = vector.broadcast %cst_52 : f32 to vector<2x1xf32>
      %178 = arith.subf %177, %169 : vector<2x1xf32>
      %179 = vector.broadcast %178 : vector<2x1xf32> to vector<2x32xf32>
      %180 = arith.mulf %179, %124 : vector<2x32xf32>
      %181 = arith.addf %176, %180 : vector<2x32xf32>
      %182 = vector.broadcast %169 : vector<2x1xf32> to vector<2x32xf32>
      %183 = arith.mulf %182, %163 : vector<2x32xf32>
      %cst_53 = arith.constant 1.000000e+00 : f32
      %184 = vector.broadcast %cst_53 : f32 to vector<2x1xf32>
      %185 = arith.subf %184, %169 : vector<2x1xf32>
      %186 = vector.broadcast %185 : vector<2x1xf32> to vector<2x32xf32>
      %187 = arith.mulf %186, %131 : vector<2x32xf32>
      %188 = arith.addf %183, %187 : vector<2x32xf32>
      %c4_i32 = arith.constant 4 : i32
      %189 = arith.addi %15, %c4_i32 : i32
      %c0_54 = arith.constant 0 : index
      %c4 = arith.constant 4 : index
      %c0_55 = arith.constant 0 : index
      %c0_56 = arith.constant 0 : index
      %190 = vector.load %arg3[%c0_54, %c4, %c0_55, %c0_56] : memref<1x8x2x128xbf16, #tpu.memory_space<vmem>>, vector<1x1x2x128xbf16>
      %191 = vector.shape_cast %190 : vector<1x1x2x128xbf16> to vector<2x128xbf16>
      %192 = arith.extf %191 : vector<2x128xbf16> to vector<2x128xf32>
      %193 = vector.broadcast %6 : vector<1x128xf32> to vector<2x128xf32>
      %194 = arith.addf %192, %193 : vector<2x128xf32>
      %195 = arith.truncf %181 : vector<2x32xf32> to vector<2x32xbf16>
      %cst_57 = arith.constant dense<0.000000e+00> : vector<2x128xf32>
      %196 = tpu.matmul %195, %4, %cst_57 {dimension_numbers = #tpu.dot_dimension_numbers<[1], [0], [0], [1], [0, 0, 1, 1], [], []>} : vector<2x32xbf16>, vector<32x128xbf16>, vector<2x128xf32> -> vector<2x128xf32>
      %197 = arith.addf %194, %196 : vector<2x128xf32>
      %198 = vector.extract_strided_slice %197 {offsets = [0, 0], sizes = [2, 32], strides = [1, 1]} : vector<2x128xf32> to vector<2x32xf32>
      %199 = arith.negf %198 : vector<2x32xf32>
      %200 = math.exp %199 : vector<2x32xf32>
      %cst_58 = arith.constant 1.000000e+00 : f32
      %201 = vector.broadcast %cst_58 : f32 to vector<2x32xf32>
      %202 = arith.addf %201, %200 : vector<2x32xf32>
      %203 = arith.divf %201, %202 : vector<2x32xf32>
      %204 = vector.extract_strided_slice %197 {offsets = [0, 32], sizes = [2, 32], strides = [1, 1]} : vector<2x128xf32> to vector<2x32xf32>
      %205 = arith.negf %204 : vector<2x32xf32>
      %206 = math.exp %205 : vector<2x32xf32>
      %cst_59 = arith.constant 1.000000e+00 : f32
      %207 = vector.broadcast %cst_59 : f32 to vector<2x32xf32>
      %208 = arith.addf %207, %206 : vector<2x32xf32>
      %209 = arith.divf %207, %208 : vector<2x32xf32>
      %210 = vector.extract_strided_slice %197 {offsets = [0, 64], sizes = [2, 32], strides = [1, 1]} : vector<2x128xf32> to vector<2x32xf32>
      %211 = math.tanh %210 : vector<2x32xf32>
      %212 = vector.extract_strided_slice %197 {offsets = [0, 96], sizes = [2, 32], strides = [1, 1]} : vector<2x128xf32> to vector<2x32xf32>
      %213 = arith.negf %212 : vector<2x32xf32>
      %214 = math.exp %213 : vector<2x32xf32>
      %cst_60 = arith.constant 1.000000e+00 : f32
      %215 = vector.broadcast %cst_60 : f32 to vector<2x32xf32>
      %216 = arith.addf %215, %214 : vector<2x32xf32>
      %217 = arith.divf %215, %216 : vector<2x32xf32>
      %218 = arith.mulf %209, %188 : vector<2x32xf32>
      %219 = arith.mulf %203, %211 : vector<2x32xf32>
      %220 = arith.addf %218, %219 : vector<2x32xf32>
      %221 = math.tanh %220 : vector<2x32xf32>
      %222 = arith.mulf %217, %221 : vector<2x32xf32>
      %223 = vector.broadcast %189 : i32 to vector<2x1xi32>
      %224 = arith.cmpi slt, %223, %7 : vector<2x1xi32>
      %225 = arith.extui %224 : vector<2x1xi1> to vector<2x1xi32>
      %226 = arith.sitofp %225 : vector<2x1xi32> to vector<2x1xf32>
      %227 = vector.broadcast %226 : vector<2x1xf32> to vector<2x32xf32>
      %228 = arith.mulf %227, %222 : vector<2x32xf32>
      %c0_61 = arith.constant 0 : index
      %c4_62 = arith.constant 4 : index
      %c0_63 = arith.constant 0 : index
      %c0_64 = arith.constant 0 : index
      %229 = vector.load %arg6[%c0_61, %c4_62, %c0_63, %c0_64] : memref<1x8x2x32xf32, #tpu.memory_space<vmem>>, vector<1x1x2x32xf32>
      %230 = vector.shape_cast %229 : vector<1x1x2x32xf32> to vector<2x32xf32>
      %231 = vector.shape_cast %228 : vector<2x32xf32> to vector<1x1x2x32xf32>
      tpu.vector_store %arg6[%c0_61, %c4_62, %c0_63, %c0_64], %231 {strides = array<i32>} : memref<1x8x2x32xf32, #tpu.memory_space<vmem>>, vector<1x1x2x32xf32>,
      %232 = vector.broadcast %226 : vector<2x1xf32> to vector<2x32xf32>
      %233 = arith.mulf %232, %222 : vector<2x32xf32>
      %cst_65 = arith.constant 1.000000e+00 : f32
      %234 = vector.broadcast %cst_65 : f32 to vector<2x1xf32>
      %235 = arith.subf %234, %226 : vector<2x1xf32>
      %236 = vector.broadcast %235 : vector<2x1xf32> to vector<2x32xf32>
      %237 = arith.mulf %236, %181 : vector<2x32xf32>
      %238 = arith.addf %233, %237 : vector<2x32xf32>
      %239 = vector.broadcast %226 : vector<2x1xf32> to vector<2x32xf32>
      %240 = arith.mulf %239, %220 : vector<2x32xf32>
      %cst_66 = arith.constant 1.000000e+00 : f32
      %241 = vector.broadcast %cst_66 : f32 to vector<2x1xf32>
      %242 = arith.subf %241, %226 : vector<2x1xf32>
      %243 = vector.broadcast %242 : vector<2x1xf32> to vector<2x32xf32>
      %244 = arith.mulf %243, %188 : vector<2x32xf32>
      %245 = arith.addf %240, %244 : vector<2x32xf32>
      %c3_i32 = arith.constant 3 : i32
      %246 = arith.addi %15, %c3_i32 : i32
      %c0_67 = arith.constant 0 : index
      %c3 = arith.constant 3 : index
      %c0_68 = arith.constant 0 : index
      %c0_69 = arith.constant 0 : index
      %247 = vector.load %arg3[%c0_67, %c3, %c0_68, %c0_69] : memref<1x8x2x128xbf16, #tpu.memory_space<vmem>>, vector<1x1x2x128xbf16>
      %248 = vector.shape_cast %247 : vector<1x1x2x128xbf16> to vector<2x128xbf16>
      %249 = arith.extf %248 : vector<2x128xbf16> to vector<2x128xf32>
      %250 = vector.broadcast %6 : vector<1x128xf32> to vector<2x128xf32>
      %251 = arith.addf %249, %250 : vector<2x128xf32>
      %252 = arith.truncf %238 : vector<2x32xf32> to vector<2x32xbf16>
      %cst_70 = arith.constant dense<0.000000e+00> : vector<2x128xf32>
      %253 = tpu.matmul %252, %4, %cst_70 {dimension_numbers = #tpu.dot_dimension_numbers<[1], [0], [0], [1], [0, 0, 1, 1], [], []>} : vector<2x32xbf16>, vector<32x128xbf16>, vector<2x128xf32> -> vector<2x128xf32>
      %254 = arith.addf %251, %253 : vector<2x128xf32>
      %255 = vector.extract_strided_slice %254 {offsets = [0, 0], sizes = [2, 32], strides = [1, 1]} : vector<2x128xf32> to vector<2x32xf32>
      %256 = arith.negf %255 : vector<2x32xf32>
      %257 = math.exp %256 : vector<2x32xf32>
      %cst_71 = arith.constant 1.000000e+00 : f32
      %258 = vector.broadcast %cst_71 : f32 to vector<2x32xf32>
      %259 = arith.addf %258, %257 : vector<2x32xf32>
      %260 = arith.divf %258, %259 : vector<2x32xf32>
      %261 = vector.extract_strided_slice %254 {offsets = [0, 32], sizes = [2, 32], strides = [1, 1]} : vector<2x128xf32> to vector<2x32xf32>
      %262 = arith.negf %261 : vector<2x32xf32>
      %263 = math.exp %262 : vector<2x32xf32>
      %cst_72 = arith.constant 1.000000e+00 : f32
      %264 = vector.broadcast %cst_72 : f32 to vector<2x32xf32>
      %265 = arith.addf %264, %263 : vector<2x32xf32>
      %266 = arith.divf %264, %265 : vector<2x32xf32>
      %267 = vector.extract_strided_slice %254 {offsets = [0, 64], sizes = [2, 32], strides = [1, 1]} : vector<2x128xf32> to vector<2x32xf32>
      %268 = math.tanh %267 : vector<2x32xf32>
      %269 = vector.extract_strided_slice %254 {offsets = [0, 96], sizes = [2, 32], strides = [1, 1]} : vector<2x128xf32> to vector<2x32xf32>
      %270 = arith.negf %269 : vector<2x32xf32>
      %271 = math.exp %270 : vector<2x32xf32>
      %cst_73 = arith.constant 1.000000e+00 : f32
      %272 = vector.broadcast %cst_73 : f32 to vector<2x32xf32>
      %273 = arith.addf %272, %271 : vector<2x32xf32>
      %274 = arith.divf %272, %273 : vector<2x32xf32>
      %275 = arith.mulf %266, %245 : vector<2x32xf32>
      %276 = arith.mulf %260, %268 : vector<2x32xf32>
      %277 = arith.addf %275, %276 : vector<2x32xf32>
      %278 = math.tanh %277 : vector<2x32xf32>
      %279 = arith.mulf %274, %278 : vector<2x32xf32>
      %280 = vector.broadcast %246 : i32 to vector<2x1xi32>
      %281 = arith.cmpi slt, %280, %7 : vector<2x1xi32>
      %282 = arith.extui %281 : vector<2x1xi1> to vector<2x1xi32>
      %283 = arith.sitofp %282 : vector<2x1xi32> to vector<2x1xf32>
      %284 = vector.broadcast %283 : vector<2x1xf32> to vector<2x32xf32>
      %285 = arith.mulf %284, %279 : vector<2x32xf32>
      %c0_74 = arith.constant 0 : index
      %c3_75 = arith.constant 3 : index
      %c0_76 = arith.constant 0 : index
      %c0_77 = arith.constant 0 : index
      %286 = vector.load %arg6[%c0_74, %c3_75, %c0_76, %c0_77] : memref<1x8x2x32xf32, #tpu.memory_space<vmem>>, vector<1x1x2x32xf32>
      %287 = vector.shape_cast %286 : vector<1x1x2x32xf32> to vector<2x32xf32>
      %288 = vector.shape_cast %285 : vector<2x32xf32> to vector<1x1x2x32xf32>
      tpu.vector_store %arg6[%c0_74, %c3_75, %c0_76, %c0_77], %288 {strides = array<i32>} : memref<1x8x2x32xf32, #tpu.memory_space<vmem>>, vector<1x1x2x32xf32>,
      %289 = vector.broadcast %283 : vector<2x1xf32> to vector<2x32xf32>
      %290 = arith.mulf %289, %279 : vector<2x32xf32>
      %cst_78 = arith.constant 1.000000e+00 : f32
      %291 = vector.broadcast %cst_78 : f32 to vector<2x1xf32>
      %292 = arith.subf %291, %283 : vector<2x1xf32>
      %293 = vector.broadcast %292 : vector<2x1xf32> to vector<2x32xf32>
      %294 = arith.mulf %293, %238 : vector<2x32xf32>
      %295 = arith.addf %290, %294 : vector<2x32xf32>
      %296 = vector.broadcast %283 : vector<2x1xf32> to vector<2x32xf32>
      %297 = arith.mulf %296, %277 : vector<2x32xf32>
      %cst_79 = arith.constant 1.000000e+00 : f32
      %298 = vector.broadcast %cst_79 : f32 to vector<2x1xf32>
      %299 = arith.subf %298, %283 : vector<2x1xf32>
      %300 = vector.broadcast %299 : vector<2x1xf32> to vector<2x32xf32>
      %301 = arith.mulf %300, %245 : vector<2x32xf32>
      %302 = arith.addf %297, %301 : vector<2x32xf32>
      %c2_i32 = arith.constant 2 : i32
      %303 = arith.addi %15, %c2_i32 : i32
      %c0_80 = arith.constant 0 : index
      %c2 = arith.constant 2 : index
      %c0_81 = arith.constant 0 : index
      %c0_82 = arith.constant 0 : index
      %304 = vector.load %arg3[%c0_80, %c2, %c0_81, %c0_82] : memref<1x8x2x128xbf16, #tpu.memory_space<vmem>>, vector<1x1x2x128xbf16>
      %305 = vector.shape_cast %304 : vector<1x1x2x128xbf16> to vector<2x128xbf16>
      %306 = arith.extf %305 : vector<2x128xbf16> to vector<2x128xf32>
      %307 = vector.broadcast %6 : vector<1x128xf32> to vector<2x128xf32>
      %308 = arith.addf %306, %307 : vector<2x128xf32>
      %309 = arith.truncf %295 : vector<2x32xf32> to vector<2x32xbf16>
      %cst_83 = arith.constant dense<0.000000e+00> : vector<2x128xf32>
      %310 = tpu.matmul %309, %4, %cst_83 {dimension_numbers = #tpu.dot_dimension_numbers<[1], [0], [0], [1], [0, 0, 1, 1], [], []>} : vector<2x32xbf16>, vector<32x128xbf16>, vector<2x128xf32> -> vector<2x128xf32>
      %311 = arith.addf %308, %310 : vector<2x128xf32>
      %312 = vector.extract_strided_slice %311 {offsets = [0, 0], sizes = [2, 32], strides = [1, 1]} : vector<2x128xf32> to vector<2x32xf32>
      %313 = arith.negf %312 : vector<2x32xf32>
      %314 = math.exp %313 : vector<2x32xf32>
      %cst_84 = arith.constant 1.000000e+00 : f32
      %315 = vector.broadcast %cst_84 : f32 to vector<2x32xf32>
      %316 = arith.addf %315, %314 : vector<2x32xf32>
      %317 = arith.divf %315, %316 : vector<2x32xf32>
      %318 = vector.extract_strided_slice %311 {offsets = [0, 32], sizes = [2, 32], strides = [1, 1]} : vector<2x128xf32> to vector<2x32xf32>
      %319 = arith.negf %318 : vector<2x32xf32>
      %320 = math.exp %319 : vector<2x32xf32>
      %cst_85 = arith.constant 1.000000e+00 : f32
      %321 = vector.broadcast %cst_85 : f32 to vector<2x32xf32>
      %322 = arith.addf %321, %320 : vector<2x32xf32>
      %323 = arith.divf %321, %322 : vector<2x32xf32>
      %324 = vector.extract_strided_slice %311 {offsets = [0, 64], sizes = [2, 32], strides = [1, 1]} : vector<2x128xf32> to vector<2x32xf32>
      %325 = math.tanh %324 : vector<2x32xf32>
      %326 = vector.extract_strided_slice %311 {offsets = [0, 96], sizes = [2, 32], strides = [1, 1]} : vector<2x128xf32> to vector<2x32xf32>
      %327 = arith.negf %326 : vector<2x32xf32>
      %328 = math.exp %327 : vector<2x32xf32>
      %cst_86 = arith.constant 1.000000e+00 : f32
      %329 = vector.broadcast %cst_86 : f32 to vector<2x32xf32>
      %330 = arith.addf %329, %328 : vector<2x32xf32>
      %331 = arith.divf %329, %330 : vector<2x32xf32>
      %332 = arith.mulf %323, %302 : vector<2x32xf32>
      %333 = arith.mulf %317, %325 : vector<2x32xf32>
      %334 = arith.addf %332, %333 : vector<2x32xf32>
      %335 = math.tanh %334 : vector<2x32xf32>
      %336 = arith.mulf %331, %335 : vector<2x32xf32>
      %337 = vector.broadcast %303 : i32 to vector<2x1xi32>
      %338 = arith.cmpi slt, %337, %7 : vector<2x1xi32>
      %339 = arith.extui %338 : vector<2x1xi1> to vector<2x1xi32>
      %340 = arith.sitofp %339 : vector<2x1xi32> to vector<2x1xf32>
      %341 = vector.broadcast %340 : vector<2x1xf32> to vector<2x32xf32>
      %342 = arith.mulf %341, %336 : vector<2x32xf32>
      %c0_87 = arith.constant 0 : index
      %c2_88 = arith.constant 2 : index
      %c0_89 = arith.constant 0 : index
      %c0_90 = arith.constant 0 : index
      %343 = vector.load %arg6[%c0_87, %c2_88, %c0_89, %c0_90] : memref<1x8x2x32xf32, #tpu.memory_space<vmem>>, vector<1x1x2x32xf32>
      %344 = vector.shape_cast %343 : vector<1x1x2x32xf32> to vector<2x32xf32>
      %345 = vector.shape_cast %342 : vector<2x32xf32> to vector<1x1x2x32xf32>
      tpu.vector_store %arg6[%c0_87, %c2_88, %c0_89, %c0_90], %345 {strides = array<i32>} : memref<1x8x2x32xf32, #tpu.memory_space<vmem>>, vector<1x1x2x32xf32>,
      %346 = vector.broadcast %340 : vector<2x1xf32> to vector<2x32xf32>
      %347 = arith.mulf %346, %336 : vector<2x32xf32>
      %cst_91 = arith.constant 1.000000e+00 : f32
      %348 = vector.broadcast %cst_91 : f32 to vector<2x1xf32>
      %349 = arith.subf %348, %340 : vector<2x1xf32>
      %350 = vector.broadcast %349 : vector<2x1xf32> to vector<2x32xf32>
      %351 = arith.mulf %350, %295 : vector<2x32xf32>
      %352 = arith.addf %347, %351 : vector<2x32xf32>
      %353 = vector.broadcast %340 : vector<2x1xf32> to vector<2x32xf32>
      %354 = arith.mulf %353, %334 : vector<2x32xf32>
      %cst_92 = arith.constant 1.000000e+00 : f32
      %355 = vector.broadcast %cst_92 : f32 to vector<2x1xf32>
      %356 = arith.subf %355, %340 : vector<2x1xf32>
      %357 = vector.broadcast %356 : vector<2x1xf32> to vector<2x32xf32>
      %358 = arith.mulf %357, %302 : vector<2x32xf32>
      %359 = arith.addf %354, %358 : vector<2x32xf32>
      %c1_i32_93 = arith.constant 1 : i32
      %360 = arith.addi %15, %c1_i32_93 : i32
      %c0_94 = arith.constant 0 : index
      %c1 = arith.constant 1 : index
      %c0_95 = arith.constant 0 : index
      %c0_96 = arith.constant 0 : index
      %361 = vector.load %arg3[%c0_94, %c1, %c0_95, %c0_96] : memref<1x8x2x128xbf16, #tpu.memory_space<vmem>>, vector<1x1x2x128xbf16>
      %362 = vector.shape_cast %361 : vector<1x1x2x128xbf16> to vector<2x128xbf16>
      %363 = arith.extf %362 : vector<2x128xbf16> to vector<2x128xf32>
      %364 = vector.broadcast %6 : vector<1x128xf32> to vector<2x128xf32>
      %365 = arith.addf %363, %364 : vector<2x128xf32>
      %366 = arith.truncf %352 : vector<2x32xf32> to vector<2x32xbf16>
      %cst_97 = arith.constant dense<0.000000e+00> : vector<2x128xf32>
      %367 = tpu.matmul %366, %4, %cst_97 {dimension_numbers = #tpu.dot_dimension_numbers<[1], [0], [0], [1], [0, 0, 1, 1], [], []>} : vector<2x32xbf16>, vector<32x128xbf16>, vector<2x128xf32> -> vector<2x128xf32>
      %368 = arith.addf %365, %367 : vector<2x128xf32>
      %369 = vector.extract_strided_slice %368 {offsets = [0, 0], sizes = [2, 32], strides = [1, 1]} : vector<2x128xf32> to vector<2x32xf32>
      %370 = arith.negf %369 : vector<2x32xf32>
      %371 = math.exp %370 : vector<2x32xf32>
      %cst_98 = arith.constant 1.000000e+00 : f32
      %372 = vector.broadcast %cst_98 : f32 to vector<2x32xf32>
      %373 = arith.addf %372, %371 : vector<2x32xf32>
      %374 = arith.divf %372, %373 : vector<2x32xf32>
      %375 = vector.extract_strided_slice %368 {offsets = [0, 32], sizes = [2, 32], strides = [1, 1]} : vector<2x128xf32> to vector<2x32xf32>
      %376 = arith.negf %375 : vector<2x32xf32>
      %377 = math.exp %376 : vector<2x32xf32>
      %cst_99 = arith.constant 1.000000e+00 : f32
      %378 = vector.broadcast %cst_99 : f32 to vector<2x32xf32>
      %379 = arith.addf %378, %377 : vector<2x32xf32>
      %380 = arith.divf %378, %379 : vector<2x32xf32>
      %381 = vector.extract_strided_slice %368 {offsets = [0, 64], sizes = [2, 32], strides = [1, 1]} : vector<2x128xf32> to vector<2x32xf32>
      %382 = math.tanh %381 : vector<2x32xf32>
      %383 = vector.extract_strided_slice %368 {offsets = [0, 96], sizes = [2, 32], strides = [1, 1]} : vector<2x128xf32> to vector<2x32xf32>
      %384 = arith.negf %383 : vector<2x32xf32>
      %385 = math.exp %384 : vector<2x32xf32>
      %cst_100 = arith.constant 1.000000e+00 : f32
      %386 = vector.broadcast %cst_100 : f32 to vector<2x32xf32>
      %387 = arith.addf %386, %385 : vector<2x32xf32>
      %388 = arith.divf %386, %387 : vector<2x32xf32>
      %389 = arith.mulf %380, %359 : vector<2x32xf32>
      %390 = arith.mulf %374, %382 : vector<2x32xf32>
      %391 = arith.addf %389, %390 : vector<2x32xf32>
      %392 = math.tanh %391 : vector<2x32xf32>
      %393 = arith.mulf %388, %392 : vector<2x32xf32>
      %394 = vector.broadcast %360 : i32 to vector<2x1xi32>
      %395 = arith.cmpi slt, %394, %7 : vector<2x1xi32>
      %396 = arith.extui %395 : vector<2x1xi1> to vector<2x1xi32>
      %397 = arith.sitofp %396 : vector<2x1xi32> to vector<2x1xf32>
      %398 = vector.broadcast %397 : vector<2x1xf32> to vector<2x32xf32>
      %399 = arith.mulf %398, %393 : vector<2x32xf32>
      %c0_101 = arith.constant 0 : index
      %c1_102 = arith.constant 1 : index
      %c0_103 = arith.constant 0 : index
      %c0_104 = arith.constant 0 : index
      %400 = vector.load %arg6[%c0_101, %c1_102, %c0_103, %c0_104] : memref<1x8x2x32xf32, #tpu.memory_space<vmem>>, vector<1x1x2x32xf32>
      %401 = vector.shape_cast %400 : vector<1x1x2x32xf32> to vector<2x32xf32>
      %402 = vector.shape_cast %399 : vector<2x32xf32> to vector<1x1x2x32xf32>
      tpu.vector_store %arg6[%c0_101, %c1_102, %c0_103, %c0_104], %402 {strides = array<i32>} : memref<1x8x2x32xf32, #tpu.memory_space<vmem>>, vector<1x1x2x32xf32>,
      %403 = vector.broadcast %397 : vector<2x1xf32> to vector<2x32xf32>
      %404 = arith.mulf %403, %393 : vector<2x32xf32>
      %cst_105 = arith.constant 1.000000e+00 : f32
      %405 = vector.broadcast %cst_105 : f32 to vector<2x1xf32>
      %406 = arith.subf %405, %397 : vector<2x1xf32>
      %407 = vector.broadcast %406 : vector<2x1xf32> to vector<2x32xf32>
      %408 = arith.mulf %407, %352 : vector<2x32xf32>
      %409 = arith.addf %404, %408 : vector<2x32xf32>
      %410 = vector.broadcast %397 : vector<2x1xf32> to vector<2x32xf32>
      %411 = arith.mulf %410, %391 : vector<2x32xf32>
      %cst_106 = arith.constant 1.000000e+00 : f32
      %412 = vector.broadcast %cst_106 : f32 to vector<2x1xf32>
      %413 = arith.subf %412, %397 : vector<2x1xf32>
      %414 = vector.broadcast %413 : vector<2x1xf32> to vector<2x32xf32>
      %415 = arith.mulf %414, %359 : vector<2x32xf32>
      %416 = arith.addf %411, %415 : vector<2x32xf32>
      %c0_i32_107 = arith.constant 0 : i32
      %417 = arith.addi %15, %c0_i32_107 : i32
      %c0_108 = arith.constant 0 : index
      %c0_109 = arith.constant 0 : index
      %c0_110 = arith.constant 0 : index
      %c0_111 = arith.constant 0 : index
      %418 = vector.load %arg3[%c0_108, %c0_109, %c0_110, %c0_111] : memref<1x8x2x128xbf16, #tpu.memory_space<vmem>>, vector<1x1x2x128xbf16>
      %419 = vector.shape_cast %418 : vector<1x1x2x128xbf16> to vector<2x128xbf16>
      %420 = arith.extf %419 : vector<2x128xbf16> to vector<2x128xf32>
      %421 = vector.broadcast %6 : vector<1x128xf32> to vector<2x128xf32>
      %422 = arith.addf %420, %421 : vector<2x128xf32>
      %423 = arith.truncf %409 : vector<2x32xf32> to vector<2x32xbf16>
      %cst_112 = arith.constant dense<0.000000e+00> : vector<2x128xf32>
      %424 = tpu.matmul %423, %4, %cst_112 {dimension_numbers = #tpu.dot_dimension_numbers<[1], [0], [0], [1], [0, 0, 1, 1], [], []>} : vector<2x32xbf16>, vector<32x128xbf16>, vector<2x128xf32> -> vector<2x128xf32>
      %425 = arith.addf %422, %424 : vector<2x128xf32>
      %426 = vector.extract_strided_slice %425 {offsets = [0, 0], sizes = [2, 32], strides = [1, 1]} : vector<2x128xf32> to vector<2x32xf32>
      %427 = arith.negf %426 : vector<2x32xf32>
      %428 = math.exp %427 : vector<2x32xf32>
      %cst_113 = arith.constant 1.000000e+00 : f32
      %429 = vector.broadcast %cst_113 : f32 to vector<2x32xf32>
      %430 = arith.addf %429, %428 : vector<2x32xf32>
      %431 = arith.divf %429, %430 : vector<2x32xf32>
      %432 = vector.extract_strided_slice %425 {offsets = [0, 32], sizes = [2, 32], strides = [1, 1]} : vector<2x128xf32> to vector<2x32xf32>
      %433 = arith.negf %432 : vector<2x32xf32>
      %434 = math.exp %433 : vector<2x32xf32>
      %cst_114 = arith.constant 1.000000e+00 : f32
      %435 = vector.broadcast %cst_114 : f32 to vector<2x32xf32>
      %436 = arith.addf %435, %434 : vector<2x32xf32>
      %437 = arith.divf %435, %436 : vector<2x32xf32>
      %438 = vector.extract_strided_slice %425 {offsets = [0, 64], sizes = [2, 32], strides = [1, 1]} : vector<2x128xf32> to vector<2x32xf32>
      %439 = math.tanh %438 : vector<2x32xf32>
      %440 = vector.extract_strided_slice %425 {offsets = [0, 96], sizes = [2, 32], strides = [1, 1]} : vector<2x128xf32> to vector<2x32xf32>
      %441 = arith.negf %440 : vector<2x32xf32>
      %442 = math.exp %441 : vector<2x32xf32>
      %cst_115 = arith.constant 1.000000e+00 : f32
      %443 = vector.broadcast %cst_115 : f32 to vector<2x32xf32>
      %444 = arith.addf %443, %442 : vector<2x32xf32>
      %445 = arith.divf %443, %444 : vector<2x32xf32>
      %446 = arith.mulf %437, %416 : vector<2x32xf32>
      %447 = arith.mulf %431, %439 : vector<2x32xf32>
      %448 = arith.addf %446, %447 : vector<2x32xf32>
      %449 = math.tanh %448 : vector<2x32xf32>
      %450 = arith.mulf %445, %449 : vector<2x32xf32>
      %451 = vector.broadcast %417 : i32 to vector<2x1xi32>
      %452 = arith.cmpi slt, %451, %7 : vector<2x1xi32>
      %453 = arith.extui %452 : vector<2x1xi1> to vector<2x1xi32>
      %454 = arith.sitofp %453 : vector<2x1xi32> to vector<2x1xf32>
      %455 = vector.broadcast %454 : vector<2x1xf32> to vector<2x32xf32>
      %456 = arith.mulf %455, %450 : vector<2x32xf32>
      %c0_116 = arith.constant 0 : index
      %c0_117 = arith.constant 0 : index
      %c0_118 = arith.constant 0 : index
      %c0_119 = arith.constant 0 : index
      %457 = vector.load %arg6[%c0_116, %c0_117, %c0_118, %c0_119] : memref<1x8x2x32xf32, #tpu.memory_space<vmem>>, vector<1x1x2x32xf32>
      %458 = vector.shape_cast %457 : vector<1x1x2x32xf32> to vector<2x32xf32>
      %459 = vector.shape_cast %456 : vector<2x32xf32> to vector<1x1x2x32xf32>
      tpu.vector_store %arg6[%c0_116, %c0_117, %c0_118, %c0_119], %459 {strides = array<i32>} : memref<1x8x2x32xf32, #tpu.memory_space<vmem>>, vector<1x1x2x32xf32>,
      %460 = vector.broadcast %454 : vector<2x1xf32> to vector<2x32xf32>
      %461 = arith.mulf %460, %450 : vector<2x32xf32>
      %cst_120 = arith.constant 1.000000e+00 : f32
      %462 = vector.broadcast %cst_120 : f32 to vector<2x1xf32>
      %463 = arith.subf %462, %454 : vector<2x1xf32>
      %464 = vector.broadcast %463 : vector<2x1xf32> to vector<2x32xf32>
      %465 = arith.mulf %464, %409 : vector<2x32xf32>
      %466 = arith.addf %461, %465 : vector<2x32xf32>
      %467 = vector.broadcast %454 : vector<2x1xf32> to vector<2x32xf32>
      %468 = arith.mulf %467, %448 : vector<2x32xf32>
      %cst_121 = arith.constant 1.000000e+00 : f32
      %469 = vector.broadcast %cst_121 : f32 to vector<2x1xf32>
      %470 = arith.subf %469, %454 : vector<2x1xf32>
      %471 = vector.broadcast %470 : vector<2x1xf32> to vector<2x32xf32>
      %472 = arith.mulf %471, %416 : vector<2x32xf32>
      %473 = arith.addf %468, %472 : vector<2x32xf32>
      %c0_122 = arith.constant 0 : index
      %c0_123 = arith.constant 0 : index
      %474 = vector.load %arg7[%c0_122, %c0_123] : memref<2x32xf32, #tpu.memory_space<vmem>>, vector<2x32xf32>
      tpu.vector_store %arg7[%c0_122, %c0_123], %466 {strides = array<i32>} : memref<2x32xf32, #tpu.memory_space<vmem>>, vector<2x32xf32>,
      %c0_124 = arith.constant 0 : index
      %c0_125 = arith.constant 0 : index
      %475 = vector.load %arg8[%c0_124, %c0_125] : memref<2x32xf32, #tpu.memory_space<vmem>>, vector<2x32xf32>
      tpu.vector_store %arg8[%c0_124, %c0_125], %473 {strides = array<i32>} : memref<2x32xf32, #tpu.memory_space<vmem>>, vector<2x32xf32>,
    } else {
    }
    return
  }
  func.func @transform_0(%arg0: i32, %arg1: i32) -> (i32, i32) {
    %c0_i32 = arith.constant 0 : i32
    %c0_i32_0 = arith.constant 0 : i32
    %c0_i32_1 = arith.constant 0 : i32
    return %c0_i32, %c0_i32_0 : i32, i32
  }
  func.func @transform_1(%arg0: i32, %arg1: i32) -> (i32, i32, i32, i32) {
    %c2_i32 = arith.constant 2 : i32
    %0 = arith.muli %c2_i32, %arg1 : i32
    %c0_i32 = arith.constant 0 : i32
    %1 = arith.subi %c0_i32, %0 : i32
    %2 = arith.muli %arg0, %1 : i32
    %3 = arith.addi %arg1, %2 : i32
    %c0_i32_0 = arith.constant 0 : i32
    %c0_i32_1 = arith.constant 0 : i32
    %c0_i32_2 = arith.constant 0 : i32
    return %arg0, %3, %c0_i32_0, %c0_i32_1 : i32, i32, i32, i32
  }
  func.func @transform_2(%arg0: i32, %arg1: i32) -> (i32, i32, i32) {
    %c0_i32 = arith.constant 0 : i32
    %c0_i32_0 = arith.constant 0 : i32
    %c0_i32_1 = arith.constant 0 : i32
    return %arg0, %c0_i32, %c0_i32_0 : i32, i32, i32
  }
  func.func @transform_3(%arg0: i32, %arg1: i32) -> (i32, i32, i32) {
    %c0_i32 = arith.constant 0 : i32
    %c0_i32_0 = arith.constant 0 : i32
    %c0_i32_1 = arith.constant 0 : i32
    return %arg0, %c0_i32, %c0_i32_0 : i32, i32, i32
  }
  func.func @transform_4(%arg0: i32, %arg1: i32) -> (i32, i32, i32, i32) {
    %c2_i32 = arith.constant 2 : i32
    %0 = arith.muli %c2_i32, %arg1 : i32
    %c0_i32 = arith.constant 0 : i32
    %1 = arith.subi %c0_i32, %0 : i32
    %2 = arith.muli %arg0, %1 : i32
    %3 = arith.addi %arg1, %2 : i32
    %c0_i32_0 = arith.constant 0 : i32
    %c0_i32_1 = arith.constant 0 : i32
    %c0_i32_2 = arith.constant 0 : i32
    return %arg0, %3, %c0_i32_0, %c0_i32_1 : i32, i32, i32, i32
  }
}

</mosaic_0001>

<bundles_post_ra>
// kernel: encoder_forward.3
= control target key start
LH: loop header
LB: loop body
LE: loop exit
PB: predicated region body
PF: predicated region fallthrough
CT: control target
= control target key end

     0   :  { %10 = vsyncpa [#allocation3], 0  ;;  %vm74_vm0 = vcmask 254976   ;;  %s688_s0 = inlined_call_operand.vmem [shape: s32[2,1], index: 0, kind: input, shape index: {}]   ;;  %s689_s1 = inlined_call_operand.vmem [shape: f32[2,8,2,32], index: 1, kind: input, shape index: {}]   ;;  %s690_s2 = inlined_call_operand.vmem [shape: f32[2,1,1,32], index: 2, kind: input, shape index: {}]   ;;  %s691_s3 = inlined_call_operand.hbm [shape: f32[2,64], index: 3, kind: output, shape index: {0}]   ;;  %s692_s4 = inlined_call_operand.hbm [shape: f32[2,8], index: 4, kind: output, shape index: {1}]  }
   0x1   :  { %v508_v0 = vld [vmem:[%s689_s1] sm:$0x3]  ;;  %v513_v1 = vld [vmem:[%s689_s1 + $0x10] sm:$0x3]  ;;  %v525_v5 = vld [vmem:[%s689_s1 + $0x4] sm:$0x3] }
   0x2   :  { %v397_v2 = vld [vmem:[%s690_s2] ss:$0 sm:$0xff]  ;;  %v398_v3 = vld [vmem:[%s690_s2 + $0x1] ss:$0 sm:$0xff]  ;;  %v531_v7 = vld [vmem:[%s689_s1 + $0x14] sm:$0x3] }
   0x3   :  { %v44_v4 = vmul.f32 %v397_v2, %v508_v0  ;;  %v58_v6 = vmul.f32 %v398_v3, %v513_v1  ;;  %v46_v8 = vmul.f32 %v397_v2, %v525_v5  ;;  %v537_v9 = vld [vmem:[%s689_s1 + $0x2] sm:$0x3]  ;;  %v542_v10 = vld [vmem:[%s689_s1 + $0x12] sm:$0x3]  ;;  %v60_v11 = vmul.f32 %v398_v3, %v531_v7  ;;  %v550_v14 = vld [vmem:[%s689_s1 + $0x6] sm:$0x3] }
   0x4   :  { %v45_v12 = vmul.f32 %v397_v2, %v537_v9  ;;  %v59_v13 = vmul.f32 %v398_v3, %v542_v10  ;;  %v555_v15 = vld [vmem:[%s689_s1 + $0x16] sm:$0x3]  ;;  %v560_v16 = vld [vmem:[%s689_s1 + $0x8] sm:$0x3]  ;;  %v47_v18 = vmul.f32 %v397_v2, %v550_v14  ;;  %v567_v20 = vld [vmem:[%s689_s1 + $0x18] sm:$0x3] }
   0x5   :  { %v66_v17 = vadd.f32 %v58_v6, %v44_v4  ;;  %v61_v19 = vmul.f32 %v398_v3, %v555_v15  ;;  %v48_v21 = vmul.f32 %v397_v2, %v560_v16  ;;  %v573_v22 = vld [vmem:[%s689_s1 + $0xa] sm:$0x3]  ;;  %v578_v23 = vld [vmem:[%s689_s1 + $0x1a] sm:$0x3]  ;;  %v68_v24 = vadd.f32 %v60_v11, %v46_v8  ;;  %v585_v28 = vld [vmem:[%s689_s1 + $0xc] sm:$0x3] }
   0x6   :  { %v67_v25 = vadd.f32 %v59_v13, %v45_v12  ;;  %v62_v26 = vmul.f32 %v398_v3, %v567_v20  ;;  %v49_v27 = vmul.f32 %v397_v2, %v573_v22  ;;  %v590_v29 = vld [vmem:[%s689_s1 + $0x1c] sm:$0x3]  ;;  %v595_v30 = vld [vmem:[%s689_s1 + $0xe] sm:$0x3]  ;;  %v63_v33 = vmul.f32 %v398_v3, %v578_v23  ;;  %v602_v34 = vld [vmem:[%s689_s1 + $0x1e] sm:$0x3] }
   0x7   :  { %v75_v31 = vsel %vm74_vm0, %v66_v17, 0.0  ;;  %v69_v32 = vadd.f32 %v61_v19, %v47_v18 }
   0x8   :  { %11 = vsyncpa [#allocation5], 0  ;;  %76 = vadd.xlane.f32.xlu0 %v75_v31  ;;  %v81_v35 = vsel %vm74_vm0, %v68_v24, 0.0  ;;  %v78_v36 = vsel %vm74_vm0, %v67_v25, 0.0  ;;  %v70_v37 = vadd.f32 %v62_v26, %v48_v21  ;;  %v50_v38 = vmul.f32 %v397_v2, %v585_v28 }
   0x9   :  { %82 = vadd.xlane.f32.xlu1 %v81_v35  ;;  %v64_v39 = vmul.f32 %v398_v3, %v590_v29  ;;  %v84_v40 = vsel %vm74_vm0, %v69_v32, 0.0  ;;  %v71_v41 = vadd.f32 %v63_v33, %v49_v27  ;;  %v51_v42 = vmul.f32 %v397_v2, %v595_v30 }
   0xa   :  { %v65_v43 = vmul.f32 %v398_v3, %v602_v34  ;;  %v87_v44 = vsel %vm74_vm0, %v70_v37, 0.0  ;;  %v115_v52 = vlaneseq  ;;  %vm149_vm1 = vcmask 1041409  }
   0xb   :  { %v72_v45 = vadd.f32 %v64_v39, %v50_v38  ;;  %v90_v46 = vsel %vm74_vm0, %v71_v41, 0.0  ;;  %vm151_vm2 = vcmask 1042434   ;;  %vm153_vm3 = vcmask 1043459  }
   0xc   :  { %79 = vadd.xlane.f32.xlu0 %v78_v36  ;;  %v73_v47 = vadd.f32 %v65_v43, %v51_v42  ;;  %v116_v55 = vand.u32 127, %v115_v52  ;;  %v615_v56 = vshrl.u32 %v115_v52, 7  ;;  %vm155_vm4 = vcmask 1044484  }
   0xd   :  { %85 = vadd.xlane.f32.xlu1 %v84_v40  ;;  %v93_v48 = vsel %vm74_vm0, %v72_v45, 0.0  ;;  %vm157_vm5 = vcmask 1045509   ;;  %vm159_vm6 = vcmask 1046534   ;;  %vm161_vm7 = vcmask 1047559   ;;  %v196_v40 = vld [vmem:[%s688_s0] sm:$0x3] }
   0xe   :  { %v96_v49 = vsel %vm74_vm0, %v73_v47, 0.0  ;;  %v119_v59 = vsub.s32 %v116_v55, %v615_v56  ;;  %v475_v37 = vmov 0   ;;  %vm203_vm8 = vcmask 58368   ;;  %s477_s0 = smov [#allocation4]  }
   0xf   :  { %405 = vset.pattern.permute.xlu1 %v475_v37  ;;  %v476_v45 = vmov 0.0   ;;  %s376_s25 = sshll.u32 %s477_s0, 4  ;;  %s377_s25 = int_to_ptr.vmem [resolvable:$true] %s376_s25 }
  0x10   :  { %88 = vadd.xlane.f32.xlu0 %v87_v44  ;;  %s427_s26 = scalar_lea.vmem %s377_s25, 32  ;;  %p432_p1 = scmp.lt.s32.totalorder %s377_s25, %s377_s25 }
  0x11   :  { %91 = vadd.xlane.f32.xlu1 %v90_v46  ;;  %p428_p0 = scmp.ne.s32.totalorder %s377_s25, %s427_s26  ;;  %p433_p2 = scmp.lt.s32.totalorder %s427_s26, %s427_s26 }
  0x13   :  { %p434_p3 = por %p433_p2, %p432_p1 }
  0x14   :  { %94 = vadd.xlane.f32.xlu0 %v93_v48 }
  0x15   :  { %97 = vadd.xlane.f32.xlu1 %v96_v49  ;;  %p435_p4 = pnand %p434_p3, %p428_p0 }
  0x95   :  { %v77_v50 = vpop.xlane.xlu0 %76 }
  0x96   :  { %v83_v51 = vpop.xlane.xlu1 %82  ;;  %407 = vtanh.f32 %v77_v50 }
  0x97   :  { %409 = vtanh.f32 %v83_v51 }
  0x99   :  { %v80_v53 = vpop.xlane.xlu0 %79 }
  0x9a   :  { %411 = vtanh.f32 %v80_v53  ;;  %v86_v54 = vpop.xlane.xlu1 %85 }
  0x9b   :  { %413 = vtanh.f32 %v86_v54  ;;  %v259_v54 = vsub.s32 1, %v615_v56 }
  0x9d   :  { %v89_v57 = vpop.xlane.xlu0 %88 }
  0x9e   :  { %415 = vtanh.f32 %v89_v57  ;;  %v92_v58 = vpop.xlane.xlu1 %91 }
  0x9f   :  { %417 = vtanh.f32 %v92_v58 }
  0xa0   :  { %v408_v61 = vpop.eup %407 }
  0xa1   :  { %v95_v60 = vpop.xlane.xlu0 %94  ;;  %v410_v63 = vpop.eup %409  ;;  %v120_v4 = vrot.slane %v408_v61, %v119_v59  ;;  %v294_v61 = vsub.s32 6, %v615_v56 }
  0xa2   :  { %419 = vtanh.f32 %v95_v60  ;;  %v98_v62 = vpop.xlane.xlu1 %97  ;;  %v128_v8 = vrot.slane %v410_v63, %v119_v59  ;;  %v266_v60 = vsub.s32 2, %v615_v56 }
  0xa3   :  { %421 = vtanh.f32 %v98_v62 }
  0xa4   :  { %v412_v2 = vpop.eup %411 }
  0xa5   :  { %v414_v3 = vpop.eup %413  ;;  %v124_v6 = vrot.slane %v412_v2, %v119_v59  ;;  %v273_v2 = vsub.s32 3, %v615_v56 }
  0xa6   :  { %v132_v11 = vrot.slane %v414_v3, %v119_v59 }
  0xa7   :  { %v150_v12 = vsel %vm149_vm1, %v124_v6, %v120_v4  ;;  %v280_v4 = vsub.s32 4, %v615_v56 }
  0xa8   :  { %v416_v13 = vpop.eup %415  ;;  %v152_v17 = vsel %vm151_vm2, %v128_v8, %v150_v12  ;;  %v287_v8 = vsub.s32 5, %v615_v56  ;;  %v301_v12 = vsub.s32 7, %v615_v56 }
  0xa9   :  { %v418_v18 = vpop.eup %417  ;;  %v136_v19 = vrot.slane %v416_v13, %v119_v59  ;;  %v154_v21 = vsel %vm153_vm3, %v132_v11, %v152_v17 }
  0xaa   :  { %v140_v24 = vrot.slane %v418_v18, %v119_v59 }
  0xab   :  { %v156_v25 = vsel %vm155_vm4, %v136_v19, %v154_v21 }
  0xac   :  { %v420_v26 = vpop.eup %419  ;;  %v158_v33 = vsel %vm157_vm5, %v140_v24, %v156_v25 }
  0xad   :  { %v422_v27 = vpop.eup %421  ;;  %v144_v31 = vrot.slane %v420_v26, %v119_v59 }
  0xae   :  { %v148_v32 = vrot.slane %v422_v27, %v119_v59 }
  0xaf   :  { %v160_v35 = vsel %vm159_vm6, %v144_v31, %v158_v33 }
  0xb0   :  { %v162_v36 = vsel %vm161_vm7, %v148_v32, %v160_v35 }
  0xb1   :  { %164 = vxpose.xlu0.b32.start.end [1/1] (short) (narrow) %v162_v36, 8 }
 0x131   :  { %v180_v38 = vpop.trf.xlu0 }
 0x132   :  { %v204_v39 = vsel %vm203_vm8, %v180_v38, -inf }
 0x133   :  { %205 = vmax.xlane.f32.xlu1 %v204_v39 }
 0x144   :  { %198 = vperm.xlu1 %405, %v196_v40  }
 0x1c0   :  { %v206_v41 = vpop.xlane.xlu1 %205 }
 0x1c1   :  { %v207_v42 = vsub.f32 %v180_v38, %v206_v41 }
 0x1c3   :  { %v208_v43 = vmul.f32 1.442695, %v207_v42 }
 0x1c4   :  { %v199_v44 = vpop.permute.xlu1 %198 }
 0x1c5   :  { %423 = vpow2.f32 %v208_v43  ;;  %vm200_vm9 = vcmp.lt.s32.totalorder %v116_v55, %v199_v44  ;;  %v252_v55 = vsub.s32 0, %v615_v56 }
 0x1c6   :  { %v399_v46 = vsel %vm200_vm9, 1.0, %v476_v45 }
 0x1cf   :  { %v424_v47 = vpop.eup %423 }
 0x1d0   :  { %v210_v48 = vmul.f32 %v424_v47, %v399_v46 }
 0x1d2   :  { %v211_v49 = vsel %vm203_vm8, %v210_v48, 0.0 }
 0x1d3   :  { %212 = vadd.xlane.f32.xlu1 %v211_v49 }
 0x260   :  { %v213_v50 = vpop.xlane.xlu1 %212 }
 0x261   :  { %v214_v51 = vmax.f32 %v213_v50, 1e-09 }
 0x263   :  { %425 = vrcp.f32 %v214_v51 }
 0x26d   :  { %v426_v52 = vpop.eup %425 }
 0x26e   :  { %v216_v53 = vmul.f32 %v426_v52, %v210_v48 }
 0x270   :  { %218 = vxpose.xlu0.b32.start.end [1/1] (short) (narrow) %v216_v53, 8  ;;  %217 = vst.msk [vmem:[#allocation4] sm:$0x3] %vm203_vm8, %v216_v53 }
 0x299   :  { %406 = vset.pattern.permute.xlu0 %v475_v37 }
 0x2f0   :  { %v234_v57 = vpop.trf.xlu0 }
 0x2f1   :  { %v260_v58 = vrot.slane %v234_v57, %v259_v54  ;;  %v253_v59 = vrot.slane %v234_v57, %v252_v55  ;;  %v267_v62 = vrot.slane %v234_v57, %v266_v60  ;;  %v295_v63 = vrot.slane %v234_v57, %v294_v61 }
 0x2f2   :  { %v274_v3 = vrot.slane %v234_v57, %v273_v2  ;;  %v281_v6 = vrot.slane %v234_v57, %v280_v4  ;;  %v288_v11 = vrot.slane %v234_v57, %v287_v8  ;;  %v302_v13 = vrot.slane %v234_v57, %v301_v12 }
 0x2f3   :  { %262 = vbcast.lane.b32.xlu1 %v260_v58, 256  ;;  %255 = vbcast.lane.b32.xlu0 %v253_v59, 256 }
 0x2f7   :  { %269 = vbcast.lane.b32.xlu1 %v267_v62, 256  ;;  %297 = vbcast.lane.b32.xlu0 %v295_v63, 256 }
 0x2fb   :  { %276 = vbcast.lane.b32.xlu1 %v274_v3, 256 }
 0x2ff   :  { %283 = vbcast.lane.b32.xlu1 %v281_v6, 256 }
 0x303   :  { %290 = vbcast.lane.b32.xlu1 %v288_v11, 256 }
 0x307   :  { %304 = vbcast.lane.b32.xlu1 %v302_v13, 256 }
 0x365   :  { %v263_v17 = vpop.permute.xlu1 %262  ;;  %v256_v18 = vpop.permute.xlu0 %255 }
 0x366   :  { %v307_v19 = vmul.f32 %v263_v17, %v537_v9  ;;  %v306_v21 = vmul.f32 %v256_v18, %v508_v0  ;;  %v330_v31 = vmul.f32 %v542_v10, %v263_v17  ;;  %v329_v32 = vmul.f32 %v513_v1, %v256_v18 }
 0x368   :  { %v315_v24 = vsel %vm74_vm0, %v307_v19, 0.0  ;;  %v314_v25 = vsel %vm74_vm0, %v306_v21, 0.0  ;;  %v338_v0 = vsel %vm74_vm0, %v330_v31, 0.0  ;;  %v337_v37 = vsel %vm74_vm0, %v329_v32, 0.0 }
 0x369   :  { %v316_v26 = vadd.f32 %v315_v24, %v314_v25  ;;  %v270_v27 = vpop.permute.xlu1 %269  ;;  %v339_v40 = vadd.f32 %v338_v0, %v337_v37  ;;  %v298_v45 = vpop.permute.xlu0 %297 }
 0x36a   :  { %v308_v56 = vmul.f32 %v270_v27, %v525_v5  ;;  %v331_v35 = vmul.f32 %v531_v7, %v270_v27 }
 0x36c   :  { %v317_v33 = vsel %vm74_vm0, %v308_v56, 0.0  ;;  %v340_v10 = vsel %vm74_vm0, %v331_v35, 0.0 }
 0x36d   :  { %v318_v36 = vadd.f32 %v317_v33, %v316_v26  ;;  %v277_v9 = vpop.permute.xlu1 %276  ;;  %v341_v44 = vadd.f32 %v340_v10, %v339_v40 }
 0x36e   :  { %v309_v38 = vmul.f32 %v277_v9, %v550_v14  ;;  %v332_v39 = vmul.f32 %v555_v15, %v277_v9 }
 0x370   :  { %v319_v1 = vsel %vm74_vm0, %v309_v38, 0.0  ;;  %v342_v42 = vsel %vm74_vm0, %v332_v39, 0.0 }
 0x371   :  { %v320_v5 = vadd.f32 %v319_v1, %v318_v36  ;;  %v284_v41 = vpop.permute.xlu1 %283  ;;  %v343_v46 = vadd.f32 %v342_v42, %v341_v44 }
 0x372   :  { %v310_v7 = vmul.f32 %v284_v41, %v560_v16  ;;  %v333_v43 = vmul.f32 %v567_v20, %v284_v41 }
 0x374   :  { %v321_v14 = vsel %vm74_vm0, %v310_v7, 0.0  ;;  %v344_v15 = vsel %vm74_vm0, %v333_v43, 0.0 }
 0x375   :  { %v322_v47 = vadd.f32 %v321_v14, %v320_v5  ;;  %v291_v48 = vpop.permute.xlu1 %290 }
 0x376   :  { %438 = shalt.err (!%p435_p4)
}
 0x377   :  { %s439_s2 = scalar_lea.hbm %s692_s4, 32 }
 0x378   :  { %p440_p5 = scmp.ne.s32.totalorder %s692_s4, %s439_s2  ;;  %p443_p6 = scmp.lt.u32.totalorder %s439_s2, %s692_s4 }
 0x37a   :  { %p445_p7 = pnand %p443_p6, %p440_p5 }
 0x37c   :  { %448 = shalt.err (!%p445_p7)
}
 0x37d   :  { %379 = dma.vmem_to_hbm [thread:$0]  %s377_s25, 32, %s692_s4, [#allocation5]   ;;  %v312_v16 = vmul.f32 %v298_v45, %v585_v28  ;;  %v335_v20 = vmul.f32 %v590_v29, %v298_v45  ;;  %v311_v49 = vmul.f32 %v291_v48, %v573_v22  ;;  %v334_v50 = vmul.f32 %v578_v23, %v291_v48  ;;  %v305_v57 = vpop.permute.xlu1 %304 }
 0x37e   :  { %v345_v51 = vadd.f32 %v344_v15, %v343_v46  ;;  %v313_v28 = vmul.f32 %v305_v57, %v595_v30  ;;  %v336_v29 = vmul.f32 %v602_v34, %v305_v57  ;;  %s478_s4 = smov 32   ;;  %s479_s9 = smov [#allocation2]   ;;  %vm356_vm10 = vcmask 261120  }
 0x37f   :  { %v323_v52 = vsel %vm74_vm0, %v311_v49, 0.0  ;;  %v346_v53 = vsel %vm74_vm0, %v334_v50, 0.0  ;;  %v325_v58 = vsel %vm74_vm0, %v312_v16, 0.0  ;;  %v348_v59 = vsel %vm74_vm0, %v335_v20, 0.0  ;;  %s366_s10 = sshll.u32 %s479_s9, 4  ;;  %s367_s10 = int_to_ptr.vmem [resolvable:$true] %s366_s10 }
 0x380   :  { %v324_v54 = vadd.f32 %v323_v52, %v322_v47  ;;  %v347_v55 = vadd.f32 %v346_v53, %v345_v51  ;;  %v327_v23 = vsel %vm74_vm0, %v313_v28, 0.0  ;;  %v350_v61 = vsel %vm74_vm0, %v336_v29, 0.0  ;;  %s449_s11 = scalar_lea.vmem %s367_s10, 32  ;;  %p454_p9 = scmp.lt.s32.totalorder %s367_s10, %s367_s10 }
 0x381   :  { %vm358_vm11 = vcmask 517120   ;;  %p450_p8 = scmp.ne.s32.totalorder %s367_s10, %s449_s11  ;;  %p455_p10 = scmp.lt.s32.totalorder %s449_s11, %s449_s11 }
 0x382   :  { %v326_v60 = vadd.f32 %v325_v58, %v324_v54  ;;  %v349_v22 = vadd.f32 %v348_v59, %v347_v55 }
 0x383   :  { %p456_p11 = por %p455_p10, %p454_p9 }
 0x384   :  { %v328_v62 = vadd.f32 %v327_v23, %v326_v60  ;;  %v351_v63 = vadd.f32 %v350_v61, %v349_v22 }
 0x385   :  { %p457_p12 = pnand %p456_p11, %p450_p8 }
 0x386   :  { %353 = vrot.lane.b32.xlu0 %v351_v63, %s478_s4 }
 0x3f8   :  { %v354_v2 = vpop.permute.xlu0 %353 }
 0x3f9   :  { %v357_v3 = vsel %vm356_vm10, %v328_v62, %v354_v2 }
 0x3fa   :  { %359 = vst.msk [vmem:[#allocation2] sm:$0x3] %vm358_vm11, %v357_v3 }
 0x3fb   :  { %460 = shalt.err (!%p457_p12)
}
 0x3fc   :  { %s461_s14 = scalar_lea.hbm %s691_s3, 32 }
 0x3fd   :  { %p462_p13 = scmp.ne.s32.totalorder %s691_s3, %s461_s14  ;;  %p465_p0 = scmp.lt.u32.totalorder %s461_s14, %s691_s3 }
 0x3ff   :  { %p467_p1 = pnand %p465_p0, %p462_p13 }
 0x401   :  { %470 = shalt.err (!%p467_p1)
}
 0x402   :  { %369 = dma.vmem_to_hbm [thread:$0]  %s367_s10, 32, %s691_s3, [#allocation3]  }
 0x403   :  { %471 = dma.done.wait [#allocation3], 32  }
 0x404   :  { %472 = vsyncadd [#allocation3], 4294967264 }
 0x405   :  { %473 = dma.done.wait [#allocation5], 32  }
 0x406   :  { %474 = vsyncadd [#allocation5], 4294967264 }
 0x407   :  { %386 = vsyncpa [#allocation3], 1 }
 0x408   :  { %387 = vsyncpa [#allocation5], 1 }

// kernel: encoder_forward.2
= control target key start
LH: loop header
LB: loop body
LE: loop exit
PB: predicated region body
PF: predicated region fallthrough
CT: control target
= control target key end

     0   :  { %s3103_s15 = smov 0   ;;  %s3105_s16 = smov 0   ;;  %s3561_s0 = inlined_call_operand.vmem [shape: s32[2,1], index: 0, kind: input, shape index: {}]   ;;  %s3562_s1 = inlined_call_operand.vmem [shape: bf16[2,8,2,128], index: 1, kind: input, shape index: {}]   ;;  %s3563_s2 = inlined_call_operand.vmem [shape: bf16[2,32,128], index: 2, kind: input, shape index: {}]   ;;  %s3564_s3 = inlined_call_operand.vmem [shape: f32[2,1,128], index: 3, kind: input, shape index: {}]   ;;  %s3565_s4 = inlined_call_operand.vmem [shape: f32[2,8,2,32], index: 4, kind: output, shape index: {}]  }
   0x1   :  { %s3107_s17 = smov 0  }
   0x2 LB: > { %s26_s18 = sadd.s32 1, %s3057_s16  ;;  %p2584_p0 = scmp.ge.s32.totalorder %s3061_s17, 1  ;;  %s3061_s17 = sphi %s3107_s17, %s14_s17   ;;  %s3057_s16 = sphi %s3105_s16, %s3567_s16   ;;  %s3053_s15 = sphi %s3103_s15, %s3566_s15  }
   0x3   : > { %p28_p1 = scmp.ge.s32.totalorder %s26_s18, 2  ;;  %p224_p2 = scmp.lt.s32.totalorder %s3061_s17, 3 }
   0x5   : > { %s3569_s18 = smov (%p28_p1, %s26_s18), 0  ;;  %p225_p3 = pnand %p2584_p0, %p224_p2 }
   0x6   : > { %p278_p4 = scmp.lt.s32.totalorder (!%p225_p3), %s3053_s15, 1  ;;  %vm321_vm0 = vcmask (!%p225_p3), 254976   ;;  %v3127_v0 = vld [vmem:[%s3561_s0] sm:$0x3] (!%p225_p3)  ;;  %v3063_v1 = vmov (!%p225_p3), 0.0   ;;  %p2590_p5 = scmp.ne.s32.totalorder (!%p225_p3), %s3053_s15, 0 }
   0x7   : > { %228 = sbr.rel (%p225_p3) target bundleno = 11396 (0x2c84), region = 36  ;;  %322 = vst.msk [vmem:[#allocation2] sm:$0x3] (!%p225_p3), %vm321_vm0, %v3063_v1  ;;  %323 = vst.msk [vmem:[#allocation3] sm:$0x3] (!%p225_p3), %vm321_vm0, %v3063_v1 }
   0xe   : > { %s279_s21 = scalar_select %p278_p4, %s3053_s15, 1 }
   0xf   : > { %333 = sbr.rel (%p2590_p5) target bundleno = 5707 (0x164b), region = 44  ;;  %v3064_v8 = vmov (!%p2590_p5), 0.0   ;;  %vm3065_vm1 = vmmov (!%p2590_p5), 0   ;;  %v3171_v10 = vld [vmem:[#allocation2] sm:$0x3] (!%p2590_p5)  ;;  %vm359_vm2 = vcmask (!%p2590_p5), 261120   ;;  %v340_v12 = vlaneseq (!%p2590_p5) }
  0x10   : > { %s2585_s22 = sshll.u32 %s279_s21, 3  ;;  %s2690_s23 = sshll.u32 %s279_s21, 4  ;;  %2740 = vmatprep.subr.bf16.mxu0 (!%p2590_p5), %v3064_v8  ;;  %2744 = vmatprep.mubr.msk.bf16.mxu0 (!%p2590_p5), %vm3065_vm1, %v3064_v8  ;;  %v346_v11 = vpack.c.bf16 (!%p2590_p5), %v3171_v10, %v3171_v10  ;;  %v3066_v22 = vmov (!%p2590_p5), 1983009808   ;;  %v3067_v27 = vmov (!%p2590_p5), 0   ;;  %vm2595_vm3 = vcmp.gt.s32.totalorder (!%p2590_p5), %v3127_v0, 0 }
  0x11   : > { %s3135_s26 = scalar_lea.vmem %s3562_s1, %s2585_s22  ;;  %s294_s29 = scalar_lea.vmem %s3563_s2, %s2690_s23  ;;  %2748 = vmatprep.subr.bf16.mxu1 (!%p2590_p5), %v3064_v8  ;;  %2752 = vmatprep.mubr.msk.bf16.mxu1 (!%p2590_p5), %vm3065_vm1, %v3064_v8  ;;  %v341_v13 = vshrl.u32 (!%p2590_p5), %v340_v12, 7  ;;  %v413_v23 = vunpack.c.l.s4 (!%p2590_p5), %v3066_v22  ;;  %v336_v29 = vld [vmem:[#allocation3] sm:$0x3] (!%p2590_p5)  ;;  %v2596_v32 = vsel (!%p2590_p5), %vm2595_vm3, 1.0, %v3064_v8  ;;  %vm2600_vm4 = vcmp.gt.s32.totalorder (!%p2590_p5), %v3127_v0, 1 }
  0x12   : > { %s297_s6 = scalar_lea.vmem %s3564_s3, %s279_s21  ;;  %s3146_s9 = scalar_lea.vmem %s3565_s4, %s2690_s23  ;;  %v3148_v2 = vld [vmem:[%s294_s29] sm:$0xf]  ;;  %v3150_v3 = vld [vmem:[%s294_s29 + $0x4] sm:$0xf]  ;;  %v3152_v4 = vld [vmem:[%s294_s29 + $0x8] sm:$0xf]  ;;  %2907 = vset.pattern.permute.xlu0 (!%p2590_p5), %v3067_v27  ;;  %2908 = vset.pattern.permute.xlu1 (!%p2590_p5), %v3067_v27 }
  0x13   : > { %v3154_v5 = vld [vmem:[%s294_s29 + $0xc] sm:$0xf]  ;;  %v3156_v6 = vld [vmem:[%s297_s6] sm:$0x1]  ;;  %v3161_v7 = vcombine.low (!%p2590_p5), %v3148_v2, %v3150_v3  ;;  %v342_v14 = vsub.s32 (!%p2590_p5), 0, %v341_v13  ;;  %v414_v26 = vunpack.c.0.s8 (!%p2590_p5), %v413_v23  ;;  %s3068_s10 = smov (!%p2590_p5), 64  }
  0x14   : > { %v3169_v9 = vcombine.low (!%p2590_p5), %v3152_v4, %v3154_v5  ;;  %v337_v15 = vld [vmem:[%s3135_s26] sm:$0x1] (!%p2590_p5)  ;;  %s3069_s11 = smov (!%p2590_p5), 32   ;;  %s3070_s12 = smov (!%p2590_p5), 96   ;;  %v462_v45 = vsub.f32 (!%p2590_p5), 1.0, %v2596_v32  ;;  %v2601_v22 = vsel (!%p2590_p5), %vm2600_vm4, 1.0, %v3064_v8 }
  0x15   : > { %2741 = vmatpush3.bf16.msra.mxu0 (!%p2590_p5), %v3161_v7  ;;  %2749 = vmatpush3.bf16.msra.mxu1 (!%p2590_p5), %v3161_v7  ;;  %v338_v16 = vunpack.c.l.bf16 (!%p2590_p5), %v337_v15  ;;  %v3194_v17 = vrot.slane (!%p2590_p5), %v3156_v6, %v342_v14  ;;  %v3197_v28 = vsub.s32 (!%p2590_p5), %v414_v26, %v341_v13  ;;  %v2597_v61 = vld [vmem:[%s3135_s26 + $0x1] sm:$0x1] (!%p2590_p5)  ;;  %vm2606_vm5 = vcmp.gt.s32.totalorder (!%p2590_p5), %v3127_v0, 2 }
  0x16   : > { %2742 = vmatprep.subr.bf16.mxu0 %v3064_v8  ;;  %2750 = vmatprep.subr.bf16.mxu1 %v3064_v8  ;;  %v487_v62 = vunpack.c.l.bf16 %v2597_v61  ;;  %v2607_v61 = vsel %vm2606_vm5, 1.0, %v3064_v8  ;;  %vm2612_vm6 = vcmp.gt.s32.totalorder %v3127_v0, 3  ;;  %vm2618_vm7 = vcmp.gt.s32.totalorder %v3127_v0, 4 }
  0x17   : > { %v345_v18 = vadd.f32 %v3194_v17, %v338_v16  ;;  %v418_v31 = vrot.slane %v336_v29, %v3197_v28  ;;  %vm2624_vm8 = vcmp.gt.s32.totalorder %v3127_v0, 5  ;;  %vm2630_vm9 = vcmp.gt.s32.totalorder %v3127_v0, 6 }
  0x18   : > { %v488_v63 = vadd.f32 %v487_v62, %v3194_v17  ;;  %vm2636_vm10 = vcmp.gt.s32.totalorder %v3127_v0, 7 }
  0x19   : > { %2743 = vmatpush3.bf16.msra.mxu0 %v3169_v9  ;;  %2751 = vmatpush3.bf16.msra.mxu1 %v3169_v9 }
  0x1a   : > { %2756 = vmatprep.subr.bf16.mxu0 %v3064_v8  ;;  %2764 = vmatprep.subr.bf16.mxu1 %v3064_v8 }
  0x1c   : > { %2745 = vmatmul.mubr.msk.bf16.vlgmr.msra.gmra.mrb[0].mxu0 %vm359_vm2, %v346_v11 }
  0x1d   : > { %2757 = vmatpush3.bf16.msra.mxu0 %v3161_v7  ;;  %2760 = vmatprep.mubr.msk.bf16.mxu0 %vm3065_vm1, %v3064_v8 }
  0x1e   : > { %2758 = vmatprep.subr.bf16.mxu0 %v3064_v8 }
  0x21   : > { %2759 = vmatpush3.bf16.msra.mxu0 %v3169_v9 }
  0x22   : > { %2772 = vmatprep.subr.bf16.mxu0 %v3064_v8 }
  0xef   : > { %v397_v19 = vpop.f32.mrb[0].mxu0 }
  0xf0   : > { %v403_v20 = vadd.f32 %v397_v19, %v345_v18  ;;  %v2746_v21 = vpop.f32.mrb[1].mxu0 }
  0xf1   : > { %v400_v24 = vpop.f32.mrb[2].mxu0 }
  0xf2   : > { %2909 = vtanh.f32 %v403_v20  ;;  %v2747_v25 = vpop.f32.mrb[3].mxu0  ;;  %v2594_v33 = vmul.f32 -1.442695, %v403_v20 }
  0xf4   : > { %2911 = vpow2.f32 %v2594_v33 }
  0xfc   : > { %v2910_v30 = vpop.eup %2909 }
  0xfd   : > { %424 = vrot.lane.b32.xlu0 %v2910_v30, %s3068_s10 }
  0xfe   : > { %v2912_v34 = vpop.eup %2911 }
  0xff   : > { %v407_v35 = vadd.f32 1.0, %v2912_v34 }
 0x101   : > { %419 = vrot.lane.b32.xlu0 %v418_v31, %s3069_s11  ;;  %2913 = vrcp.f32 %v407_v35 }
 0x105   : > { %445 = vperm.xlu0 %2907, %v2596_v32  }
 0x10b   : > { %v2914_v36 = vpop.eup %2913 }
 0x16f   : > { %v425_v37 = vpop.permute.xlu0 %424 }
 0x170   : > { %v427_v38 = vmul.f32 %v2914_v36, %v425_v37 }
 0x172   : > { %429 = vrot.lane.b32.xlu1 %v427_v38, %s3069_s11 }
 0x173   : > { %v420_v39 = vpop.permute.xlu0 %419 }
 0x174   : > { %v422_v40 = vmul.f32 %v2914_v36, %v420_v39 }
 0x184   : > { %v446_v49 = vpop.permute.xlu0 %445 }
 0x1e4   : > { %v430_v41 = vpop.permute.xlu1 %429 }
 0x1e5   : > { %v432_v42 = vadd.f32 %v430_v41, %v422_v40 }
 0x1e7   : > { %2915 = vtanh.f32 %v432_v42  ;;  %v477_v43 = vrot.slane %v432_v42, %v3197_v28 }
 0x1e9   : > { %478 = vrot.lane.b32.xlu0 %v477_v43, %s3070_s12 }
 0x1f1   : > { %v2916_v44 = vpop.eup %2915 }
 0x1f2   : > { %435 = vrot.lane.b32.xlu1 %v2916_v44, %s3068_s10 }
 0x1f6   : > { %465 = vperm.xlu1 %2908, %v462_v45  }
 0x25b   : > { %v479_v50 = vpop.permute.xlu0 %478 }
 0x25c   : > { %v481_v52 = vmul.f32 %v479_v50, %v446_v49 }
 0x264   : > { %v436_v46 = vpop.permute.xlu1 %435 }
 0x265   : > { %v438_v47 = vmul.f32 %v2914_v36, %v436_v46  ;;  %v2603_v46 = vld [vmem:[%s3135_s26 + $0x2] sm:$0x1] }
 0x267   : > { %v455_v48 = vrot.slane %v438_v47, %v3197_v28  ;;  %v617_v47 = vunpack.c.l.bf16 %v2603_v46  ;;  %v2613_v46 = vsel %vm2612_vm6, 1.0, %v3064_v8 }
 0x269   : > { %456 = vrot.lane.b32.xlu1 %v455_v48, %s3069_s11  ;;  %v618_v48 = vadd.f32 %v617_v47, %v3194_v17 }
 0x275   : > { %v466_v51 = vpop.permute.xlu1 %465 }
 0x276   : > { %v482_v53 = vmul.f32 %v466_v51, %v336_v29  ;;  %v468_v57 = vmul.f32 %v466_v51, %v3171_v10  ;;  %v592_v29 = vsub.f32 1.0, %v2601_v22 }
 0x278   : > { %v483_v54 = vadd.f32 %v482_v53, %v481_v52 }
 0x27a   : > { %v548_v55 = vrot.slane %v483_v54, %v3197_v28 }
 0x27c   : > { %549 = vrot.lane.b32.xlu0 %v548_v55, %s3069_s11 }
 0x2db   : > { %v457_v56 = vpop.permute.xlu1 %456 }
 0x2dc   : > { %v459_v58 = vmul.f32 %v457_v56, %v446_v49 }
 0x2de   : > { %461 = vst.msk [vmem:[%s3146_s9] sm:$0x3] %vm321_vm0, %v459_v58  ;;  %v469_v59 = vadd.f32 %v468_v57, %v459_v58 }
 0x2e0   : > { %v489_v60 = vpack.c.bf16 %v469_v59, %v469_v59 }
 0x2e2   : > { %2753 = vmatmul.mubr.msk.bf16.vlgmr.msra.gmra.mrb[0].mxu1 %vm359_vm2, %v489_v60 }
 0x2e3   : > { %2765 = vmatpush3.bf16.msra.mxu1 %v3161_v7  ;;  %2768 = vmatprep.mubr.msk.bf16.mxu1 %vm3065_vm1, %v3064_v8 }
 0x2e4   : > { %2766 = vmatprep.subr.bf16.mxu1 %v3064_v8 }
 0x2e7   : > { %2767 = vmatpush3.bf16.msra.mxu1 %v3169_v9 }
 0x2e8   : > { %2780 = vmatprep.subr.bf16.mxu1 %v3064_v8 }
 0x2ee   : > { %v550_v23 = vpop.permute.xlu0 %549 }
 0x3b5   : > { %v527_v1 = vpop.f32.mrb[0].mxu1 }
 0x3b6   : > { %v533_v10 = vadd.f32 %v527_v1, %v488_v63  ;;  %v2754_v11 = vpop.f32.mrb[1].mxu1 }
 0x3b7   : > { %v530_v12 = vpop.f32.mrb[2].mxu1 }
 0x3b8   : > { %2917 = vtanh.f32 %v533_v10  ;;  %v2755_v13 = vpop.f32.mrb[3].mxu1  ;;  %v2599_v15 = vmul.f32 -1.442695, %v533_v10  ;;  %v722_v12 = vsub.f32 1.0, %v2607_v61 }
 0x3ba   : > { %2919 = vpow2.f32 %v2599_v15 }
 0x3c2   : > { %v2918_v14 = vpop.eup %2917 }
 0x3c3   : > { %554 = vrot.lane.b32.xlu1 %v2918_v14, %s3068_s10 }
 0x3c4   : > { %v2920_v16 = vpop.eup %2919 }
 0x3c5   : > { %v537_v18 = vadd.f32 1.0, %v2920_v16 }
 0x3c7   : > { %2921 = vrcp.f32 %v537_v18 }
 0x3d1   : > { %v2922_v19 = vpop.eup %2921 }
 0x3d2   : > { %v552_v24 = vmul.f32 %v2922_v19, %v550_v23 }
 0x435   : > { %v555_v20 = vpop.permute.xlu1 %554 }
 0x436   : > { %v557_v21 = vmul.f32 %v2922_v19, %v555_v20 }
 0x438   : > { %559 = vrot.lane.b32.xlu1 %v557_v21, %s3069_s11 }
 0x43c   : > { %575 = vperm.xlu1 %2908, %v2601_v22  }
 0x4aa   : > { %v560_v25 = vpop.permute.xlu1 %559 }
 0x4ab   : > { %v562_v26 = vadd.f32 %v560_v25, %v552_v24 }
 0x4ad   : > { %2923 = vtanh.f32 %v562_v26  ;;  %v607_v30 = vrot.slane %v562_v26, %v3197_v28 }
 0x4b7   : > { %v2924_v27 = vpop.eup %2923 }
 0x4b8   : > { %565 = vrot.lane.b32.xlu0 %v2924_v27, %s3068_s10 }
 0x4bb   : > { %v576_v35 = vpop.permute.xlu1 %575 }
 0x4bc   : > { %595 = vperm.xlu0 %2907, %v592_v29  }
 0x4c0   : > { %608 = vrot.lane.b32.xlu0 %v607_v30, %s3070_s12 }
 0x52a   : > { %v566_v31 = vpop.permute.xlu0 %565 }
 0x52b   : > { %v568_v32 = vmul.f32 %v2922_v19, %v566_v31  ;;  %v2609_v31 = vld [vmem:[%s3135_s26 + $0x3] sm:$0x1] }
 0x52d   : > { %v585_v33 = vrot.slane %v568_v32, %v3197_v28  ;;  %v747_v32 = vunpack.c.l.bf16 %v2609_v31  ;;  %v2619_v31 = vsel %vm2618_vm7, 1.0, %v3064_v8 }
 0x52f   : > { %586 = vrot.lane.b32.xlu1 %v585_v33, %s3069_s11  ;;  %v748_v33 = vadd.f32 %v747_v32, %v3194_v17 }
 0x53b   : > { %v596_v34 = vpop.permute.xlu0 %595 }
 0x53c   : > { %v612_v37 = vmul.f32 %v596_v34, %v483_v54  ;;  %v598_v42 = vmul.f32 %v596_v34, %v469_v59 }
 0x53f   : > { %v609_v36 = vpop.permute.xlu0 %608 }
 0x540   : > { %v611_v38 = vmul.f32 %v609_v36, %v576_v35 }
 0x542   : > { %v613_v39 = vadd.f32 %v612_v37, %v611_v38 }
 0x544   : > { %v678_v40 = vrot.slane %v613_v39, %v3197_v28 }
 0x546   : > { %679 = vrot.lane.b32.xlu0 %v678_v40, %s3069_s11 }
 0x5a1   : > { %v587_v41 = vpop.permute.xlu1 %586 }
 0x5a2   : > { %v589_v43 = vmul.f32 %v587_v41, %v576_v35 }
 0x5a4   : > { %2602 = vst.msk [vmem:[%s3146_s9 + $0x2] sm:$0x3] %vm321_vm0, %v589_v43  ;;  %v599_v44 = vadd.f32 %v598_v42, %v589_v43 }
 0x5a6   : > { %v619_v45 = vpack.c.bf16 %v599_v44, %v599_v44 }
 0x5a8   : > { %2761 = vmatmul.mubr.msk.bf16.vlgmr.msra.gmra.mrb[4].mxu0 %vm359_vm2, %v619_v45 }
 0x5a9   : > { %2773 = vmatpush3.bf16.msra.mxu0 %v3161_v7  ;;  %2776 = vmatprep.mubr.msk.bf16.mxu0 %vm3065_vm1, %v3064_v8 }
 0x5aa   : > { %2774 = vmatprep.subr.bf16.mxu0 %v3064_v8 }
 0x5ad   : > { %2775 = vmatpush3.bf16.msra.mxu0 %v3169_v9 }
 0x5ae   : > { %2788 = vmatprep.subr.bf16.mxu0 %v3064_v8 }
 0x5b8   : > { %v680_v62 = vpop.permute.xlu0 %679 }
 0x67b   : > { %v657_v49 = vpop.f32.mrb[4].mxu0 }
 0x67c   : > { %v663_v50 = vadd.f32 %v657_v49, %v618_v48  ;;  %v2762_v51 = vpop.f32.mrb[5].mxu0 }
 0x67d   : > { %v660_v52 = vpop.f32.mrb[6].mxu0 }
 0x67e   : > { %2925 = vtanh.f32 %v663_v50  ;;  %v2763_v53 = vpop.f32.mrb[7].mxu0  ;;  %v2605_v55 = vmul.f32 -1.442695, %v663_v50  ;;  %v852_v52 = vsub.f32 1.0, %v2613_v46 }
 0x680   : > { %2927 = vpow2.f32 %v2605_v55 }
 0x688   : > { %v2926_v54 = vpop.eup %2925 }
 0x689   : > { %684 = vrot.lane.b32.xlu1 %v2926_v54, %s3068_s10 }
 0x68a   : > { %v2928_v56 = vpop.eup %2927 }
 0x68b   : > { %v667_v57 = vadd.f32 1.0, %v2928_v56 }
 0x68d   : > { %2929 = vrcp.f32 %v667_v57 }
 0x697   : > { %v2930_v58 = vpop.eup %2929 }
 0x698   : > { %v682_v63 = vmul.f32 %v2930_v58, %v680_v62 }
 0x6fb   : > { %v685_v59 = vpop.permute.xlu1 %684 }
 0x6fc   : > { %v687_v60 = vmul.f32 %v2930_v58, %v685_v59 }
 0x6fe   : > { %689 = vrot.lane.b32.xlu1 %v687_v60, %s3069_s11 }
 0x702   : > { %705 = vperm.xlu1 %2908, %v2607_v61  }
 0x770   : > { %v690_v1 = vpop.permute.xlu1 %689 }
 0x771   : > { %v692_v10 = vadd.f32 %v690_v1, %v682_v63 }
 0x773   : > { %2931 = vtanh.f32 %v692_v10  ;;  %v737_v13 = vrot.slane %v692_v10, %v3197_v28 }
 0x77d   : > { %v2932_v11 = vpop.eup %2931 }
 0x77e   : > { %695 = vrot.lane.b32.xlu0 %v2932_v11, %s3068_s10 }
 0x781   : > { %v706_v19 = vpop.permute.xlu1 %705 }
 0x782   : > { %725 = vperm.xlu0 %2907, %v722_v12  }
 0x786   : > { %738 = vrot.lane.b32.xlu0 %v737_v13, %s3070_s12 }
 0x7f0   : > { %v696_v14 = vpop.permute.xlu0 %695 }
 0x7f1   : > { %v698_v15 = vmul.f32 %v2930_v58, %v696_v14  ;;  %v2615_v14 = vld [vmem:[%s3135_s26 + $0x4] sm:$0x1] }
 0x7f3   : > { %v715_v16 = vrot.slane %v698_v15, %v3197_v28  ;;  %v877_v15 = vunpack.c.l.bf16 %v2615_v14 }
 0x7f5   : > { %716 = vrot.lane.b32.xlu1 %v715_v16, %s3069_s11  ;;  %v878_v16 = vadd.f32 %v877_v15, %v3194_v17 }
 0x801   : > { %v726_v18 = vpop.permute.xlu0 %725 }
 0x802   : > { %v742_v21 = vmul.f32 %v726_v18, %v613_v39  ;;  %v728_v26 = vmul.f32 %v726_v18, %v599_v44 }
 0x805   : > { %v739_v20 = vpop.permute.xlu0 %738 }
 0x806   : > { %v741_v22 = vmul.f32 %v739_v20, %v706_v19 }
 0x808   : > { %v743_v23 = vadd.f32 %v742_v21, %v741_v22 }
 0x80a   : > { %v808_v24 = vrot.slane %v743_v23, %v3197_v28 }
 0x80c   : > { %809 = vrot.lane.b32.xlu0 %v808_v24, %s3069_s11 }
 0x867   : > { %v717_v25 = vpop.permute.xlu1 %716 }
 0x868   : > { %v719_v27 = vmul.f32 %v717_v25, %v706_v19 }
 0x86a   : > { %2608 = vst.msk [vmem:[%s3146_s9 + $0x4] sm:$0x3] %vm321_vm0, %v719_v27  ;;  %v729_v29 = vadd.f32 %v728_v26, %v719_v27 }
 0x86c   : > { %v749_v30 = vpack.c.bf16 %v729_v29, %v729_v29 }
 0x86e   : > { %2769 = vmatmul.mubr.msk.bf16.vlgmr.msra.gmra.mrb[4].mxu1 %vm359_vm2, %v749_v30 }
 0x86f   : > { %2781 = vmatpush3.bf16.msra.mxu1 %v3161_v7  ;;  %2784 = vmatprep.mubr.msk.bf16.mxu1 %vm3065_vm1, %v3064_v8 }
 0x870   : > { %2782 = vmatprep.subr.bf16.mxu1 %v3064_v8 }
 0x873   : > { %2783 = vmatpush3.bf16.msra.mxu1 %v3169_v9 }
 0x874   : > { %2796 = vmatprep.subr.bf16.mxu1 %v3064_v8 }
 0x87e   : > { %v810_v47 = vpop.permute.xlu0 %809 }
 0x941   : > { %v787_v34 = vpop.f32.mrb[4].mxu1 }
 0x942   : > { %v793_v35 = vadd.f32 %v787_v34, %v748_v33  ;;  %v2770_v36 = vpop.f32.mrb[5].mxu1 }
 0x943   : > { %v790_v37 = vpop.f32.mrb[6].mxu1 }
 0x944   : > { %2933 = vtanh.f32 %v793_v35  ;;  %v2771_v38 = vpop.f32.mrb[7].mxu1  ;;  %v2611_v40 = vmul.f32 -1.442695, %v793_v35  ;;  %v982_v37 = vsub.f32 1.0, %v2619_v31 }
 0x946   : > { %2935 = vpow2.f32 %v2611_v40 }
 0x94e   : > { %v2934_v39 = vpop.eup %2933 }
 0x94f   : > { %814 = vrot.lane.b32.xlu1 %v2934_v39, %s3068_s10 }
 0x950   : > { %v2936_v41 = vpop.eup %2935 }
 0x951   : > { %v797_v42 = vadd.f32 1.0, %v2936_v41 }
 0x953   : > { %2937 = vrcp.f32 %v797_v42 }
 0x95d   : > { %v2938_v43 = vpop.eup %2937 }
 0x95e   : > { %v812_v48 = vmul.f32 %v2938_v43, %v810_v47 }
 0x9c1   : > { %v815_v44 = vpop.permute.xlu1 %814 }
 0x9c2   : > { %v817_v45 = vmul.f32 %v2938_v43, %v815_v44 }
 0x9c4   : > { %819 = vrot.lane.b32.xlu1 %v817_v45, %s3069_s11 }
 0x9c8   : > { %835 = vperm.xlu1 %2908, %v2613_v46  }
 0xa36   : > { %v820_v49 = vpop.permute.xlu1 %819 }
 0xa37   : > { %v822_v50 = vadd.f32 %v820_v49, %v812_v48 }
 0xa39   : > { %2939 = vtanh.f32 %v822_v50  ;;  %v867_v53 = vrot.slane %v822_v50, %v3197_v28 }
 0xa43   : > { %v2940_v51 = vpop.eup %2939 }
 0xa44   : > { %825 = vrot.lane.b32.xlu0 %v2940_v51, %s3068_s10 }
 0xa47   : > { %v836_v58 = vpop.permute.xlu1 %835 }
 0xa48   : > { %855 = vperm.xlu0 %2907, %v852_v52  }
 0xa4c   : > { %868 = vrot.lane.b32.xlu0 %v867_v53, %s3070_s12 }
 0xab6   : > { %v826_v54 = vpop.permute.xlu0 %825 }
 0xab7   : > { %v828_v55 = vmul.f32 %v2938_v43, %v826_v54  ;;  %v2621_v54 = vld [vmem:[%s3135_s26 + $0x5] sm:$0x1] }
 0xab9   : > { %v845_v56 = vrot.slane %v828_v55, %v3197_v28  ;;  %v1007_v55 = vunpack.c.l.bf16 %v2621_v54 }
 0xabb   : > { %846 = vrot.lane.b32.xlu1 %v845_v56, %s3069_s11  ;;  %v1008_v56 = vadd.f32 %v1007_v55, %v3194_v17 }
 0xac7   : > { %v856_v57 = vpop.permute.xlu0 %855 }
 0xac8   : > { %v872_v60 = vmul.f32 %v856_v57, %v743_v23  ;;  %v858_v10 = vmul.f32 %v856_v57, %v729_v29 }
 0xacb   : > { %v869_v59 = vpop.permute.xlu0 %868 }
 0xacc   : > { %v871_v61 = vmul.f32 %v869_v59, %v836_v58 }
 0xace   : > { %v873_v62 = vadd.f32 %v872_v60, %v871_v61 }
 0xad0   : > { %v938_v63 = vrot.slane %v873_v62, %v3197_v28 }
 0xad2   : > { %939 = vrot.lane.b32.xlu0 %v938_v63, %s3069_s11 }
 0xb2d   : > { %v847_v1 = vpop.permute.xlu1 %846 }
 0xb2e   : > { %v849_v11 = vmul.f32 %v847_v1, %v836_v58 }
 0xb30   : > { %2614 = vst.msk [vmem:[%s3146_s9 + $0x6] sm:$0x3] %vm321_vm0, %v849_v11  ;;  %v859_v12 = vadd.f32 %v858_v10, %v849_v11 }
 0xb32   : > { %v879_v13 = vpack.c.bf16 %v859_v12, %v859_v12 }
 0xb34   : > { %2777 = vmatmul.mubr.msk.bf16.vlgmr.msra.gmra.mrb[8].mxu0 %vm359_vm2, %v879_v13 }
 0xb35   : > { %2789 = vmatpush3.bf16.msra.mxu0 %v3161_v7  ;;  %2792 = vmatprep.mubr.msk.bf16.mxu0 %vm3065_vm1, %v3064_v8 }
 0xb36   : > { %2790 = vmatprep.subr.bf16.mxu0 %v3064_v8 }
 0xb39   : > { %2791 = vmatpush3.bf16.msra.mxu0 %v3169_v9 }
 0xb44   : > { %v940_v32 = vpop.permute.xlu0 %939 }
 0xc07   : > { %v917_v18 = vpop.f32.mrb[8].mxu0 }
 0xc08   : > { %v923_v19 = vadd.f32 %v917_v18, %v878_v16  ;;  %v2778_v20 = vpop.f32.mrb[9].mxu0 }
 0xc09   : > { %v920_v21 = vpop.f32.mrb[10].mxu0 }
 0xc0a   : > { %2941 = vtanh.f32 %v923_v19  ;;  %v2779_v22 = vpop.f32.mrb[11].mxu0  ;;  %v2617_v24 = vmul.f32 -1.442695, %v923_v19 }
 0xc0c   : > { %2943 = vpow2.f32 %v2617_v24 }
 0xc14   : > { %v2942_v23 = vpop.eup %2941 }
 0xc15   : > { %944 = vrot.lane.b32.xlu1 %v2942_v23, %s3068_s10 }
 0xc16   : > { %v2944_v25 = vpop.eup %2943 }
 0xc17   : > { %v927_v26 = vadd.f32 1.0, %v2944_v25 }
 0xc19   : > { %2945 = vrcp.f32 %v927_v26 }
 0xc23   : > { %v2946_v27 = vpop.eup %2945 }
 0xc24   : > { %v942_v33 = vmul.f32 %v2946_v27, %v940_v32 }
 0xc87   : > { %v945_v29 = vpop.permute.xlu1 %944 }
 0xc88   : > { %v947_v30 = vmul.f32 %v2946_v27, %v945_v29 }
 0xc8a   : > { %949 = vrot.lane.b32.xlu1 %v947_v30, %s3069_s11 }
 0xc8e   : > { %965 = vperm.xlu1 %2908, %v2619_v31  }
 0xcfc   : > { %v950_v34 = vpop.permute.xlu1 %949 }
 0xcfd   : > { %v952_v35 = vadd.f32 %v950_v34, %v942_v33 }
 0xcff   : > { %2947 = vtanh.f32 %v952_v35  ;;  %v997_v38 = vrot.slane %v952_v35, %v3197_v28 }
 0xd09   : > { %v2948_v36 = vpop.eup %2947 }
 0xd0a   : > { %955 = vrot.lane.b32.xlu0 %v2948_v36, %s3068_s10 }
 0xd0d   : > { %v966_v43 = vpop.permute.xlu1 %965 }
 0xd0e   : > { %985 = vperm.xlu0 %2907, %v982_v37   ;;  %v2627_v37 = vld [vmem:[%s3135_s26 + $0x6] sm:$0x1] }
 0xd12   : > { %998 = vrot.lane.b32.xlu0 %v997_v38, %s3070_s12  ;;  %v1137_v38 = vunpack.c.l.bf16 %v2627_v37 }
 0xd7c   : > { %v956_v39 = vpop.permute.xlu0 %955 }
 0xd7d   : > { %v958_v40 = vmul.f32 %v2946_v27, %v956_v39  ;;  %v1138_v39 = vadd.f32 %v1137_v38, %v3194_v17 }
 0xd7f   : > { %v975_v41 = vrot.slane %v958_v40, %v3197_v28 }
 0xd81   : > { %976 = vrot.lane.b32.xlu1 %v975_v41, %s3069_s11 }
 0xd8d   : > { %v986_v42 = vpop.permute.xlu0 %985 }
 0xd8e   : > { %v1002_v45 = vmul.f32 %v986_v42, %v873_v62  ;;  %v988_v50 = vmul.f32 %v986_v42, %v859_v12  ;;  %v2625_v12 = vsel %vm2624_vm8, 1.0, %v3064_v8 }
 0xd8f   : > { %v1112_v19 = vsub.f32 1.0, %v2625_v12 }
 0xd91   : > { %v999_v44 = vpop.permute.xlu0 %998 }
 0xd92   : > { %v1001_v46 = vmul.f32 %v999_v44, %v966_v43 }
 0xd94   : > { %v1003_v47 = vadd.f32 %v1002_v45, %v1001_v46 }
 0xd96   : > { %v1068_v48 = vrot.slane %v1003_v47, %v3197_v28 }
 0xd98   : > { %1069 = vrot.lane.b32.xlu0 %v1068_v48, %s3069_s11 }
 0xdf3   : > { %v977_v49 = vpop.permute.xlu1 %976 }
 0xdf4   : > { %v979_v51 = vmul.f32 %v977_v49, %v966_v43 }
 0xdf6   : > { %2620 = vst.msk [vmem:[%s3146_s9 + $0x8] sm:$0x3] %vm321_vm0, %v979_v51  ;;  %v989_v52 = vadd.f32 %v988_v50, %v979_v51 }
 0xdf8   : > { %v1009_v53 = vpack.c.bf16 %v989_v52, %v989_v52 }
 0xdfa   : > { %2785 = vmatmul.mubr.msk.bf16.vlgmr.msra.gmra.mrb[8].mxu1 %vm359_vm2, %v1009_v53 }
 0xdfb   : > { %2797 = vmatpush3.bf16.msra.mxu1 %v3161_v7  ;;  %2800 = vmatprep.mubr.msk.bf16.mxu1 %vm3065_vm1, %v3064_v8 }
 0xdfc   : > { %2798 = vmatprep.subr.bf16.mxu1 %v3064_v8 }
 0xdff   : > { %2799 = vmatpush3.bf16.msra.mxu1 %v3169_v9 }
 0xe0a   : > { %v1070_v13 = vpop.permute.xlu0 %1069 }
 0xecd   : > { %v1047_v57 = vpop.f32.mrb[8].mxu1 }
 0xece   : > { %v1053_v58 = vadd.f32 %v1047_v57, %v1008_v56  ;;  %v2786_v59 = vpop.f32.mrb[9].mxu1 }
 0xecf   : > { %v1050_v60 = vpop.f32.mrb[10].mxu1 }
 0xed0   : > { %2949 = vtanh.f32 %v1053_v58  ;;  %v2787_v61 = vpop.f32.mrb[11].mxu1  ;;  %v2623_v7 = vmul.f32 -1.442695, %v1053_v58 }
 0xed2   : > { %2951 = vpow2.f32 %v2623_v7 }
 0xeda   : > { %v2950_v62 = vpop.eup %2949 }
 0xedb   : > { %1074 = vrot.lane.b32.xlu1 %v2950_v62, %s3068_s10 }
 0xedc   : > { %v2952_v63 = vpop.eup %2951 }
 0xedd   : > { %v1057_v1 = vadd.f32 1.0, %v2952_v63 }
 0xedf   : > { %2953 = vrcp.f32 %v1057_v1 }
 0xee9   : > { %v2954_v10 = vpop.eup %2953 }
 0xeea   : > { %v1072_v14 = vmul.f32 %v2954_v10, %v1070_v13 }
 0xf4d   : > { %v1075_v9 = vpop.permute.xlu1 %1074 }
 0xf4e   : > { %v1077_v11 = vmul.f32 %v2954_v10, %v1075_v9 }
 0xf50   : > { %1079 = vrot.lane.b32.xlu1 %v1077_v11, %s3069_s11 }
 0xf54   : > { %1095 = vperm.xlu1 %2908, %v2625_v12  }
 0xfc2   : > { %v1080_v15 = vpop.permute.xlu1 %1079 }
 0xfc3   : > { %v1082_v16 = vadd.f32 %v1080_v15, %v1072_v14 }
 0xfc5   : > { %2955 = vtanh.f32 %v1082_v16  ;;  %v1127_v20 = vrot.slane %v1082_v16, %v3197_v28 }
 0xfcf   : > { %v2956_v18 = vpop.eup %2955 }
 0xfd0   : > { %1085 = vrot.lane.b32.xlu0 %v2956_v18, %s3068_s10 }
 0xfd3   : > { %v1096_v25 = vpop.permute.xlu1 %1095 }
 0xfd4   : > { %1115 = vperm.xlu0 %2907, %v1112_v19   ;;  %v2633_v19 = vld [vmem:[%s3135_s26 + $0x7] sm:$0x1] }
 0xfd8   : > { %1128 = vrot.lane.b32.xlu0 %v1127_v20, %s3070_s12  ;;  %v1267_v20 = vunpack.c.l.bf16 %v2633_v19 }
0x1042   : > { %v1086_v21 = vpop.permute.xlu0 %1085 }
0x1043   : > { %v1088_v22 = vmul.f32 %v2954_v10, %v1086_v21  ;;  %v1268_v21 = vadd.f32 %v1267_v20, %v3194_v17  ;;  %v2637_v17 = vsel %vm2636_vm10, 1.0, %v3064_v8 }
0x1045   : > { %v1105_v23 = vrot.slane %v1088_v22, %v3197_v28 }
0x1047   : > { %1106 = vrot.lane.b32.xlu1 %v1105_v23, %s3069_s11 }
0x1053   : > { %v1116_v24 = vpop.permute.xlu0 %1115 }
0x1054   : > { %v1132_v27 = vmul.f32 %v1116_v24, %v1003_v47  ;;  %v1118_v33 = vmul.f32 %v1116_v24, %v989_v52  ;;  %v2631_v52 = vsel %vm2630_vm9, 1.0, %v3064_v8 }
0x1055   : > { %v1242_v58 = vsub.f32 1.0, %v2631_v52 }
0x1057   : > { %v1129_v26 = vpop.permute.xlu0 %1128 }
0x1058   : > { %v1131_v29 = vmul.f32 %v1129_v26, %v1096_v25 }
0x105a   : > { %v1133_v30 = vadd.f32 %v1132_v27, %v1131_v29 }
0x105c   : > { %v1198_v31 = vrot.slane %v1133_v30, %v3197_v28 }
0x105e   : > { %1199 = vrot.lane.b32.xlu0 %v1198_v31, %s3069_s11 }
0x10b9   : > { %v1107_v32 = vpop.permute.xlu1 %1106 }
0x10ba   : > { %v1109_v34 = vmul.f32 %v1107_v32, %v1096_v25 }
0x10bc   : > { %2626 = vst.msk [vmem:[%s3146_s9 + $0xa] sm:$0x3] %vm321_vm0, %v1109_v34  ;;  %v1119_v35 = vadd.f32 %v1118_v33, %v1109_v34 }
0x10be   : > { %v1139_v36 = vpack.c.bf16 %v1119_v35, %v1119_v35 }
0x10c0   : > { %2793 = vmatmul.mubr.msk.bf16.vlgmr.msra.gmra.mrb[12].mxu0 %vm359_vm2, %v1139_v36 }
0x10d0   : > { %v1200_v53 = vpop.permute.xlu0 %1199 }
0x1193   : > { %v1177_v40 = vpop.f32.mrb[12].mxu0 }
0x1194   : > { %v1183_v41 = vadd.f32 %v1177_v40, %v1138_v39  ;;  %v2794_v42 = vpop.f32.mrb[13].mxu0  ;;  %v1372_v40 = vsub.f32 1.0, %v2637_v17 }
0x1195   : > { %v1180_v43 = vpop.f32.mrb[14].mxu0 }
0x1196   : > { %2957 = vtanh.f32 %v1183_v41  ;;  %v2795_v44 = vpop.f32.mrb[15].mxu0  ;;  %v2629_v46 = vmul.f32 -1.442695, %v1183_v41 }
0x1198   : > { %2959 = vpow2.f32 %v2629_v46 }
0x11a0   : > { %v2958_v45 = vpop.eup %2957 }
0x11a1   : > { %1204 = vrot.lane.b32.xlu1 %v2958_v45, %s3068_s10 }
0x11a2   : > { %v2960_v47 = vpop.eup %2959 }
0x11a3   : > { %v1187_v48 = vadd.f32 1.0, %v2960_v47 }
0x11a5   : > { %2961 = vrcp.f32 %v1187_v48 }
0x11af   : > { %v2962_v49 = vpop.eup %2961 }
0x11b0   : > { %v1202_v54 = vmul.f32 %v2962_v49, %v1200_v53 }
0x1213   : > { %v1205_v50 = vpop.permute.xlu1 %1204 }
0x1214   : > { %v1207_v51 = vmul.f32 %v2962_v49, %v1205_v50 }
0x1216   : > { %1209 = vrot.lane.b32.xlu1 %v1207_v51, %s3069_s11 }
0x121a   : > { %1225 = vperm.xlu1 %2908, %v2631_v52  }
0x1288   : > { %v1210_v55 = vpop.permute.xlu1 %1209 }
0x1289   : > { %v1212_v56 = vadd.f32 %v1210_v55, %v1202_v54 }
0x128b   : > { %2963 = vtanh.f32 %v1212_v56  ;;  %v1257_v59 = vrot.slane %v1212_v56, %v3197_v28 }
0x1295   : > { %v2964_v57 = vpop.eup %2963 }
0x1296   : > { %1215 = vrot.lane.b32.xlu0 %v2964_v57, %s3068_s10 }
0x1299   : > { %v1226_v63 = vpop.permute.xlu1 %1225 }
0x129a   : > { %1245 = vperm.xlu0 %2907, %v1242_v58  }
0x129e   : > { %1258 = vrot.lane.b32.xlu0 %v1257_v59, %s3070_s12 }
0x1308   : > { %v1216_v60 = vpop.permute.xlu0 %1215 }
0x1309   : > { %v1218_v61 = vmul.f32 %v2962_v49, %v1216_v60 }
0x130b   : > { %v1235_v62 = vrot.slane %v1218_v61, %v3197_v28 }
0x130d   : > { %1236 = vrot.lane.b32.xlu1 %v1235_v62, %s3069_s11 }
0x1319   : > { %v1246_v7 = vpop.permute.xlu0 %1245 }
0x131a   : > { %v1262_v10 = vmul.f32 %v1246_v7, %v1133_v30  ;;  %v1248_v14 = vmul.f32 %v1246_v7, %v1119_v35 }
0x131d   : > { %v1259_v1 = vpop.permute.xlu0 %1258 }
0x131e   : > { %v1261_v9 = vmul.f32 %v1259_v1, %v1226_v63 }
0x1320   : > { %v1263_v11 = vadd.f32 %v1262_v10, %v1261_v9 }
0x1322   : > { %v1328_v12 = vrot.slane %v1263_v11, %v3197_v28 }
0x1324   : > { %1329 = vrot.lane.b32.xlu0 %v1328_v12, %s3069_s11 }
0x137f   : > { %v1237_v13 = vpop.permute.xlu1 %1236 }
0x1380   : > { %v1239_v15 = vmul.f32 %v1237_v13, %v1226_v63 }
0x1382   : > { %2632 = vst.msk [vmem:[%s3146_s9 + $0xc] sm:$0x3] %vm321_vm0, %v1239_v15  ;;  %v1249_v16 = vadd.f32 %v1248_v14, %v1239_v15 }
0x1384   : > { %v1269_v18 = vpack.c.bf16 %v1249_v16, %v1249_v16 }
0x1386   : > { %2801 = vmatmul.mubr.msk.bf16.vlgmr.msra.gmra.mrb[12].mxu1 %vm359_vm2, %v1269_v18 }
0x1396   : > { %v1330_v35 = vpop.permute.xlu0 %1329 }
0x1459   : > { %v1307_v22 = vpop.f32.mrb[12].mxu1 }
0x145a   : > { %v1313_v23 = vadd.f32 %v1307_v22, %v1268_v21  ;;  %v2802_v24 = vpop.f32.mrb[13].mxu1 }
0x145b   : > { %v1310_v25 = vpop.f32.mrb[14].mxu1 }
0x145c   : > { %2965 = vtanh.f32 %v1313_v23  ;;  %v2803_v26 = vpop.f32.mrb[15].mxu1  ;;  %v2635_v29 = vmul.f32 -1.442695, %v1313_v23 }
0x145e   : > { %2967 = vpow2.f32 %v2635_v29 }
0x1466   : > { %v2966_v27 = vpop.eup %2965 }
0x1467   : > { %1334 = vrot.lane.b32.xlu1 %v2966_v27, %s3068_s10 }
0x1468   : > { %v2968_v30 = vpop.eup %2967 }
0x1469   : > { %v1317_v31 = vadd.f32 1.0, %v2968_v30 }
0x146b   : > { %2969 = vrcp.f32 %v1317_v31 }
0x1475   : > { %v2970_v32 = vpop.eup %2969 }
0x1476   : > { %v1332_v36 = vmul.f32 %v2970_v32, %v1330_v35 }
0x14d9   : > { %v1335_v33 = vpop.permute.xlu1 %1334 }
0x14da   : > { %v1337_v34 = vmul.f32 %v2970_v32, %v1335_v33 }
0x14dc   : > { %1339 = vrot.lane.b32.xlu1 %v1337_v34, %s3069_s11 }
0x14e0   : > { %1355 = vperm.xlu1 %2908, %v2637_v17  }
0x154e   : > { %v1340_v37 = vpop.permute.xlu1 %1339 }
0x154f   : > { %v1342_v38 = vadd.f32 %v1340_v37, %v1332_v36 }
0x1551   : > { %2971 = vtanh.f32 %v1342_v38  ;;  %v1387_v41 = vrot.slane %v1342_v38, %v3197_v28 }
0x155b   : > { %v2972_v39 = vpop.eup %2971 }
0x155c   : > { %1345 = vrot.lane.b32.xlu0 %v2972_v39, %s3068_s10 }
0x155f   : > { %v1356_v45 = vpop.permute.xlu1 %1355 }
0x1560   : > { %1375 = vperm.xlu0 %2907, %v1372_v40  }
0x1564   : > { %1388 = vrot.lane.b32.xlu0 %v1387_v41, %s3070_s12 }
0x15ce   : > { %v1346_v42 = vpop.permute.xlu0 %1345 }
0x15cf   : > { %v1348_v43 = vmul.f32 %v2970_v32, %v1346_v42 }
0x15d1   : > { %v1365_v8 = vrot.slane %v1348_v43, %v3197_v28 }
0x15d3   : > { %1366 = vrot.lane.b32.xlu1 %v1365_v8, %s3069_s11 }
0x15df   : > { %v1376_v44 = vpop.permute.xlu0 %1375 }
0x15e0   : > { %v1392_v47 = vmul.f32 %v1376_v44, %v1263_v11  ;;  %v1378_v51 = vmul.f32 %v1376_v44, %v1249_v16 }
0x15e3   : > { %v1389_v46 = vpop.permute.xlu0 %1388 }
0x15e4   : > { %v1391_v48 = vmul.f32 %v1389_v46, %v1356_v45 }
0x15e6   : > { %v1393_v49 = vadd.f32 %v1392_v47, %v1391_v48 }
0x15e8   : > { %1395 = vst.msk [vmem:[#allocation3] sm:$0x3] %vm321_vm0, %v1393_v49 }
0x1645   : > { %v1367_v50 = vpop.permute.xlu1 %1366 }
0x1646   : > { %v1369_v52 = vmul.f32 %v1367_v50, %v1356_v45 }
0x1648   : > { %2638 = vst.msk [vmem:[%s3146_s9 + $0xe] sm:$0x3] %vm321_vm0, %v1369_v52  ;;  %v1379_v53 = vadd.f32 %v1378_v51, %v1369_v52 }
0x164a   : > { %1394 = vst.msk [vmem:[#allocation2] sm:$0x3] %vm321_vm0, %v1379_v53 }
0x164b PF: > { %p2639_p6 = scmp.ne.s32.totalorder %s3053_s15, 1 }
0x164c   : > { %v3358_v28 = vcombine.low (!%p2639_p6), %v3148_v2, %v3150_v3  ;;  %v3071_v54 = vmov (!%p2639_p6), 0.0   ;;  %vm3072_vm11 = vmmov (!%p2639_p6), 0   ;;  %v3366_v55 = vcombine.low (!%p2639_p6), %v3152_v4, %v3154_v5  ;;  %v2640_v57 = vld [vmem:[%s3135_s26 + $0x7] sm:$0x1] (!%p2639_p6)  ;;  %v1403_v14 = vld [vmem:[#allocation3] sm:$0x3] (!%p2639_p6) }
0x164d   : > { %1399 = sbr.rel (%p2639_p6) target bundleno = 11396 (0x2c84), region = 48  ;;  %2804 = vmatprep.subr.bf16.mxu0 (!%p2639_p6), %v3071_v54  ;;  %2808 = vmatprep.mubr.msk.bf16.mxu0 (!%p2639_p6), %vm3072_vm11, %v3071_v54  ;;  %vm1428_vm12 = vcmask (!%p2639_p6), 261120   ;;  %v1409_v3 = vlaneseq (!%p2639_p6)  ;;  %v1407_v58 = vunpack.c.l.bf16 (!%p2639_p6), %v2640_v57  ;;  %v3073_v63 = vmov (!%p2639_p6), 1983009808   ;;  %s3075_s13 = smov (!%p2639_p6), 64  }
0x164e   : > { %2805 = vmatpush3.bf16.msra.mxu0 (!%p2639_p6), %v3358_v28  ;;  %2812 = vmatprep.subr.bf16.mxu1 (!%p2639_p6), %v3071_v54  ;;  %v1482_v1 = vunpack.c.l.s4 (!%p2639_p6), %v3073_v63  ;;  %v3074_v12 = vmov (!%p2639_p6), 0   ;;  %vm2645_vm13 = vcmp.gt.s32.totalorder (!%p2639_p6), %v3127_v0, 7  ;;  %s3076_s14 = smov (!%p2639_p6), 32   ;;  %s3077_s15 = smov (!%p2639_p6), 96   ;;  %v2648_v45 = vld [vmem:[%s3135_s26 + $0x6] sm:$0x1] (!%p2639_p6) }
0x164f   : > { %2806 = vmatprep.subr.bf16.mxu0 (!%p2639_p6), %v3071_v54  ;;  %2813 = vmatpush3.bf16.msra.mxu1 (!%p2639_p6), %v3358_v28  ;;  %v1410_v4 = vshrl.u32 (!%p2639_p6), %v1409_v3, 7  ;;  %v2646_v16 = vsel (!%p2639_p6), %vm2645_vm13, 1.0, %v3071_v54  ;;  %v1557_v46 = vunpack.c.l.bf16 (!%p2639_p6), %v2648_v45  ;;  %vm2651_vm14 = vcmp.gt.s32.totalorder (!%p2639_p6), %v3127_v0, 6 }
0x1650   : > { %2814 = vmatprep.subr.bf16.mxu1 (!%p2639_p6), %v3071_v54  ;;  %2816 = vmatprep.mubr.msk.bf16.mxu1 (!%p2639_p6), %vm3072_vm11, %v3071_v54  ;;  %v1483_v11 = vunpack.c.0.s8 (!%p2639_p6), %v1482_v1  ;;  %v1532_v31 = vsub.f32 (!%p2639_p6), 1.0, %v2646_v16  ;;  %vm2657_vm15 = vcmp.gt.s32.totalorder (!%p2639_p6), %v3127_v0, 5  ;;  %vm2663_vm1 = vcmp.gt.s32.totalorder (!%p2639_p6), %v3127_v0, 4 }
0x1651   : > { %v3368_v56 = vld [vmem:[#allocation2] sm:$0x3] (!%p2639_p6)  ;;  %v1411_v5 = vsub.s32 (!%p2639_p6), 0, %v1410_v4  ;;  %2973 = vset.pattern.permute.xlu0 (!%p2639_p6), %v3074_v12  ;;  %2974 = vset.pattern.permute.xlu1 (!%p2639_p6), %v3074_v12  ;;  %vm2669_vm2 = vcmp.gt.s32.totalorder (!%p2639_p6), %v3127_v0, 3  ;;  %vm2675_vm3 = vcmp.gt.s32.totalorder (!%p2639_p6), %v3127_v0, 2  ;;  %vm2681_vm4 = vcmp.gt.s32.totalorder (!%p2639_p6), %v3127_v0, 1 }
0x1652   : > { %v1415_v2 = vpack.c.bf16 (!%p2639_p6), %v3368_v56, %v3368_v56  ;;  %2807 = vmatpush3.bf16.msra.mxu0 (!%p2639_p6), %v3366_v55  ;;  %v3394_v13 = vsub.s32 (!%p2639_p6), %v1483_v11, %v1410_v4  ;;  %vm2686_vm5 = vcmp.gt.s32.totalorder (!%p2639_p6), %v3127_v0, 0 }
0x1653   : > { %2815 = vmatpush3.bf16.msra.mxu1 (!%p2639_p6), %v3366_v55  ;;  %2820 = vmatprep.subr.bf16.mxu0 (!%p2639_p6), %v3071_v54  ;;  %v3391_v59 = vrot.slane (!%p2639_p6), %v3156_v6, %v1411_v5 }
0x1654   : > { %2828 = vmatprep.subr.bf16.mxu1 %v3071_v54  ;;  %v1487_v6 = vrot.slane %v1403_v14, %v3394_v13 }
0x1655   : > { %2809 = vmatmul.mubr.msk.bf16.vlgmr.msra.gmra.mrb[0].mxu0 %vm1428_vm12, %v1415_v2  ;;  %v1414_v60 = vadd.f32 %v3391_v59, %v1407_v58  ;;  %v1558_v47 = vadd.f32 %v1557_v46, %v3391_v59  ;;  %v2652_v58 = vsel %vm2651_vm14, 1.0, %v3071_v54 }
0x1656   : > { %2821 = vmatpush3.bf16.msra.mxu0 %v3358_v28  ;;  %2824 = vmatprep.mubr.msk.bf16.mxu0 %vm3072_vm11, %v3071_v54  ;;  %v1662_v1 = vsub.f32 1.0, %v2652_v58 }
0x1657   : > { %2822 = vmatprep.subr.bf16.mxu0 %v3071_v54 }
0x165a   : > { %2823 = vmatpush3.bf16.msra.mxu0 %v3366_v55 }
0x165b   : > { %2836 = vmatprep.subr.bf16.mxu0 %v3071_v54 }
0x1728   : > { %v1466_v61 = vpop.f32.mrb[0].mxu0 }
0x1729   : > { %v1472_v62 = vadd.f32 %v1466_v61, %v1414_v60  ;;  %v2810_v7 = vpop.f32.mrb[1].mxu0 }
0x172a   : > { %v1469_v10 = vpop.f32.mrb[2].mxu0 }
0x172b   : > { %2975 = vtanh.f32 %v1472_v62  ;;  %v2811_v9 = vpop.f32.mrb[3].mxu0  ;;  %v2644_v18 = vmul.f32 -1.442695, %v1472_v62 }
0x172d   : > { %2977 = vpow2.f32 %v2644_v18 }
0x1735   : > { %v2976_v15 = vpop.eup %2975 }
0x1736   : > { %1493 = vrot.lane.b32.xlu0 %v2976_v15, %s3075_s13 }
0x1737   : > { %v2978_v19 = vpop.eup %2977 }
0x1738   : > { %v1476_v20 = vadd.f32 1.0, %v2978_v19 }
0x173a   : > { %1488 = vrot.lane.b32.xlu0 %v1487_v6, %s3076_s14  ;;  %2979 = vrcp.f32 %v1476_v20 }
0x173e   : > { %1514 = vperm.xlu0 %2973, %v2646_v16  }
0x1744   : > { %v2980_v21 = vpop.eup %2979 }
0x17a8   : > { %v1494_v22 = vpop.permute.xlu0 %1493 }
0x17a9   : > { %v1496_v23 = vmul.f32 %v2980_v21, %v1494_v22 }
0x17ab   : > { %1498 = vrot.lane.b32.xlu1 %v1496_v23, %s3076_s14 }
0x17ac   : > { %v1489_v24 = vpop.permute.xlu0 %1488 }
0x17ad   : > { %v1491_v25 = vmul.f32 %v2980_v21, %v1489_v24 }
0x17bd   : > { %v1515_v17 = vpop.permute.xlu0 %1514 }
0x181d   : > { %v1499_v26 = vpop.permute.xlu1 %1498 }
0x181e   : > { %v1501_v27 = vadd.f32 %v1499_v26, %v1491_v25  ;;  %v2654_v26 = vld [vmem:[%s3135_s26 + $0x5] sm:$0x1] }
0x1820   : > { %2981 = vtanh.f32 %v1501_v27  ;;  %v1547_v29 = vrot.slane %v1501_v27, %v3394_v13  ;;  %v1687_v27 = vunpack.c.l.bf16 %v2654_v26 }
0x1822   : > { %1548 = vrot.lane.b32.xlu0 %v1547_v29, %s3077_s15  ;;  %v1688_v29 = vadd.f32 %v1687_v27, %v3391_v59 }
0x182a   : > { %v2982_v30 = vpop.eup %2981 }
0x182b   : > { %1504 = vrot.lane.b32.xlu1 %v2982_v30, %s3075_s13 }
0x182f   : > { %1535 = vperm.xlu1 %2974, %v1532_v31  }
0x1894   : > { %v1549_v35 = vpop.permute.xlu0 %1548 }
0x1895   : > { %v1551_v37 = vmul.f32 %v1549_v35, %v1515_v17 }
0x189d   : > { %v1505_v32 = vpop.permute.xlu1 %1504 }
0x189e   : > { %v1507_v33 = vmul.f32 %v2980_v21, %v1505_v32 }
0x18a0   : > { %v1524_v34 = vrot.slane %v1507_v33, %v3394_v13 }
0x18a2   : > { %1525 = vrot.lane.b32.xlu1 %v1524_v34, %s3076_s14 }
0x18ae   : > { %v1536_v36 = vpop.permute.xlu1 %1535 }
0x18af   : > { %v1552_v38 = vmul.f32 %v1536_v36, %v1403_v14  ;;  %v1538_v42 = vmul.f32 %v1536_v36, %v3368_v56 }
0x18b1   : > { %v1553_v39 = vadd.f32 %v1552_v38, %v1551_v37 }
0x18b3   : > { %v1618_v40 = vrot.slane %v1553_v39, %v3394_v13 }
0x18b5   : > { %1619 = vrot.lane.b32.xlu0 %v1618_v40, %s3076_s14 }
0x1914   : > { %v1526_v41 = vpop.permute.xlu1 %1525 }
0x1915   : > { %v1528_v43 = vmul.f32 %v1526_v41, %v1515_v17  ;;  %v2658_v41 = vsel %vm2657_vm15, 1.0, %v3071_v54 }
0x1916   : > { %v1792_v46 = vsub.f32 1.0, %v2658_v41 }
0x1917   : > { %2647 = vst.msk [vmem:[%s3146_s9 + $0xe] sm:$0x3] %vm321_vm0, %v1528_v43  ;;  %v1539_v8 = vadd.f32 %v1538_v42, %v1528_v43 }
0x1919   : > { %v1559_v44 = vpack.c.bf16 %v1539_v8, %v1539_v8 }
0x191b   : > { %2817 = vmatmul.mubr.msk.bf16.vlgmr.msra.gmra.mrb[0].mxu1 %vm1428_vm12, %v1559_v44 }
0x191c   : > { %2829 = vmatpush3.bf16.msra.mxu1 %v3358_v28  ;;  %2832 = vmatprep.mubr.msk.bf16.mxu1 %vm3072_vm11, %v3071_v54 }
0x191d   : > { %2830 = vmatprep.subr.bf16.mxu1 %v3071_v54 }
0x1920   : > { %2831 = vmatpush3.bf16.msra.mxu1 %v3366_v55 }
0x1921   : > { %2844 = vmatprep.subr.bf16.mxu1 %v3071_v54 }
0x1927   : > { %v1620_v60 = vpop.permute.xlu0 %1619 }
0x19ee   : > { %v1597_v48 = vpop.f32.mrb[0].mxu1 }
0x19ef   : > { %v1603_v49 = vadd.f32 %v1597_v48, %v1558_v47  ;;  %v2818_v50 = vpop.f32.mrb[1].mxu1 }
0x19f0   : > { %v1600_v51 = vpop.f32.mrb[2].mxu1 }
0x19f1   : > { %2983 = vtanh.f32 %v1603_v49  ;;  %v2819_v52 = vpop.f32.mrb[3].mxu1  ;;  %v2650_v56 = vmul.f32 -1.442695, %v1603_v49 }
0x19f3   : > { %2985 = vpow2.f32 %v2650_v56 }
0x19fb   : > { %v2984_v53 = vpop.eup %2983 }
0x19fc   : > { %1624 = vrot.lane.b32.xlu1 %v2984_v53, %s3075_s13 }
0x19fd   : > { %v2986_v2 = vpop.eup %2985 }
0x19fe   : > { %v1607_v3 = vadd.f32 1.0, %v2986_v2 }
0x1a00   : > { %2987 = vrcp.f32 %v1607_v3 }
0x1a0a   : > { %v2988_v4 = vpop.eup %2987 }
0x1a0b   : > { %v1622_v61 = vmul.f32 %v2988_v4, %v1620_v60 }
0x1a6e   : > { %v1625_v5 = vpop.permute.xlu1 %1624 }
0x1a6f   : > { %v1627_v57 = vmul.f32 %v2988_v4, %v1625_v5 }
0x1a71   : > { %1629 = vrot.lane.b32.xlu1 %v1627_v57, %s3076_s14 }
0x1a75   : > { %1645 = vperm.xlu1 %2974, %v2652_v58  }
0x1ae3   : > { %v1630_v62 = vpop.permute.xlu1 %1629 }
0x1ae4   : > { %v1632_v7 = vadd.f32 %v1630_v62, %v1622_v61  ;;  %v2660_v62 = vld [vmem:[%s3135_s26 + $0x4] sm:$0x1] }
0x1ae6   : > { %2989 = vtanh.f32 %v1632_v7  ;;  %v1677_v10 = vrot.slane %v1632_v7, %v3394_v13  ;;  %v1817_v7 = vunpack.c.l.bf16 %v2660_v62 }
0x1af0   : > { %v2990_v63 = vpop.eup %2989 }
0x1af1   : > { %1635 = vrot.lane.b32.xlu0 %v2990_v63, %s3075_s13  ;;  %v1818_v63 = vadd.f32 %v1817_v7, %v3391_v59 }
0x1af4   : > { %v1646_v15 = vpop.permute.xlu1 %1645 }
0x1af5   : > { %1665 = vperm.xlu0 %2973, %v1662_v1  }
0x1af9   : > { %1678 = vrot.lane.b32.xlu0 %v1677_v10, %s3077_s15 }
0x1b63   : > { %v1636_v9 = vpop.permute.xlu0 %1635 }
0x1b64   : > { %v1638_v11 = vmul.f32 %v2988_v4, %v1636_v9 }
0x1b66   : > { %v1655_v12 = vrot.slane %v1638_v11, %v3394_v13 }
0x1b68   : > { %1656 = vrot.lane.b32.xlu1 %v1655_v12, %s3076_s14 }
0x1b74   : > { %v1666_v14 = vpop.permute.xlu0 %1665 }
0x1b75   : > { %v1682_v16 = vmul.f32 %v1666_v14, %v1553_v39  ;;  %v1668_v22 = vmul.f32 %v1666_v14, %v1539_v8 }
0x1b78   : > { %v1679_v6 = vpop.permute.xlu0 %1678 }
0x1b79   : > { %v1681_v18 = vmul.f32 %v1679_v6, %v1646_v15 }
0x1b7b   : > { %v1683_v19 = vadd.f32 %v1682_v16, %v1681_v18 }
0x1b7d   : > { %v1748_v20 = vrot.slane %v1683_v19, %v3394_v13 }
0x1b7f   : > { %1749 = vrot.lane.b32.xlu0 %v1748_v20, %s3076_s14 }
0x1bda   : > { %v1657_v21 = vpop.permute.xlu1 %1656 }
0x1bdb   : > { %v1659_v23 = vmul.f32 %v1657_v21, %v1646_v15  ;;  %v2664_v21 = vsel %vm2663_vm1, 1.0, %v3071_v54 }
0x1bdc   : > { %v1922_v27 = vsub.f32 1.0, %v2664_v21 }
0x1bdd   : > { %2653 = vst.msk [vmem:[%s3146_s9 + $0xc] sm:$0x3] %vm321_vm0, %v1659_v23  ;;  %v1669_v24 = vadd.f32 %v1668_v22, %v1659_v23 }
0x1bdf   : > { %v1689_v25 = vpack.c.bf16 %v1669_v24, %v1669_v24 }
0x1be1   : > { %2825 = vmatmul.mubr.msk.bf16.vlgmr.msra.gmra.mrb[4].mxu0 %vm1428_vm12, %v1689_v25 }
0x1be2   : > { %2837 = vmatpush3.bf16.msra.mxu0 %v3358_v28  ;;  %2840 = vmatprep.mubr.msk.bf16.mxu0 %vm3072_vm11, %v3071_v54 }
0x1be3   : > { %2838 = vmatprep.subr.bf16.mxu0 %v3071_v54 }
0x1be6   : > { %2839 = vmatpush3.bf16.msra.mxu0 %v3366_v55 }
0x1be7   : > { %2852 = vmatprep.subr.bf16.mxu0 %v3071_v54 }
0x1bf1   : > { %v1750_v42 = vpop.permute.xlu0 %1749 }
0x1cb4   : > { %v1727_v30 = vpop.f32.mrb[4].mxu0 }
0x1cb5   : > { %v1733_v31 = vadd.f32 %v1727_v30, %v1688_v29  ;;  %v2826_v32 = vpop.f32.mrb[5].mxu0 }
0x1cb6   : > { %v1730_v33 = vpop.f32.mrb[6].mxu0 }
0x1cb7   : > { %2991 = vtanh.f32 %v1733_v31  ;;  %v2827_v34 = vpop.f32.mrb[7].mxu0  ;;  %v2656_v35 = vmul.f32 -1.442695, %v1733_v31 }
0x1cb9   : > { %2993 = vpow2.f32 %v2656_v35 }
0x1cc1   : > { %v2992_v17 = vpop.eup %2991 }
0x1cc2   : > { %1754 = vrot.lane.b32.xlu1 %v2992_v17, %s3075_s13 }
0x1cc3   : > { %v2994_v36 = vpop.eup %2993 }
0x1cc4   : > { %v1737_v37 = vadd.f32 1.0, %v2994_v36 }
0x1cc6   : > { %2995 = vrcp.f32 %v1737_v37 }
0x1cd0   : > { %v2996_v38 = vpop.eup %2995 }
0x1cd1   : > { %v1752_v43 = vmul.f32 %v2996_v38, %v1750_v42 }
0x1d34   : > { %v1755_v39 = vpop.permute.xlu1 %1754 }
0x1d35   : > { %v1757_v40 = vmul.f32 %v2996_v38, %v1755_v39 }
0x1d37   : > { %1759 = vrot.lane.b32.xlu1 %v1757_v40, %s3076_s14 }
0x1d3b   : > { %1775 = vperm.xlu1 %2974, %v2658_v41  }
0x1da9   : > { %v1760_v8 = vpop.permute.xlu1 %1759 }
0x1daa   : > { %v1762_v44 = vadd.f32 %v1760_v8, %v1752_v43  ;;  %v2666_v8 = vld [vmem:[%s3135_s26 + $0x3] sm:$0x1] }
0x1dac   : > { %2997 = vtanh.f32 %v1762_v44  ;;  %v1807_v47 = vrot.slane %v1762_v44, %v3394_v13  ;;  %v1947_v44 = vunpack.c.l.bf16 %v2666_v8 }
0x1db6   : > { %v2998_v45 = vpop.eup %2997 }
0x1db7   : > { %1765 = vrot.lane.b32.xlu0 %v2998_v45, %s3075_s13  ;;  %v1948_v45 = vadd.f32 %v1947_v44, %v3391_v59 }
0x1dba   : > { %v1776_v52 = vpop.permute.xlu1 %1775 }
0x1dbb   : > { %1795 = vperm.xlu0 %2973, %v1792_v46  }
0x1dbf   : > { %1808 = vrot.lane.b32.xlu0 %v1807_v47, %s3077_s15 }
0x1e29   : > { %v1766_v48 = vpop.permute.xlu0 %1765 }
0x1e2a   : > { %v1768_v49 = vmul.f32 %v2996_v38, %v1766_v48 }
0x1e2c   : > { %v1785_v50 = vrot.slane %v1768_v49, %v3394_v13 }
0x1e2e   : > { %1786 = vrot.lane.b32.xlu1 %v1785_v50, %s3076_s14 }
0x1e3a   : > { %v1796_v51 = vpop.permute.xlu0 %1795 }
0x1e3b   : > { %v1812_v56 = vmul.f32 %v1796_v51, %v1683_v19  ;;  %v1798_v57 = vmul.f32 %v1796_v51, %v1669_v24 }
0x1e3e   : > { %v1809_v53 = vpop.permute.xlu0 %1808 }
0x1e3f   : > { %v1811_v2 = vmul.f32 %v1809_v53, %v1776_v52 }
0x1e41   : > { %v1813_v3 = vadd.f32 %v1812_v56, %v1811_v2 }
0x1e43   : > { %v1878_v4 = vrot.slane %v1813_v3, %v3394_v13 }
0x1e45   : > { %1879 = vrot.lane.b32.xlu0 %v1878_v4, %s3076_s14 }
0x1ea0   : > { %v1787_v5 = vpop.permute.xlu1 %1786 }
0x1ea1   : > { %v1789_v58 = vmul.f32 %v1787_v5, %v1776_v52  ;;  %v2670_v5 = vsel %vm2669_vm2, 1.0, %v3071_v54 }
0x1ea2   : > { %v2052_v7 = vsub.f32 1.0, %v2670_v5 }
0x1ea3   : > { %2659 = vst.msk [vmem:[%s3146_s9 + $0xa] sm:$0x3] %vm321_vm0, %v1789_v58  ;;  %v1799_v60 = vadd.f32 %v1798_v57, %v1789_v58 }
0x1ea5   : > { %v1819_v61 = vpack.c.bf16 %v1799_v60, %v1799_v60 }
0x1ea7   : > { %2833 = vmatmul.mubr.msk.bf16.vlgmr.msra.gmra.mrb[4].mxu1 %vm1428_vm12, %v1819_v61 }
0x1ea8   : > { %2845 = vmatpush3.bf16.msra.mxu1 %v3358_v28  ;;  %2848 = vmatprep.mubr.msk.bf16.mxu1 %vm3072_vm11, %v3071_v54 }
0x1ea9   : > { %2846 = vmatprep.subr.bf16.mxu1 %v3071_v54 }
0x1eac   : > { %2847 = vmatpush3.bf16.msra.mxu1 %v3366_v55 }
0x1ead   : > { %2860 = vmatprep.subr.bf16.mxu1 %v3071_v54 }
0x1eb7   : > { %v1880_v22 = vpop.permute.xlu0 %1879 }
0x1f7a   : > { %v1857_v1 = vpop.f32.mrb[4].mxu1 }
0x1f7b   : > { %v1863_v10 = vadd.f32 %v1857_v1, %v1818_v63  ;;  %v2834_v9 = vpop.f32.mrb[5].mxu1 }
0x1f7c   : > { %v1860_v11 = vpop.f32.mrb[6].mxu1 }
0x1f7d   : > { %2999 = vtanh.f32 %v1863_v10  ;;  %v2835_v12 = vpop.f32.mrb[7].mxu1  ;;  %v2662_v15 = vmul.f32 -1.442695, %v1863_v10 }
0x1f7f   : > { %3001 = vpow2.f32 %v2662_v15 }
0x1f87   : > { %v3000_v14 = vpop.eup %2999 }
0x1f88   : > { %1884 = vrot.lane.b32.xlu1 %v3000_v14, %s3075_s13 }
0x1f89   : > { %v3002_v6 = vpop.eup %3001 }
0x1f8a   : > { %v1867_v16 = vadd.f32 1.0, %v3002_v6 }
0x1f8c   : > { %3003 = vrcp.f32 %v1867_v16 }
0x1f96   : > { %v3004_v18 = vpop.eup %3003 }
0x1f97   : > { %v1882_v23 = vmul.f32 %v3004_v18, %v1880_v22 }
0x1ffa   : > { %v1885_v19 = vpop.permute.xlu1 %1884 }
0x1ffb   : > { %v1887_v20 = vmul.f32 %v3004_v18, %v1885_v19 }
0x1ffd   : > { %1889 = vrot.lane.b32.xlu1 %v1887_v20, %s3076_s14 }
0x2001   : > { %1905 = vperm.xlu1 %2974, %v2664_v21  }
0x206f   : > { %v1890_v24 = vpop.permute.xlu1 %1889 }
0x2070   : > { %v1892_v25 = vadd.f32 %v1890_v24, %v1882_v23  ;;  %v2672_v24 = vld [vmem:[%s3135_s26 + $0x2] sm:$0x1] }
0x2072   : > { %3005 = vtanh.f32 %v1892_v25  ;;  %v1937_v29 = vrot.slane %v1892_v25, %v3394_v13  ;;  %v2077_v25 = vunpack.c.l.bf16 %v2672_v24 }
0x207c   : > { %v3006_v26 = vpop.eup %3005 }
0x207d   : > { %1895 = vrot.lane.b32.xlu0 %v3006_v26, %s3075_s13  ;;  %v2078_v26 = vadd.f32 %v2077_v25, %v3391_v59 }
0x2080   : > { %v1906_v34 = vpop.permute.xlu1 %1905 }
0x2081   : > { %1925 = vperm.xlu0 %2973, %v1922_v27  }
0x2085   : > { %1938 = vrot.lane.b32.xlu0 %v1937_v29, %s3077_s15 }
0x20ef   : > { %v1896_v30 = vpop.permute.xlu0 %1895 }
0x20f0   : > { %v1898_v31 = vmul.f32 %v3004_v18, %v1896_v30 }
0x20f2   : > { %v1915_v32 = vrot.slane %v1898_v31, %v3394_v13 }
0x20f4   : > { %1916 = vrot.lane.b32.xlu1 %v1915_v32, %s3076_s14 }
0x2100   : > { %v1926_v33 = vpop.permute.xlu0 %1925 }
0x2101   : > { %v1942_v35 = vmul.f32 %v1926_v33, %v1813_v3  ;;  %v1928_v40 = vmul.f32 %v1926_v33, %v1799_v60 }
0x2104   : > { %v1939_v17 = vpop.permute.xlu0 %1938 }
0x2105   : > { %v1941_v36 = vmul.f32 %v1939_v17, %v1906_v34 }
0x2107   : > { %v1943_v37 = vadd.f32 %v1942_v35, %v1941_v36 }
0x2109   : > { %v2008_v38 = vrot.slane %v1943_v37, %v3394_v13 }
0x210b   : > { %2009 = vrot.lane.b32.xlu0 %v2008_v38, %s3076_s14 }
0x2166   : > { %v1917_v39 = vpop.permute.xlu1 %1916 }
0x2167   : > { %v1919_v41 = vmul.f32 %v1917_v39, %v1906_v34 }
0x2169   : > { %2665 = vst.msk [vmem:[%s3146_s9 + $0x8] sm:$0x3] %vm321_vm0, %v1919_v41  ;;  %v1929_v42 = vadd.f32 %v1928_v40, %v1919_v41 }
0x216b   : > { %v1949_v43 = vpack.c.bf16 %v1929_v42, %v1929_v42 }
0x216d   : > { %2841 = vmatmul.mubr.msk.bf16.vlgmr.msra.gmra.mrb[8].mxu0 %vm1428_vm12, %v1949_v43 }
0x216e   : > { %2853 = vmatpush3.bf16.msra.mxu0 %v3358_v28  ;;  %2856 = vmatprep.mubr.msk.bf16.mxu0 %vm3072_vm11, %v3071_v54 }
0x216f   : > { %2854 = vmatprep.subr.bf16.mxu0 %v3071_v54 }
0x2172   : > { %2855 = vmatpush3.bf16.msra.mxu0 %v3366_v55 }
0x217d   : > { %v2010_v57 = vpop.permute.xlu0 %2009 }
0x2240   : > { %v1987_v46 = vpop.f32.mrb[8].mxu0 }
0x2241   : > { %v1993_v47 = vadd.f32 %v1987_v46, %v1948_v45  ;;  %v2842_v48 = vpop.f32.mrb[9].mxu0 }
0x2242   : > { %v1990_v49 = vpop.f32.mrb[10].mxu0 }
0x2243   : > { %3007 = vtanh.f32 %v1993_v47  ;;  %v2843_v50 = vpop.f32.mrb[11].mxu0  ;;  %v2668_v52 = vmul.f32 -1.442695, %v1993_v47 }
0x2245   : > { %3009 = vpow2.f32 %v2668_v52 }
0x224d   : > { %v3008_v51 = vpop.eup %3007 }
0x224e   : > { %2014 = vrot.lane.b32.xlu1 %v3008_v51, %s3075_s13 }
0x224f   : > { %v3010_v53 = vpop.eup %3009 }
0x2250   : > { %v1997_v56 = vadd.f32 1.0, %v3010_v53 }
0x2252   : > { %3011 = vrcp.f32 %v1997_v56 }
0x225c   : > { %v3012_v2 = vpop.eup %3011 }
0x225d   : > { %v2012_v58 = vmul.f32 %v3012_v2, %v2010_v57  ;;  %v2678_v57 = vld [vmem:[%s3135_s26 + $0x1] sm:$0x1] }
0x22c0   : > { %v2015_v3 = vpop.permute.xlu1 %2014 }
0x22c1   : > { %v2017_v4 = vmul.f32 %v3012_v2, %v2015_v3 }
0x22c3   : > { %2019 = vrot.lane.b32.xlu1 %v2017_v4, %s3076_s14 }
0x22c7   : > { %2035 = vperm.xlu1 %2974, %v2670_v5  }
0x2335   : > { %v2020_v60 = vpop.permute.xlu1 %2019 }
0x2336   : > { %v2022_v61 = vadd.f32 %v2020_v60, %v2012_v58  ;;  %v2207_v58 = vunpack.c.l.bf16 %v2678_v57 }
0x2338   : > { %3013 = vtanh.f32 %v2022_v61  ;;  %v2067_v63 = vrot.slane %v2022_v61, %v3394_v13  ;;  %v2208_v60 = vadd.f32 %v2207_v58, %v3391_v59 }
0x2342   : > { %v3014_v62 = vpop.eup %3013 }
0x2343   : > { %2025 = vrot.lane.b32.xlu0 %v3014_v62, %s3075_s13 }
0x2346   : > { %v2036_v12 = vpop.permute.xlu1 %2035 }
0x2347   : > { %2055 = vperm.xlu0 %2973, %v2052_v7  }
0x234b   : > { %2068 = vrot.lane.b32.xlu0 %v2067_v63, %s3077_s15 }
0x23b5   : > { %v2026_v1 = vpop.permute.xlu0 %2025 }
0x23b6   : > { %v2028_v10 = vmul.f32 %v3012_v2, %v2026_v1 }
0x23b8   : > { %v2045_v9 = vrot.slane %v2028_v10, %v3394_v13 }
0x23ba   : > { %2046 = vrot.lane.b32.xlu1 %v2045_v9, %s3076_s14 }
0x23c6   : > { %v2056_v11 = vpop.permute.xlu0 %2055 }
0x23c7   : > { %v2072_v15 = vmul.f32 %v2056_v11, %v1943_v37  ;;  %v2058_v20 = vmul.f32 %v2056_v11, %v1929_v42  ;;  %v2676_v37 = vsel %vm2675_vm3, 1.0, %v3071_v54 }
0x23c8   : > { %v2182_v43 = vsub.f32 1.0, %v2676_v37 }
0x23ca   : > { %v2069_v14 = vpop.permute.xlu0 %2068 }
0x23cb   : > { %v2071_v6 = vmul.f32 %v2069_v14, %v2036_v12 }
0x23cd   : > { %v2073_v16 = vadd.f32 %v2072_v15, %v2071_v6 }
0x23cf   : > { %v2138_v18 = vrot.slane %v2073_v16, %v3394_v13 }
0x23d1   : > { %2139 = vrot.lane.b32.xlu0 %v2138_v18, %s3076_s14 }
0x242c   : > { %v2047_v19 = vpop.permute.xlu1 %2046 }
0x242d   : > { %v2049_v21 = vmul.f32 %v2047_v19, %v2036_v12 }
0x242f   : > { %2671 = vst.msk [vmem:[%s3146_s9 + $0x6] sm:$0x3] %vm321_vm0, %v2049_v21  ;;  %v2059_v22 = vadd.f32 %v2058_v20, %v2049_v21 }
0x2431   : > { %v2079_v23 = vpack.c.bf16 %v2059_v22, %v2059_v22 }
0x2433   : > { %2849 = vmatmul.mubr.msk.bf16.vlgmr.msra.gmra.mrb[8].mxu1 %vm1428_vm12, %v2079_v23 }
0x2434   : > { %2861 = vmatpush3.bf16.msra.mxu1 %v3358_v28  ;;  %2864 = vmatprep.mubr.msk.bf16.mxu1 %vm3072_vm11, %v3071_v54 }
0x2435   : > { %2862 = vmatprep.subr.bf16.mxu1 %v3071_v54 }
0x2438   : > { %2863 = vmatpush3.bf16.msra.mxu1 %v3366_v55 }
0x2443   : > { %v2140_v38 = vpop.permute.xlu0 %2139 }
0x2506   : > { %v2117_v27 = vpop.f32.mrb[8].mxu1 }
0x2507   : > { %v2123_v29 = vadd.f32 %v2117_v27, %v2078_v26  ;;  %v2850_v30 = vpop.f32.mrb[9].mxu1 }
0x2508   : > { %v2120_v31 = vpop.f32.mrb[10].mxu1 }
0x2509   : > { %3015 = vtanh.f32 %v2123_v29  ;;  %v2851_v32 = vpop.f32.mrb[11].mxu1  ;;  %v2674_v28 = vmul.f32 -1.442695, %v2123_v29 }
0x250b   : > { %3017 = vpow2.f32 %v2674_v28 }
0x2513   : > { %v3016_v33 = vpop.eup %3015 }
0x2514   : > { %2144 = vrot.lane.b32.xlu1 %v3016_v33, %s3075_s13 }
0x2515   : > { %v3018_v34 = vpop.eup %3017 }
0x2516   : > { %v2127_v17 = vadd.f32 1.0, %v3018_v34 }
0x2518   : > { %3019 = vrcp.f32 %v2127_v17 }
0x2522   : > { %v3020_v35 = vpop.eup %3019 }
0x2523   : > { %v2142_v39 = vmul.f32 %v3020_v35, %v2140_v38  ;;  %v2334_v38 = vld [vmem:[%s3135_s26] sm:$0x1] }
0x2586   : > { %v2145_v55 = vpop.permute.xlu1 %2144 }
0x2587   : > { %v2147_v36 = vmul.f32 %v3020_v35, %v2145_v55 }
0x2589   : > { %2149 = vrot.lane.b32.xlu1 %v2147_v36, %s3076_s14 }
0x258d   : > { %2165 = vperm.xlu1 %2974, %v2676_v37  }
0x25fb   : > { %v2150_v40 = vpop.permute.xlu1 %2149 }
0x25fc   : > { %v2152_v41 = vadd.f32 %v2150_v40, %v2142_v39  ;;  %v2335_v39 = vunpack.c.l.bf16 %v2334_v38 }
0x25fe   : > { %3021 = vtanh.f32 %v2152_v41  ;;  %v2197_v8 = vrot.slane %v2152_v41, %v3394_v13  ;;  %v2336_v40 = vadd.f32 %v2335_v39, %v3391_v59  ;;  %v2687_v59 = vsel %vm2686_vm5, 1.0, %v3071_v54 }
0x2608   : > { %v3022_v42 = vpop.eup %3021 }
0x2609   : > { %2155 = vrot.lane.b32.xlu0 %v3022_v42, %s3075_s13 }
0x260c   : > { %v2166_v48 = vpop.permute.xlu1 %2165 }
0x260d   : > { %2185 = vperm.xlu0 %2973, %v2182_v43  }
0x2611   : > { %2198 = vrot.lane.b32.xlu0 %v2197_v8, %s3077_s15 }
0x267b   : > { %v2156_v44 = vpop.permute.xlu0 %2155 }
0x267c   : > { %v2158_v45 = vmul.f32 %v3020_v35, %v2156_v44 }
0x267e   : > { %v2175_v46 = vrot.slane %v2158_v45, %v3394_v13 }
0x2680   : > { %2176 = vrot.lane.b32.xlu1 %v2175_v46, %s3076_s14 }
0x268c   : > { %v2186_v47 = vpop.permute.xlu0 %2185 }
0x268d   : > { %v2202_v50 = vmul.f32 %v2186_v47, %v2073_v16  ;;  %v2188_v2 = vmul.f32 %v2186_v47, %v2059_v22  ;;  %v2682_v16 = vsel %vm2681_vm4, 1.0, %v3071_v54 }
0x268e   : > { %v2312_v23 = vsub.f32 1.0, %v2682_v16 }
0x2690   : > { %v2199_v49 = vpop.permute.xlu0 %2198 }
0x2691   : > { %v2201_v51 = vmul.f32 %v2199_v49, %v2166_v48 }
0x2693   : > { %v2203_v52 = vadd.f32 %v2202_v50, %v2201_v51 }
0x2695   : > { %v2268_v53 = vrot.slane %v2203_v52, %v3394_v13 }
0x2697   : > { %2269 = vrot.lane.b32.xlu0 %v2268_v53, %s3076_s14 }
0x26f2   : > { %v2177_v56 = vpop.permute.xlu1 %2176 }
0x26f3   : > { %v2179_v3 = vmul.f32 %v2177_v56, %v2166_v48 }
0x26f5   : > { %2677 = vst.msk [vmem:[%s3146_s9 + $0x4] sm:$0x3] %vm321_vm0, %v2179_v3  ;;  %v2189_v4 = vadd.f32 %v2188_v2, %v2179_v3 }
0x26f7   : > { %v2209_v5 = vpack.c.bf16 %v2189_v4, %v2189_v4 }
0x26f9   : > { %2857 = vmatmul.mubr.msk.bf16.vlgmr.msra.gmra.mrb[12].mxu0 %vm1428_vm12, %v2209_v5 }
0x2709   : > { %v2270_v18 = vpop.permute.xlu0 %2269 }
0x27cc   : > { %v2247_v61 = vpop.f32.mrb[12].mxu0 }
0x27cd   : > { %v2253_v62 = vadd.f32 %v2247_v61, %v2208_v60  ;;  %v2858_v7 = vpop.f32.mrb[13].mxu0 }
0x27ce   : > { %v2250_v63 = vpop.f32.mrb[14].mxu0 }
0x27cf   : > { %3023 = vtanh.f32 %v2253_v62  ;;  %v2859_v1 = vpop.f32.mrb[15].mxu0  ;;  %v2680_v9 = vmul.f32 -1.442695, %v2253_v62 }
0x27d1   : > { %3025 = vpow2.f32 %v2680_v9 }
0x27d9   : > { %v3024_v10 = vpop.eup %3023 }
0x27da   : > { %2274 = vrot.lane.b32.xlu1 %v3024_v10, %s3075_s13 }
0x27db   : > { %v3026_v11 = vpop.eup %3025 }
0x27dc   : > { %v2257_v12 = vadd.f32 1.0, %v3026_v11 }
0x27de   : > { %3027 = vrcp.f32 %v2257_v12 }
0x27e8   : > { %v3028_v14 = vpop.eup %3027 }
0x27e9   : > { %v2272_v19 = vmul.f32 %v3028_v14, %v2270_v18 }
0x284c   : > { %v2275_v15 = vpop.permute.xlu1 %2274 }
0x284d   : > { %v2277_v6 = vmul.f32 %v3028_v14, %v2275_v15 }
0x284f   : > { %2279 = vrot.lane.b32.xlu1 %v2277_v6, %s3076_s14 }
0x2853   : > { %2295 = vperm.xlu1 %2974, %v2682_v16  }
0x28c1   : > { %v2280_v20 = vpop.permute.xlu1 %2279 }
0x28c2   : > { %v2282_v21 = vadd.f32 %v2280_v20, %v2272_v19 }
0x28c4   : > { %3029 = vtanh.f32 %v2282_v21  ;;  %v2327_v24 = vrot.slane %v2282_v21, %v3394_v13 }
0x28ce   : > { %v3030_v22 = vpop.eup %3029 }
0x28cf   : > { %2285 = vrot.lane.b32.xlu0 %v3030_v22, %s3075_s13 }
0x28d2   : > { %v2296_v30 = vpop.permute.xlu1 %2295 }
0x28d3   : > { %2315 = vperm.xlu0 %2973, %v2312_v23  }
0x28d7   : > { %2328 = vrot.lane.b32.xlu0 %v2327_v24, %s3077_s15 }
0x2941   : > { %v2286_v25 = vpop.permute.xlu0 %2285 }
0x2942   : > { %v2288_v26 = vmul.f32 %v3028_v14, %v2286_v25 }
0x2944   : > { %v2305_v27 = vrot.slane %v2288_v26, %v3394_v13 }
0x2946   : > { %2306 = vrot.lane.b32.xlu1 %v2305_v27, %s3076_s14 }
0x2952   : > { %v2316_v29 = vpop.permute.xlu0 %2315 }
0x2953   : > { %v2332_v32 = vmul.f32 %v2316_v29, %v2203_v52  ;;  %v2318_v35 = vmul.f32 %v2316_v29, %v2189_v4  ;;  %v2439_v4 = vsub.f32 1.0, %v2687_v59 }
0x2956   : > { %v2329_v31 = vpop.permute.xlu0 %2328 }
0x2957   : > { %v2331_v33 = vmul.f32 %v2329_v31, %v2296_v30 }
0x2959   : > { %v2333_v28 = vadd.f32 %v2332_v32, %v2331_v33 }
0x295b   : > { %v2396_v34 = vrot.slane %v2333_v28, %v3394_v13 }
0x295d   : > { %2397 = vrot.lane.b32.xlu0 %v2396_v34, %s3076_s14 }
0x29b8   : > { %v2307_v17 = vpop.permute.xlu1 %2306 }
0x29b9   : > { %v2309_v55 = vmul.f32 %v2307_v17, %v2296_v30 }
0x29bb   : > { %2683 = vst.msk [vmem:[%s3146_s9 + $0x2] sm:$0x3] %vm321_vm0, %v2309_v55  ;;  %v2319_v36 = vadd.f32 %v2318_v35, %v2309_v55 }
0x29bd   : > { %v2337_v37 = vpack.c.bf16 %v2319_v36, %v2319_v36 }
0x29bf   : > { %2865 = vmatmul.mubr.msk.bf16.vlgmr.msra.gmra.mrb[12].mxu1 %vm1428_vm12, %v2337_v37 }
0x29cf   : > { %v2398_v52 = vpop.permute.xlu0 %2397 }
0x2a92   : > { %v2375_v41 = vpop.f32.mrb[12].mxu1 }
0x2a93   : > { %v2381_v42 = vadd.f32 %v2375_v41, %v2336_v40  ;;  %v2866_v43 = vpop.f32.mrb[13].mxu1 }
0x2a94   : > { %v2378_v8 = vpop.f32.mrb[14].mxu1 }
0x2a95   : > { %3031 = vtanh.f32 %v2381_v42  ;;  %v2867_v44 = vpop.f32.mrb[15].mxu1  ;;  %v2685_v46 = vmul.f32 -1.442695, %v2381_v42 }
0x2a97   : > { %3033 = vpow2.f32 %v2685_v46 }
0x2a9f   : > { %v3032_v45 = vpop.eup %3031 }
0x2aa0   : > { %2402 = vrot.lane.b32.xlu1 %v3032_v45, %s3075_s13 }
0x2aa1   : > { %v3034_v47 = vpop.eup %3033 }
0x2aa2   : > { %v2385_v48 = vadd.f32 1.0, %v3034_v47 }
0x2aa4   : > { %3035 = vrcp.f32 %v2385_v48 }
0x2aae   : > { %v3036_v49 = vpop.eup %3035 }
0x2aaf   : > { %v2400_v53 = vmul.f32 %v3036_v49, %v2398_v52 }
0x2b12   : > { %v2403_v50 = vpop.permute.xlu1 %2402 }
0x2b13   : > { %v2405_v51 = vmul.f32 %v3036_v49, %v2403_v50 }
0x2b15   : > { %2407 = vrot.lane.b32.xlu1 %v2405_v51, %s3076_s14 }
0x2b19   : > { %2423 = vperm.xlu1 %2974, %v2687_v59  }
0x2b87   : > { %v2408_v56 = vpop.permute.xlu1 %2407 }
0x2b88   : > { %v2410_v2 = vadd.f32 %v2408_v56, %v2400_v53 }
0x2b8a   : > { %3037 = vtanh.f32 %v2410_v2  ;;  %v2454_v5 = vrot.slane %v2410_v2, %v3394_v13 }
0x2b94   : > { %v3038_v3 = vpop.eup %3037 }
0x2b95   : > { %2413 = vrot.lane.b32.xlu0 %v3038_v3, %s3075_s13 }
0x2b98   : > { %v2424_v60 = vpop.permute.xlu1 %2423 }
0x2b99   : > { %2442 = vperm.xlu0 %2973, %v2439_v4  }
0x2b9d   : > { %2455 = vrot.lane.b32.xlu0 %v2454_v5, %s3077_s15 }
0x2c07   : > { %v2414_v0 = vpop.permute.xlu0 %2413 }
0x2c08   : > { %v2416_v57 = vmul.f32 %v3036_v49, %v2414_v0 }
0x2c0a   : > { %v2433_v54 = vrot.slane %v2416_v57, %v3394_v13 }
0x2c0c   : > { %2434 = vrot.lane.b32.xlu1 %v2433_v54, %s3076_s14 }
0x2c18   : > { %v2443_v58 = vpop.permute.xlu0 %2442 }
0x2c19   : > { %v2459_v62 = vmul.f32 %v2443_v58, %v2333_v28  ;;  %v2445_v10 = vmul.f32 %v2443_v58, %v2319_v36 }
0x2c1c   : > { %v2456_v61 = vpop.permute.xlu0 %2455 }
0x2c1d   : > { %v2458_v7 = vmul.f32 %v2456_v61, %v2424_v60 }
0x2c1f   : > { %v2460_v63 = vadd.f32 %v2459_v62, %v2458_v7 }
0x2c21   : > { %2462 = vst.msk [vmem:[#allocation3] sm:$0x3] %vm321_vm0, %v2460_v63 }
0x2c7e   : > { %v2435_v1 = vpop.permute.xlu1 %2434 }
0x2c7f   : > { %v2437_v9 = vmul.f32 %v2435_v1, %v2424_v60 }
0x2c81   : > { %2438 = vst.msk [vmem:[%s3146_s9] sm:$0x3] %vm321_vm0, %v2437_v9  ;;  %v2446_v11 = vadd.f32 %v2445_v10, %v2437_v9 }
0x2c83   : > { %2461 = vst.msk [vmem:[#allocation2] sm:$0x3] %vm321_vm0, %v2446_v11 }
0x2c84 PF: > { %s14_s17 = sadd.s32 1, %s3061_s17   ;;  %s3566_s15 = smov %s3057_s16 }
0x2c85   : > { %p11_p7 = scmp.ge.s32.totalorder %s14_s17, 4   ;;  %s3567_s16 = smov %s3569_s18 }
0x2c87   :  { %13 = sbr.rel (!%p11_p7) target bundleno = 2 (0x2), region = 112 }

</bundles_post_ra>
